<compile_context>
chip_gen: v7x
topology: tpu7x:2x2x1
jax: 0.10.0
libtpu: 0.0.40
codegen_flags: <defaults>
</compile_context>

<pallas_src>
import functools
import numpy as np

import jax
import jax.numpy as jnp
from jax import lax
from jax.experimental import pallas as pl
from jax.experimental.pallas import tpu as pltpu


_SQRT2_INV = 0.7071067811865476
_LN_EPS = 1e-12


def _erf_approx(z):
    # Abramowitz & Stegun 7.1.26 polynomial erf (|abs err| < 1.5e-7), built only
    # from exp/abs/where/mul so it lowers cleanly on the TPU VPU/EUP.
    az = jnp.abs(z)
    t = 1.0 / (1.0 + 0.3275911 * az)
    poly = ((((1.061405429 * t - 1.453152027) * t + 1.421413741) * t
             - 0.284496736) * t + 0.254829592) * t
    y = 1.0 - poly * jnp.exp(-az * az)
    return jnp.where(z >= 0.0, y, -y)


def _gelu(x):
    # TODO(synk): torch.erf-exact gelu replaced by a <1.5e-7 polynomial erf in-kernel.
    return x * 0.5 * (1.0 + _erf_approx(x * _SQRT2_INV))


def _layernorm(x, gamma, beta):
    # TF-style LayerNorm (epsilon inside the sqrt), matching the module.
    u = jnp.mean(x, axis=-1, keepdims=True)
    c = x - u
    s = jnp.mean(c * c, axis=-1, keepdims=True)
    return c * lax.rsqrt(s + _LN_EPS) * gamma + beta


def _two_stage_decoder_kernel(
        x_ref, pos_ref, wo_ref, bo_ref, ge_ref, be_ref,
        wq_ref, bq_ref, wk_ref, bk_ref, wv_ref, bv_ref,
        wp_ref, bp_ref, g1_ref, b1_ref,
        wf1_ref, bf1_ref, wf2_ref, bf2_ref, g2_ref, b2_ref,
        wo1_ref, bo1_ref,
        x1_ref, x2_ref,
        *, n_layers, n_heads, bt, seq, d_model, n_vocab):
    head_w = d_model // n_heads

    x = x_ref[...]                                # (bt, seq, d)
    xf = x.reshape(bt * seq, d_model)             # fuse batch*seq rows for the MXU

    # ---- Stage 1: x1 = out_w(x) -------------------------------------------
    x1 = jnp.dot(xf, wo_ref[...], preferred_element_type=jnp.float32) + bo_ref[...]
    x1_ref[...] = x1.reshape(bt, seq, n_vocab)

    # ---- Embeddings: LayerNorm(x + pos_embed)  (dropout == identity) ------
    e = x + pos_ref[...][None, :, :]
    h = _layernorm(e.reshape(bt * seq, d_model), ge_ref[...], be_ref[...])

    # ---- Transformer blocks -------------------------------------------------
    for l in range(n_layers):
        wq = wq_ref[l]
        wk = wk_ref[l]
        wv = wv_ref[l]
        wp = wp_ref[l]
        # 1/sqrt(head_w) is already folded into wq / bq host-side.
        q = jnp.dot(h, wq, preferred_element_type=jnp.float32) + bq_ref[l]
        k = jnp.dot(h, wk, preferred_element_type=jnp.float32) + bk_ref[l]
        v = jnp.dot(h, wv, preferred_element_type=jnp.float32) + bv_ref[l]
        q3 = q.reshape(bt, seq, d_model)
        k3 = k.reshape(bt, seq, d_model)
        v3 = v.reshape(bt, seq, d_model)

        # Heads are accumulated straight into the proj matmul (no concat).
        att = jnp.zeros((bt * seq, d_model), jnp.float32)
        for hd in range(n_heads):
            lo, hi = hd * head_w, (hd + 1) * head_w
            qh = q3[:, :, lo:hi]
            kh = k3[:, :, lo:hi]
            vh = v3[:, :, lo:hi]
            sc = jnp.einsum('bsw,btw->bst', qh, kh,
                            preferred_element_type=jnp.float32)
            sc = sc - jnp.max(sc, axis=-1, keepdims=True)
            p = jnp.exp(sc)
            p = p * pl.reciprocal(jnp.sum(p, axis=-1, keepdims=True))
            ctx = jnp.einsum('bst,btw->bsw', p, vh,
                             preferred_element_type=jnp.float32)
            att = att + jnp.dot(ctx.reshape(bt * seq, head_w), wp[lo:hi, :],
                                preferred_element_type=jnp.float32)
        att = att + bp_ref[l]
        h = _layernorm(h + att, g1_ref[l], b1_ref[l])

        ff = jnp.dot(h, wf1_ref[l], preferred_element_type=jnp.float32) + bf1_ref[l]
        ff = _gelu(ff)
        ff = jnp.dot(ff, wf2_ref[l], preferred_element_type=jnp.float32) + bf2_ref[l]
        h = _layernorm(h + ff, g2_ref[l], b2_ref[l])

    # ---- Stage 2: x2 = out_w1(transformer output) --------------------------
    x2 = jnp.dot(h, wo1_ref[...], preferred_element_type=jnp.float32) + bo1_ref[...]
    x2_ref[...] = x2.reshape(bt, seq, n_vocab)


def two_stage_decoder(x, params, *, n_heads, block_b=None):
    """Pallas forward of Two_Stage_Decoder. Returns (x1, x2)."""
    B, S, D = x.shape
    V = params['out_w_w'].shape[0]
    layers = params['layers']
    L = len(layers)
    F = layers[0]['wfc1'].shape[0]
    head_w = D // n_heads
    assert n_heads * head_w == D

    if block_b is None:
        block_b = B if B <= 8 else 8
    while B % block_b:               # fall back to a divisor of B
        block_b -= 1

    f32 = jnp.float32
    scale = 1.0 / np.sqrt(head_w)

    def stk_w(key, scale_=1.0):
        return jnp.stack([p[key].T for p in layers]).astype(f32) * scale_

    def stk_b(key, scale_=1.0):
        return jnp.stack([p[key].reshape(1, -1) for p in layers]).astype(f32) * scale_

    wq, bq = stk_w('wq', scale), stk_b('bq', scale)      # scale folded in
    wk, bk = stk_w('wk'), stk_b('bk')
    wv, bv = stk_w('wv'), stk_b('bv')
    wp, bp = stk_w('wproj'), stk_b('bproj')
    g1, b1 = stk_b('g1'), stk_b('b1')
    wf1, bf1 = stk_w('wfc1'), stk_b('bfc1')
    wf2, bf2 = stk_w('wfc2'), stk_b('bfc2')
    g2, b2 = stk_b('g2'), stk_b('b2')

    pos = params['pos_embed'][:S].astype(f32)                       # (S, D)
    wo = params['out_w_w'].T.astype(f32)                            # (D, V)
    bo = params['out_w_b'].reshape(1, -1).astype(f32)
    wo1 = params['out_w1_w'].T.astype(f32)
    bo1 = params['out_w1_b'].reshape(1, -1).astype(f32)
    ge = params['embed_gamma'].reshape(1, -1).astype(f32)
    be = params['embed_beta'].reshape(1, -1).astype(f32)

    kernel = functools.partial(
        _two_stage_decoder_kernel, n_layers=L, n_heads=n_heads,
        bt=block_b, seq=S, d_model=D, n_vocab=V)

    def full(shape):
        return pl.BlockSpec(shape, lambda b, _n=len(shape): (0,) * _n)

    grid_spec = pltpu.PrefetchScalarGridSpec(
        num_scalar_prefetch=0,
        grid=(B // block_b,),
        in_specs=[
            pl.BlockSpec((block_b, S, D), lambda b: (b, 0, 0)),     # x
            full((S, D)),                                           # pos embed
            full((D, V)), full((1, V)),                             # out_w
            full((1, D)), full((1, D)),                             # embed LN
            full((L, D, D)), full((L, 1, D)),                       # q
            full((L, D, D)), full((L, 1, D)),                       # k
            full((L, D, D)), full((L, 1, D)),                       # v
            full((L, D, D)), full((L, 1, D)),                       # proj
            full((L, 1, D)), full((L, 1, D)),                       # norm1
            full((L, D, F)), full((L, 1, F)),                       # fc1
            full((L, F, D)), full((L, 1, D)),                       # fc2
            full((L, 1, D)), full((L, 1, D)),                       # norm2
            full((D, V)), full((1, V)),                             # out_w1
        ],
        out_specs=(
            pl.BlockSpec((block_b, S, V), lambda b: (b, 0, 0)),
            pl.BlockSpec((block_b, S, V), lambda b: (b, 0, 0)),
        ),
    )

    x1, x2 = pl.pallas_call(
        kernel,
        out_shape=(jax.ShapeDtypeStruct((B, S, V), f32),
                   jax.ShapeDtypeStruct((B, S, V), f32)),
        grid_spec=grid_spec,
        compiler_params=pltpu.CompilerParams(
            dimension_semantics=("parallel",),
            vmem_limit_bytes=32 * 1024 * 1024),
    )(x.astype(f32), pos, wo, bo, ge, be,
      wq, bq, wk, bk, wv, bv, wp, bp, g1, b1,
      wf1, bf1, wf2, bf2, g2, b2, wo1, bo1)
    return x1, x2


# ----------------------------- pure-JAX reference ---------------------------
def _layernorm_ref(x, gamma, beta):
    u = jnp.mean(x, axis=-1, keepdims=True)
    s = jnp.mean((x - u) ** 2, axis=-1, keepdims=True)
    return gamma * ((x - u) / jnp.sqrt(s + _LN_EPS)) + beta


def _reference(x, params, *, n_heads):
    B, S, D = x.shape
    W = D // n_heads
    x1 = x @ params['out_w_w'].T + params['out_w_b']
    h = x + params['pos_embed'][:S][None, :, :]
    h = _layernorm_ref(h, params['embed_gamma'], params['embed_beta'])
    for p in params['layers']:
        q = h @ p['wq'].T + p['bq']
        k = h @ p['wk'].T + p['bk']
        v = h @ p['wv'].T + p['bv']

        def split(t):
            return t.reshape(B, S, n_heads, W).transpose(0, 2, 1, 3)

        qh, kh, vh = split(q), split(k), split(v)
        sc = jnp.einsum('bhsw,bhtw->bhst', qh, kh) / np.sqrt(W)
        sc = jax.nn.softmax(sc, axis=-1)
        ctx = jnp.einsum('bhst,bhtw->bhsw', sc, vh)
        ctx = ctx.transpose(0, 2, 1, 3).reshape(B, S, D)
        h = _layernorm_ref(h + ctx @ p['wproj'].T + p['bproj'], p['g1'], p['b1'])
        ff = h @ p['wfc1'].T + p['bfc1']
        ff = ff * 0.5 * (1.0 + jax.lax.erf(ff / np.sqrt(2.0)))   # exact gelu
        ff = ff @ p['wfc2'].T + p['bfc2']
        h = _layernorm_ref(h + ff, p['g2'], p['b2'])
    x2 = h @ params['out_w1_w'].T + params['out_w1_b']
    return x1, x2


if __name__ == "__main__":
    # Small shapes consistent with the module: dim_c == dim.
    B, S = 2, 8
    D = 32            # cfg.dim == cfg.dim_c
    H = 4             # cfg.n_heads
    F = 64            # cfg.dim_ff
    L = 2             # cfg.decoder_atten_layers
    V = 16            # cfg.len_alphabet
    P = 16            # cfg.p_dim (max positions)

    keys = iter(jax.random.split(jax.random.PRNGKey(0), 64))

    def dense(shape, fan_in):
        return (jax.random.normal(next(keys), shape, dtype=jnp.float32)
                / np.sqrt(fan_in))

    def bias(shape):
        return 0.02 * jax.random.normal(next(keys), shape, dtype=jnp.float32)

    layers = []
    for _ in range(L):
        layers.append({
            'wq': dense((D, D), D), 'bq': bias((D,)),
            'wk': dense((D, D), D), 'bk': bias((D,)),
            'wv': dense((D, D), D), 'bv': bias((D,)),
            'wproj': dense((D, D), D), 'bproj': bias((D,)),
            'g1': jnp.ones((D,), jnp.float32) + bias((D,)),
            'b1': bias((D,)),
            'wfc1': dense((F, D), D), 'bfc1': bias((F,)),
            'wfc2': dense((D, F), F), 'bfc2': bias((D,)),
            'g2': jnp.ones((D,), jnp.float32) + bias((D,)),
            'b2': bias((D,)),
        })
    params = {
        'out_w_w': dense((V, D), D), 'out_w_b': bias((V,)),
        'out_w1_w': dense((V, D), D), 'out_w1_b': bias((V,)),
        'pos_embed': jax.random.normal(next(keys), (P, D), dtype=jnp.float32),
        'embed_gamma': jnp.ones((D,), jnp.float32),
        'embed_beta': jnp.zeros((D,), jnp.float32),
        'layers': layers,
    }

    x = jax.random.normal(next(keys), (B, S, D), dtype=jnp.float32)

    x1, x2 = two_stage_decoder(x, params, n_heads=H)
    x1 = jax.block_until_ready(x1)
    x2 = jax.block_until_ready(x2)

    r1, r2 = _reference(x, params, n_heads=H)
    r1 = jax.block_until_ready(r1)
    r2 = jax.block_until_ready(r2)

    assert x1.shape == (B, S, V), x1.shape
    assert x2.shape == (B, S, V), x2.shape
    np.testing.assert_allclose(np.asarray(x1), np.asarray(r1), rtol=1e-4, atol=1e-4)
    np.testing.assert_allclose(np.asarray(x2), np.asarray(r2), rtol=1e-4, atol=1e-4)
    print("KERNEL_OK")
</pallas_src>

<mosaic_0001>
module attributes {stable_mosaic.version = 11 : i64} {
  func.func @_two_stage_decoder_kernel(%arg0: i32, %arg1: memref<2x8x32xf32, #tpu.memory_space<vmem>>, %arg2: memref<8x32xf32, #tpu.memory_space<vmem>>, %arg3: memref<32x16xf32, #tpu.memory_space<vmem>>, %arg4: memref<1x16xf32, #tpu.memory_space<vmem>>, %arg5: memref<1x32xf32, #tpu.memory_space<vmem>>, %arg6: memref<1x32xf32, #tpu.memory_space<vmem>>, %arg7: memref<2x32x32xf32, #tpu.memory_space<vmem>>, %arg8: memref<2x1x32xf32, #tpu.memory_space<vmem>>, %arg9: memref<2x32x32xf32, #tpu.memory_space<vmem>>, %arg10: memref<2x1x32xf32, #tpu.memory_space<vmem>>, %arg11: memref<2x32x32xf32, #tpu.memory_space<vmem>>, %arg12: memref<2x1x32xf32, #tpu.memory_space<vmem>>, %arg13: memref<2x32x32xf32, #tpu.memory_space<vmem>>, %arg14: memref<2x1x32xf32, #tpu.memory_space<vmem>>, %arg15: memref<2x1x32xf32, #tpu.memory_space<vmem>>, %arg16: memref<2x1x32xf32, #tpu.memory_space<vmem>>, %arg17: memref<2x32x64xf32, #tpu.memory_space<vmem>>, %arg18: memref<2x1x64xf32, #tpu.memory_space<vmem>>, %arg19: memref<2x64x32xf32, #tpu.memory_space<vmem>>, %arg20: memref<2x1x32xf32, #tpu.memory_space<vmem>>, %arg21: memref<2x1x32xf32, #tpu.memory_space<vmem>>, %arg22: memref<2x1x32xf32, #tpu.memory_space<vmem>>, %arg23: memref<32x16xf32, #tpu.memory_space<vmem>>, %arg24: memref<1x16xf32, #tpu.memory_space<vmem>>, %arg25: memref<2x8x16xf32, #tpu.memory_space<vmem>>, %arg26: memref<2x8x16xf32, #tpu.memory_space<vmem>>) attributes {dimension_semantics = [#tpu.dimension_semantics<parallel>], iteration_bounds = array<i64: 1>, scalar_prefetch = 0 : i64, scratch_operands = 0 : i64, tpu.core_type = #tpu.core_type<tc>, window_params = [{transform_indices = @transform_0, window_bounds = array<i64: 2, 8, 32>}, {pipeline_mode = #tpu.pipeline_mode<synchronous>, transform_indices = @transform_1, window_bounds = array<i64: 8, 32>}, {pipeline_mode = #tpu.pipeline_mode<synchronous>, transform_indices = @transform_2, window_bounds = array<i64: 32, 16>}, {pipeline_mode = #tpu.pipeline_mode<synchronous>, transform_indices = @transform_3, window_bounds = array<i64: 1, 16>}, {pipeline_mode = #tpu.pipeline_mode<synchronous>, transform_indices = @transform_4, window_bounds = array<i64: 1, 32>}, {pipeline_mode = #tpu.pipeline_mode<synchronous>, transform_indices = @transform_5, window_bounds = array<i64: 1, 32>}, {pipeline_mode = #tpu.pipeline_mode<synchronous>, transform_indices = @transform_6, window_bounds = array<i64: 2, 32, 32>}, {pipeline_mode = #tpu.pipeline_mode<synchronous>, transform_indices = @transform_7, window_bounds = array<i64: 2, 1, 32>}, {pipeline_mode = #tpu.pipeline_mode<synchronous>, transform_indices = @transform_8, window_bounds = array<i64: 2, 32, 32>}, {pipeline_mode = #tpu.pipeline_mode<synchronous>, transform_indices = @transform_9, window_bounds = array<i64: 2, 1, 32>}, {pipeline_mode = #tpu.pipeline_mode<synchronous>, transform_indices = @transform_10, window_bounds = array<i64: 2, 32, 32>}, {pipeline_mode = #tpu.pipeline_mode<synchronous>, transform_indices = @transform_11, window_bounds = array<i64: 2, 1, 32>}, {pipeline_mode = #tpu.pipeline_mode<synchronous>, transform_indices = @transform_12, window_bounds = array<i64: 2, 32, 32>}, {pipeline_mode = #tpu.pipeline_mode<synchronous>, transform_indices = @transform_13, window_bounds = array<i64: 2, 1, 32>}, {pipeline_mode = #tpu.pipeline_mode<synchronous>, transform_indices = @transform_14, window_bounds = array<i64: 2, 1, 32>}, {pipeline_mode = #tpu.pipeline_mode<synchronous>, transform_indices = @transform_15, window_bounds = array<i64: 2, 1, 32>}, {pipeline_mode = #tpu.pipeline_mode<synchronous>, transform_indices = @transform_16, window_bounds = array<i64: 2, 32, 64>}, {pipeline_mode = #tpu.pipeline_mode<synchronous>, transform_indices = @transform_17, window_bounds = array<i64: 2, 1, 64>}, {pipeline_mode = #tpu.pipeline_mode<synchronous>, transform_indices = @transform_18, window_bounds = array<i64: 2, 64, 32>}, {pipeline_mode = #tpu.pipeline_mode<synchronous>, transform_indices = @transform_19, window_bounds = array<i64: 2, 1, 32>}, {pipeline_mode = #tpu.pipeline_mode<synchronous>, transform_indices = @transform_20, window_bounds = array<i64: 2, 1, 32>}, {pipeline_mode = #tpu.pipeline_mode<synchronous>, transform_indices = @transform_21, window_bounds = array<i64: 2, 1, 32>}, {pipeline_mode = #tpu.pipeline_mode<synchronous>, transform_indices = @transform_22, window_bounds = array<i64: 32, 16>}, {pipeline_mode = #tpu.pipeline_mode<synchronous>, transform_indices = @transform_23, window_bounds = array<i64: 1, 16>}, {transform_indices = @transform_24, window_bounds = array<i64: 2, 8, 16>}, {transform_indices = @transform_25, window_bounds = array<i64: 2, 8, 16>}]} {
    %c0 = arith.constant 0 : index
    %c0_0 = arith.constant 0 : index
    %c0_1 = arith.constant 0 : index
    %0 = vector.load %arg1[%c0, %c0_0, %c0_1] : memref<2x8x32xf32, #tpu.memory_space<vmem>>, vector<2x8x32xf32>
    %1 = vector.shape_cast %0 : vector<2x8x32xf32> to vector<16x32xf32>
    %c0_2 = arith.constant 0 : index
    %c0_3 = arith.constant 0 : index
    %2 = vector.load %arg3[%c0_2, %c0_3] : memref<32x16xf32, #tpu.memory_space<vmem>>, vector<32x16xf32>
    %cst = arith.constant dense<0.000000e+00> : vector<16x16xf32>
    %3 = tpu.matmul %1, %2, %cst {dimension_numbers = #tpu.dot_dimension_numbers<[1], [0], [0], [1], [0, 0, 1, 1], [], []>} : vector<16x32xf32>, vector<32x16xf32>, vector<16x16xf32> -> vector<16x16xf32>
    %c0_4 = arith.constant 0 : index
    %c0_5 = arith.constant 0 : index
    %4 = vector.load %arg4[%c0_4, %c0_5] : memref<1x16xf32, #tpu.memory_space<vmem>>, vector<1x16xf32>
    %5 = vector.broadcast %4 : vector<1x16xf32> to vector<16x16xf32>
    %6 = arith.addf %3, %5 : vector<16x16xf32>
    %7 = vector.shape_cast %6 : vector<16x16xf32> to vector<2x8x16xf32>
    %c0_6 = arith.constant 0 : index
    %c0_7 = arith.constant 0 : index
    %c0_8 = arith.constant 0 : index
    %8 = vector.load %arg25[%c0_6, %c0_7, %c0_8] : memref<2x8x16xf32, #tpu.memory_space<vmem>>, vector<2x8x16xf32>
    tpu.vector_store %arg25[%c0_6, %c0_7, %c0_8], %7 {strides = array<i32>} : memref<2x8x16xf32, #tpu.memory_space<vmem>>, vector<2x8x16xf32>,
    %c0_9 = arith.constant 0 : index
    %c0_10 = arith.constant 0 : index
    %9 = vector.load %arg2[%c0_9, %c0_10] : memref<8x32xf32, #tpu.memory_space<vmem>>, vector<8x32xf32>
    %10 = vector.shape_cast %9 : vector<8x32xf32> to vector<1x8x32xf32>
    %11 = vector.broadcast %10 : vector<1x8x32xf32> to vector<2x8x32xf32>
    %12 = arith.addf %0, %11 : vector<2x8x32xf32>
    %13 = vector.shape_cast %12 : vector<2x8x32xf32> to vector<16x32xf32>
    %c0_11 = arith.constant 0 : index
    %c0_12 = arith.constant 0 : index
    %14 = vector.load %arg5[%c0_11, %c0_12] : memref<1x32xf32, #tpu.memory_space<vmem>>, vector<1x32xf32>
    %c0_13 = arith.constant 0 : index
    %c0_14 = arith.constant 0 : index
    %15 = vector.load %arg6[%c0_13, %c0_14] : memref<1x32xf32, #tpu.memory_space<vmem>>, vector<1x32xf32>
    %cst_15 = arith.constant dense<0.000000e+00> : vector<16xf32>
    %16 = vector.multi_reduction <add>, %13, %cst_15 [1] : vector<16x32xf32> to vector<16xf32>
    %17 = vector.shape_cast %16 : vector<16xf32> to vector<16x1xf32>
    %cst_16 = arith.constant 3.200000e+01 : f32
    %18 = vector.broadcast %cst_16 : f32 to vector<16x1xf32>
    %19 = arith.divf %17, %18 : vector<16x1xf32>
    %20 = vector.broadcast %19 : vector<16x1xf32> to vector<16x32xf32>
    %21 = arith.subf %13, %20 : vector<16x32xf32>
    %22 = arith.mulf %21, %21 : vector<16x32xf32>
    %cst_17 = arith.constant dense<0.000000e+00> : vector<16xf32>
    %23 = vector.multi_reduction <add>, %22, %cst_17 [1] : vector<16x32xf32> to vector<16xf32>
    %24 = vector.shape_cast %23 : vector<16xf32> to vector<16x1xf32>
    %cst_18 = arith.constant 3.200000e+01 : f32
    %25 = vector.broadcast %cst_18 : f32 to vector<16x1xf32>
    %26 = arith.divf %24, %25 : vector<16x1xf32>
    %cst_19 = arith.constant 9.99999996E-13 : f32
    %27 = vector.broadcast %cst_19 : f32 to vector<16x1xf32>
    %28 = arith.addf %26, %27 : vector<16x1xf32>
    %29 = math.rsqrt %28 : vector<16x1xf32>
    %30 = vector.broadcast %29 : vector<16x1xf32> to vector<16x32xf32>
    %31 = arith.mulf %21, %30 : vector<16x32xf32>
    %32 = vector.broadcast %14 : vector<1x32xf32> to vector<16x32xf32>
    %33 = arith.mulf %31, %32 : vector<16x32xf32>
    %34 = vector.broadcast %15 : vector<1x32xf32> to vector<16x32xf32>
    %35 = arith.addf %33, %34 : vector<16x32xf32>
    %c0_20 = arith.constant 0 : index
    %c0_21 = arith.constant 0 : index
    %c0_22 = arith.constant 0 : index
    %36 = vector.load %arg7[%c0_20, %c0_21, %c0_22] : memref<2x32x32xf32, #tpu.memory_space<vmem>>, vector<1x32x32xf32>
    %37 = vector.shape_cast %36 : vector<1x32x32xf32> to vector<32x32xf32>
    %c0_23 = arith.constant 0 : index
    %c0_24 = arith.constant 0 : index
    %c0_25 = arith.constant 0 : index
    %38 = vector.load %arg9[%c0_23, %c0_24, %c0_25] : memref<2x32x32xf32, #tpu.memory_space<vmem>>, vector<1x32x32xf32>
    %39 = vector.shape_cast %38 : vector<1x32x32xf32> to vector<32x32xf32>
    %c0_26 = arith.constant 0 : index
    %c0_27 = arith.constant 0 : index
    %c0_28 = arith.constant 0 : index
    %40 = vector.load %arg11[%c0_26, %c0_27, %c0_28] : memref<2x32x32xf32, #tpu.memory_space<vmem>>, vector<1x32x32xf32>
    %41 = vector.shape_cast %40 : vector<1x32x32xf32> to vector<32x32xf32>
    %c0_29 = arith.constant 0 : index
    %c0_30 = arith.constant 0 : index
    %c0_31 = arith.constant 0 : index
    %42 = vector.load %arg13[%c0_29, %c0_30, %c0_31] : memref<2x32x32xf32, #tpu.memory_space<vmem>>, vector<1x32x32xf32>
    %43 = vector.shape_cast %42 : vector<1x32x32xf32> to vector<32x32xf32>
    %cst_32 = arith.constant dense<0.000000e+00> : vector<16x32xf32>
    %44 = tpu.matmul %35, %37, %cst_32 {dimension_numbers = #tpu.dot_dimension_numbers<[1], [0], [0], [1], [0, 0, 1, 1], [], []>} : vector<16x32xf32>, vector<32x32xf32>, vector<16x32xf32> -> vector<16x32xf32>
    %c0_33 = arith.constant 0 : index
    %c0_34 = arith.constant 0 : index
    %c0_35 = arith.constant 0 : index
    %45 = vector.load %arg8[%c0_33, %c0_34, %c0_35] : memref<2x1x32xf32, #tpu.memory_space<vmem>>, vector<1x1x32xf32>
    %46 = vector.shape_cast %45 : vector<1x1x32xf32> to vector<1x32xf32>
    %47 = vector.broadcast %46 : vector<1x32xf32> to vector<16x32xf32>
    %48 = arith.addf %44, %47 : vector<16x32xf32>
    %cst_36 = arith.constant dense<0.000000e+00> : vector<16x32xf32>
    %49 = tpu.matmul %35, %39, %cst_36 {dimension_numbers = #tpu.dot_dimension_numbers<[1], [0], [0], [1], [0, 0, 1, 1], [], []>} : vector<16x32xf32>, vector<32x32xf32>, vector<16x32xf32> -> vector<16x32xf32>
    %c0_37 = arith.constant 0 : index
    %c0_38 = arith.constant 0 : index
    %c0_39 = arith.constant 0 : index
    %50 = vector.load %arg10[%c0_37, %c0_38, %c0_39] : memref<2x1x32xf32, #tpu.memory_space<vmem>>, vector<1x1x32xf32>
    %51 = vector.shape_cast %50 : vector<1x1x32xf32> to vector<1x32xf32>
    %52 = vector.broadcast %51 : vector<1x32xf32> to vector<16x32xf32>
    %53 = arith.addf %49, %52 : vector<16x32xf32>
    %cst_40 = arith.constant dense<0.000000e+00> : vector<16x32xf32>
    %54 = tpu.matmul %35, %41, %cst_40 {dimension_numbers = #tpu.dot_dimension_numbers<[1], [0], [0], [1], [0, 0, 1, 1], [], []>} : vector<16x32xf32>, vector<32x32xf32>, vector<16x32xf32> -> vector<16x32xf32>
    %c0_41 = arith.constant 0 : index
    %c0_42 = arith.constant 0 : index
    %c0_43 = arith.constant 0 : index
    %55 = vector.load %arg12[%c0_41, %c0_42, %c0_43] : memref<2x1x32xf32, #tpu.memory_space<vmem>>, vector<1x1x32xf32>
    %56 = vector.shape_cast %55 : vector<1x1x32xf32> to vector<1x32xf32>
    %57 = vector.broadcast %56 : vector<1x32xf32> to vector<16x32xf32>
    %58 = arith.addf %54, %57 : vector<16x32xf32>
    %59 = vector.shape_cast %48 : vector<16x32xf32> to vector<2x8x32xf32>
    %60 = vector.shape_cast %53 : vector<16x32xf32> to vector<2x8x32xf32>
    %61 = vector.shape_cast %58 : vector<16x32xf32> to vector<2x8x32xf32>
    %cst_44 = arith.constant 0.000000e+00 : f32
    %62 = vector.broadcast %cst_44 : f32 to vector<16x32xf32>
    %63 = vector.extract_strided_slice %59 {offsets = [0, 0, 0], sizes = [2, 8, 8], strides = [1, 1, 1]} : vector<2x8x32xf32> to vector<2x8x8xf32>
    %64 = vector.extract_strided_slice %60 {offsets = [0, 0, 0], sizes = [2, 8, 8], strides = [1, 1, 1]} : vector<2x8x32xf32> to vector<2x8x8xf32>
    %65 = vector.extract_strided_slice %61 {offsets = [0, 0, 0], sizes = [2, 8, 8], strides = [1, 1, 1]} : vector<2x8x32xf32> to vector<2x8x8xf32>
    "tpu.trace_start"() <{level = 10 : i32, message = "bsw,btw->bst"}> : () -> ()
    %cst_45 = arith.constant dense<0.000000e+00> : vector<2x8x8xf32>
    %66 = tpu.matmul %63, %64, %cst_45 {dimension_numbers = #tpu.dot_dimension_numbers<[2], [2], [1], [1], [0, 0, 0, 1, 1, 1], [0], [0]>} : vector<2x8x8xf32>, vector<2x8x8xf32>, vector<2x8x8xf32> -> vector<2x8x8xf32>
    "tpu.trace_stop"() : () -> ()
    %cst_46 = arith.constant dense<0xFF800000> : vector<2x8xf32>
    %67 = vector.multi_reduction <maximumf>, %66, %cst_46 [2] : vector<2x8x8xf32> to vector<2x8xf32>
    %68 = vector.shape_cast %67 : vector<2x8xf32> to vector<2x8x1xf32>
    %69 = vector.broadcast %68 : vector<2x8x1xf32> to vector<2x8x8xf32>
    %70 = arith.subf %66, %69 : vector<2x8x8xf32>
    %71 = math.exp %70 : vector<2x8x8xf32>
    %cst_47 = arith.constant dense<0.000000e+00> : vector<2x8xf32>
    %72 = vector.multi_reduction <add>, %71, %cst_47 [2] : vector<2x8x8xf32> to vector<2x8xf32>
    %73 = vector.shape_cast %72 : vector<2x8xf32> to vector<2x8x1xf32>
    %74 = tpu.reciprocal %73 : vector<2x8x1xf32> -> vector<2x8x1xf32>
    %75 = vector.broadcast %74 : vector<2x8x1xf32> to vector<2x8x8xf32>
    %76 = arith.mulf %71, %75 : vector<2x8x8xf32>
    "tpu.trace_start"() <{level = 10 : i32, message = "bst,btw->bsw"}> : () -> ()
    %cst_48 = arith.constant dense<0.000000e+00> : vector<2x8x8xf32>
    %77 = tpu.matmul %76, %65, %cst_48 {dimension_numbers = #tpu.dot_dimension_numbers<[2], [1], [1], [2], [0, 0, 0, 1, 1, 2], [0], [0]>} : vector<2x8x8xf32>, vector<2x8x8xf32>, vector<2x8x8xf32> -> vector<2x8x8xf32>
    "tpu.trace_stop"() : () -> ()
    %78 = vector.shape_cast %77 : vector<2x8x8xf32> to vector<16x8xf32>
    %79 = vector.extract_strided_slice %43 {offsets = [0, 0], sizes = [8, 32], strides = [1, 1]} : vector<32x32xf32> to vector<8x32xf32>
    %cst_49 = arith.constant dense<0.000000e+00> : vector<16x32xf32>
    %80 = tpu.matmul %78, %79, %cst_49 {dimension_numbers = #tpu.dot_dimension_numbers<[1], [0], [0], [1], [0, 0, 1, 1], [], []>} : vector<16x8xf32>, vector<8x32xf32>, vector<16x32xf32> -> vector<16x32xf32>
    %81 = arith.addf %62, %80 : vector<16x32xf32>
    %82 = vector.extract_strided_slice %59 {offsets = [0, 0, 8], sizes = [2, 8, 8], strides = [1, 1, 1]} : vector<2x8x32xf32> to vector<2x8x8xf32>
    %83 = vector.extract_strided_slice %60 {offsets = [0, 0, 8], sizes = [2, 8, 8], strides = [1, 1, 1]} : vector<2x8x32xf32> to vector<2x8x8xf32>
    %84 = vector.extract_strided_slice %61 {offsets = [0, 0, 8], sizes = [2, 8, 8], strides = [1, 1, 1]} : vector<2x8x32xf32> to vector<2x8x8xf32>
    "tpu.trace_start"() <{level = 10 : i32, message = "bsw,btw->bst"}> : () -> ()
    %cst_50 = arith.constant dense<0.000000e+00> : vector<2x8x8xf32>
    %85 = tpu.matmul %82, %83, %cst_50 {dimension_numbers = #tpu.dot_dimension_numbers<[2], [2], [1], [1], [0, 0, 0, 1, 1, 1], [0], [0]>} : vector<2x8x8xf32>, vector<2x8x8xf32>, vector<2x8x8xf32> -> vector<2x8x8xf32>
    "tpu.trace_stop"() : () -> ()
    %cst_51 = arith.constant dense<0xFF800000> : vector<2x8xf32>
    %86 = vector.multi_reduction <maximumf>, %85, %cst_51 [2] : vector<2x8x8xf32> to vector<2x8xf32>
    %87 = vector.shape_cast %86 : vector<2x8xf32> to vector<2x8x1xf32>
    %88 = vector.broadcast %87 : vector<2x8x1xf32> to vector<2x8x8xf32>
    %89 = arith.subf %85, %88 : vector<2x8x8xf32>
    %90 = math.exp %89 : vector<2x8x8xf32>
    %cst_52 = arith.constant dense<0.000000e+00> : vector<2x8xf32>
    %91 = vector.multi_reduction <add>, %90, %cst_52 [2] : vector<2x8x8xf32> to vector<2x8xf32>
    %92 = vector.shape_cast %91 : vector<2x8xf32> to vector<2x8x1xf32>
    %93 = tpu.reciprocal %92 : vector<2x8x1xf32> -> vector<2x8x1xf32>
    %94 = vector.broadcast %93 : vector<2x8x1xf32> to vector<2x8x8xf32>
    %95 = arith.mulf %90, %94 : vector<2x8x8xf32>
    "tpu.trace_start"() <{level = 10 : i32, message = "bst,btw->bsw"}> : () -> ()
    %cst_53 = arith.constant dense<0.000000e+00> : vector<2x8x8xf32>
    %96 = tpu.matmul %95, %84, %cst_53 {dimension_numbers = #tpu.dot_dimension_numbers<[2], [1], [1], [2], [0, 0, 0, 1, 1, 2], [0], [0]>} : vector<2x8x8xf32>, vector<2x8x8xf32>, vector<2x8x8xf32> -> vector<2x8x8xf32>
    "tpu.trace_stop"() : () -> ()
    %97 = vector.shape_cast %96 : vector<2x8x8xf32> to vector<16x8xf32>
    %98 = vector.extract_strided_slice %43 {offsets = [8, 0], sizes = [8, 32], strides = [1, 1]} : vector<32x32xf32> to vector<8x32xf32>
    %cst_54 = arith.constant dense<0.000000e+00> : vector<16x32xf32>
    %99 = tpu.matmul %97, %98, %cst_54 {dimension_numbers = #tpu.dot_dimension_numbers<[1], [0], [0], [1], [0, 0, 1, 1], [], []>} : vector<16x8xf32>, vector<8x32xf32>, vector<16x32xf32> -> vector<16x32xf32>
    %100 = arith.addf %81, %99 : vector<16x32xf32>
    %101 = vector.extract_strided_slice %59 {offsets = [0, 0, 16], sizes = [2, 8, 8], strides = [1, 1, 1]} : vector<2x8x32xf32> to vector<2x8x8xf32>
    %102 = vector.extract_strided_slice %60 {offsets = [0, 0, 16], sizes = [2, 8, 8], strides = [1, 1, 1]} : vector<2x8x32xf32> to vector<2x8x8xf32>
    %103 = vector.extract_strided_slice %61 {offsets = [0, 0, 16], sizes = [2, 8, 8], strides = [1, 1, 1]} : vector<2x8x32xf32> to vector<2x8x8xf32>
    "tpu.trace_start"() <{level = 10 : i32, message = "bsw,btw->bst"}> : () -> ()
    %cst_55 = arith.constant dense<0.000000e+00> : vector<2x8x8xf32>
    %104 = tpu.matmul %101, %102, %cst_55 {dimension_numbers = #tpu.dot_dimension_numbers<[2], [2], [1], [1], [0, 0, 0, 1, 1, 1], [0], [0]>} : vector<2x8x8xf32>, vector<2x8x8xf32>, vector<2x8x8xf32> -> vector<2x8x8xf32>
    "tpu.trace_stop"() : () -> ()
    %cst_56 = arith.constant dense<0xFF800000> : vector<2x8xf32>
    %105 = vector.multi_reduction <maximumf>, %104, %cst_56 [2] : vector<2x8x8xf32> to vector<2x8xf32>
    %106 = vector.shape_cast %105 : vector<2x8xf32> to vector<2x8x1xf32>
    %107 = vector.broadcast %106 : vector<2x8x1xf32> to vector<2x8x8xf32>
    %108 = arith.subf %104, %107 : vector<2x8x8xf32>
    %109 = math.exp %108 : vector<2x8x8xf32>
    %cst_57 = arith.constant dense<0.000000e+00> : vector<2x8xf32>
    %110 = vector.multi_reduction <add>, %109, %cst_57 [2] : vector<2x8x8xf32> to vector<2x8xf32>
    %111 = vector.shape_cast %110 : vector<2x8xf32> to vector<2x8x1xf32>
    %112 = tpu.reciprocal %111 : vector<2x8x1xf32> -> vector<2x8x1xf32>
    %113 = vector.broadcast %112 : vector<2x8x1xf32> to vector<2x8x8xf32>
    %114 = arith.mulf %109, %113 : vector<2x8x8xf32>
    "tpu.trace_start"() <{level = 10 : i32, message = "bst,btw->bsw"}> : () -> ()
    %cst_58 = arith.constant dense<0.000000e+00> : vector<2x8x8xf32>
    %115 = tpu.matmul %114, %103, %cst_58 {dimension_numbers = #tpu.dot_dimension_numbers<[2], [1], [1], [2], [0, 0, 0, 1, 1, 2], [0], [0]>} : vector<2x8x8xf32>, vector<2x8x8xf32>, vector<2x8x8xf32> -> vector<2x8x8xf32>
    "tpu.trace_stop"() : () -> ()
    %116 = vector.shape_cast %115 : vector<2x8x8xf32> to vector<16x8xf32>
    %117 = vector.extract_strided_slice %43 {offsets = [16, 0], sizes = [8, 32], strides = [1, 1]} : vector<32x32xf32> to vector<8x32xf32>
    %cst_59 = arith.constant dense<0.000000e+00> : vector<16x32xf32>
    %118 = tpu.matmul %116, %117, %cst_59 {dimension_numbers = #tpu.dot_dimension_numbers<[1], [0], [0], [1], [0, 0, 1, 1], [], []>} : vector<16x8xf32>, vector<8x32xf32>, vector<16x32xf32> -> vector<16x32xf32>
    %119 = arith.addf %100, %118 : vector<16x32xf32>
    %120 = vector.extract_strided_slice %59 {offsets = [0, 0, 24], sizes = [2, 8, 8], strides = [1, 1, 1]} : vector<2x8x32xf32> to vector<2x8x8xf32>
    %121 = vector.extract_strided_slice %60 {offsets = [0, 0, 24], sizes = [2, 8, 8], strides = [1, 1, 1]} : vector<2x8x32xf32> to vector<2x8x8xf32>
    %122 = vector.extract_strided_slice %61 {offsets = [0, 0, 24], sizes = [2, 8, 8], strides = [1, 1, 1]} : vector<2x8x32xf32> to vector<2x8x8xf32>
    "tpu.trace_start"() <{level = 10 : i32, message = "bsw,btw->bst"}> : () -> ()
    %cst_60 = arith.constant dense<0.000000e+00> : vector<2x8x8xf32>
    %123 = tpu.matmul %120, %121, %cst_60 {dimension_numbers = #tpu.dot_dimension_numbers<[2], [2], [1], [1], [0, 0, 0, 1, 1, 1], [0], [0]>} : vector<2x8x8xf32>, vector<2x8x8xf32>, vector<2x8x8xf32> -> vector<2x8x8xf32>
    "tpu.trace_stop"() : () -> ()
    %cst_61 = arith.constant dense<0xFF800000> : vector<2x8xf32>
    %124 = vector.multi_reduction <maximumf>, %123, %cst_61 [2] : vector<2x8x8xf32> to vector<2x8xf32>
    %125 = vector.shape_cast %124 : vector<2x8xf32> to vector<2x8x1xf32>
    %126 = vector.broadcast %125 : vector<2x8x1xf32> to vector<2x8x8xf32>
    %127 = arith.subf %123, %126 : vector<2x8x8xf32>
    %128 = math.exp %127 : vector<2x8x8xf32>
    %cst_62 = arith.constant dense<0.000000e+00> : vector<2x8xf32>
    %129 = vector.multi_reduction <add>, %128, %cst_62 [2] : vector<2x8x8xf32> to vector<2x8xf32>
    %130 = vector.shape_cast %129 : vector<2x8xf32> to vector<2x8x1xf32>
    %131 = tpu.reciprocal %130 : vector<2x8x1xf32> -> vector<2x8x1xf32>
    %132 = vector.broadcast %131 : vector<2x8x1xf32> to vector<2x8x8xf32>
    %133 = arith.mulf %128, %132 : vector<2x8x8xf32>
    "tpu.trace_start"() <{level = 10 : i32, message = "bst,btw->bsw"}> : () -> ()
    %cst_63 = arith.constant dense<0.000000e+00> : vector<2x8x8xf32>
    %134 = tpu.matmul %133, %122, %cst_63 {dimension_numbers = #tpu.dot_dimension_numbers<[2], [1], [1], [2], [0, 0, 0, 1, 1, 2], [0], [0]>} : vector<2x8x8xf32>, vector<2x8x8xf32>, vector<2x8x8xf32> -> vector<2x8x8xf32>
    "tpu.trace_stop"() : () -> ()
    %135 = vector.shape_cast %134 : vector<2x8x8xf32> to vector<16x8xf32>
    %136 = vector.extract_strided_slice %43 {offsets = [24, 0], sizes = [8, 32], strides = [1, 1]} : vector<32x32xf32> to vector<8x32xf32>
    %cst_64 = arith.constant dense<0.000000e+00> : vector<16x32xf32>
    %137 = tpu.matmul %135, %136, %cst_64 {dimension_numbers = #tpu.dot_dimension_numbers<[1], [0], [0], [1], [0, 0, 1, 1], [], []>} : vector<16x8xf32>, vector<8x32xf32>, vector<16x32xf32> -> vector<16x32xf32>
    %138 = arith.addf %119, %137 : vector<16x32xf32>
    %c0_65 = arith.constant 0 : index
    %c0_66 = arith.constant 0 : index
    %c0_67 = arith.constant 0 : index
    %139 = vector.load %arg14[%c0_65, %c0_66, %c0_67] : memref<2x1x32xf32, #tpu.memory_space<vmem>>, vector<1x1x32xf32>
    %140 = vector.shape_cast %139 : vector<1x1x32xf32> to vector<1x32xf32>
    %141 = vector.broadcast %140 : vector<1x32xf32> to vector<16x32xf32>
    %142 = arith.addf %138, %141 : vector<16x32xf32>
    %143 = arith.addf %35, %142 : vector<16x32xf32>
    %c0_68 = arith.constant 0 : index
    %c0_69 = arith.constant 0 : index
    %c0_70 = arith.constant 0 : index
    %144 = vector.load %arg15[%c0_68, %c0_69, %c0_70] : memref<2x1x32xf32, #tpu.memory_space<vmem>>, vector<1x1x32xf32>
    %145 = vector.shape_cast %144 : vector<1x1x32xf32> to vector<1x32xf32>
    %c0_71 = arith.constant 0 : index
    %c0_72 = arith.constant 0 : index
    %c0_73 = arith.constant 0 : index
    %146 = vector.load %arg16[%c0_71, %c0_72, %c0_73] : memref<2x1x32xf32, #tpu.memory_space<vmem>>, vector<1x1x32xf32>
    %147 = vector.shape_cast %146 : vector<1x1x32xf32> to vector<1x32xf32>
    %cst_74 = arith.constant dense<0.000000e+00> : vector<16xf32>
    %148 = vector.multi_reduction <add>, %143, %cst_74 [1] : vector<16x32xf32> to vector<16xf32>
    %149 = vector.shape_cast %148 : vector<16xf32> to vector<16x1xf32>
    %cst_75 = arith.constant 3.200000e+01 : f32
    %150 = vector.broadcast %cst_75 : f32 to vector<16x1xf32>
    %151 = arith.divf %149, %150 : vector<16x1xf32>
    %152 = vector.broadcast %151 : vector<16x1xf32> to vector<16x32xf32>
    %153 = arith.subf %143, %152 : vector<16x32xf32>
    %154 = arith.mulf %153, %153 : vector<16x32xf32>
    %cst_76 = arith.constant dense<0.000000e+00> : vector<16xf32>
    %155 = vector.multi_reduction <add>, %154, %cst_76 [1] : vector<16x32xf32> to vector<16xf32>
    %156 = vector.shape_cast %155 : vector<16xf32> to vector<16x1xf32>
    %cst_77 = arith.constant 3.200000e+01 : f32
    %157 = vector.broadcast %cst_77 : f32 to vector<16x1xf32>
    %158 = arith.divf %156, %157 : vector<16x1xf32>
    %cst_78 = arith.constant 9.99999996E-13 : f32
    %159 = vector.broadcast %cst_78 : f32 to vector<16x1xf32>
    %160 = arith.addf %158, %159 : vector<16x1xf32>
    %161 = math.rsqrt %160 : vector<16x1xf32>
    %162 = vector.broadcast %161 : vector<16x1xf32> to vector<16x32xf32>
    %163 = arith.mulf %153, %162 : vector<16x32xf32>
    %164 = vector.broadcast %145 : vector<1x32xf32> to vector<16x32xf32>
    %165 = arith.mulf %163, %164 : vector<16x32xf32>
    %166 = vector.broadcast %147 : vector<1x32xf32> to vector<16x32xf32>
    %167 = arith.addf %165, %166 : vector<16x32xf32>
    %c0_79 = arith.constant 0 : index
    %c0_80 = arith.constant 0 : index
    %c0_81 = arith.constant 0 : index
    %168 = vector.load %arg17[%c0_79, %c0_80, %c0_81] : memref<2x32x64xf32, #tpu.memory_space<vmem>>, vector<1x32x64xf32>
    %169 = vector.shape_cast %168 : vector<1x32x64xf32> to vector<32x64xf32>
    %cst_82 = arith.constant dense<0.000000e+00> : vector<16x64xf32>
    %170 = tpu.matmul %167, %169, %cst_82 {dimension_numbers = #tpu.dot_dimension_numbers<[1], [0], [0], [1], [0, 0, 1, 1], [], []>} : vector<16x32xf32>, vector<32x64xf32>, vector<16x64xf32> -> vector<16x64xf32>
    %c0_83 = arith.constant 0 : index
    %c0_84 = arith.constant 0 : index
    %c0_85 = arith.constant 0 : index
    %171 = vector.load %arg18[%c0_83, %c0_84, %c0_85] : memref<2x1x64xf32, #tpu.memory_space<vmem>>, vector<1x1x64xf32>
    %172 = vector.shape_cast %171 : vector<1x1x64xf32> to vector<1x64xf32>
    %173 = vector.broadcast %172 : vector<1x64xf32> to vector<16x64xf32>
    %174 = arith.addf %170, %173 : vector<16x64xf32>
    %cst_86 = arith.constant 5.000000e-01 : f32
    %175 = vector.broadcast %cst_86 : f32 to vector<16x64xf32>
    %176 = arith.mulf %174, %175 : vector<16x64xf32>
    %cst_87 = arith.constant 0.707106769 : f32
    %177 = vector.broadcast %cst_87 : f32 to vector<16x64xf32>
    %178 = arith.mulf %174, %177 : vector<16x64xf32>
    %179 = math.absf %178 : vector<16x64xf32>
    %cst_88 = arith.constant 0.327591091 : f32
    %180 = vector.broadcast %cst_88 : f32 to vector<16x64xf32>
    %181 = arith.mulf %180, %179 : vector<16x64xf32>
    %cst_89 = arith.constant 1.000000e+00 : f32
    %182 = vector.broadcast %cst_89 : f32 to vector<16x64xf32>
    %183 = arith.addf %182, %181 : vector<16x64xf32>
    %cst_90 = arith.constant 1.000000e+00 : f32
    %184 = vector.broadcast %cst_90 : f32 to vector<16x64xf32>
    %185 = arith.divf %184, %183 : vector<16x64xf32>
    %cst_91 = arith.constant 1.06140542 : f32
    %186 = vector.broadcast %cst_91 : f32 to vector<16x64xf32>
    %187 = arith.mulf %186, %185 : vector<16x64xf32>
    %cst_92 = arith.constant 1.45315206 : f32
    %188 = vector.broadcast %cst_92 : f32 to vector<16x64xf32>
    %189 = arith.subf %187, %188 : vector<16x64xf32>
    %190 = arith.mulf %189, %185 : vector<16x64xf32>
    %cst_93 = arith.constant 1.42141378 : f32
    %191 = vector.broadcast %cst_93 : f32 to vector<16x64xf32>
    %192 = arith.addf %190, %191 : vector<16x64xf32>
    %193 = arith.mulf %192, %185 : vector<16x64xf32>
    %cst_94 = arith.constant 0.284496725 : f32
    %194 = vector.broadcast %cst_94 : f32 to vector<16x64xf32>
    %195 = arith.subf %193, %194 : vector<16x64xf32>
    %196 = arith.mulf %195, %185 : vector<16x64xf32>
    %cst_95 = arith.constant 0.254829586 : f32
    %197 = vector.broadcast %cst_95 : f32 to vector<16x64xf32>
    %198 = arith.addf %196, %197 : vector<16x64xf32>
    %199 = arith.mulf %198, %185 : vector<16x64xf32>
    %cst_96 = arith.constant 0.000000e+00 : f32
    %200 = vector.broadcast %cst_96 : f32 to vector<16x64xf32>
    %201 = arith.subf %200, %179 : vector<16x64xf32>
    %202 = arith.mulf %201, %179 : vector<16x64xf32>
    %203 = math.exp %202 : vector<16x64xf32>
    %204 = arith.mulf %199, %203 : vector<16x64xf32>
    %cst_97 = arith.constant 1.000000e+00 : f32
    %205 = vector.broadcast %cst_97 : f32 to vector<16x64xf32>
    %206 = arith.subf %205, %204 : vector<16x64xf32>
    %cst_98 = arith.constant 0.000000e+00 : f32
    %207 = vector.broadcast %cst_98 : f32 to vector<16x64xf32>
    %208 = arith.cmpf oge, %178, %207 : vector<16x64xf32>
    %cst_99 = arith.constant 0.000000e+00 : f32
    %209 = vector.broadcast %cst_99 : f32 to vector<16x64xf32>
    %210 = arith.subf %209, %206 : vector<16x64xf32>
    %211 = arith.select %208, %206, %210 : vector<16x64xi1>, vector<16x64xf32>
    %cst_100 = arith.constant 1.000000e+00 : f32
    %212 = vector.broadcast %cst_100 : f32 to vector<16x64xf32>
    %213 = arith.addf %212, %211 : vector<16x64xf32>
    %214 = arith.mulf %176, %213 : vector<16x64xf32>
    %c0_101 = arith.constant 0 : index
    %c0_102 = arith.constant 0 : index
    %c0_103 = arith.constant 0 : index
    %215 = vector.load %arg19[%c0_101, %c0_102, %c0_103] : memref<2x64x32xf32, #tpu.memory_space<vmem>>, vector<1x64x32xf32>
    %216 = vector.shape_cast %215 : vector<1x64x32xf32> to vector<64x32xf32>
    %cst_104 = arith.constant dense<0.000000e+00> : vector<16x32xf32>
    %217 = tpu.matmul %214, %216, %cst_104 {dimension_numbers = #tpu.dot_dimension_numbers<[1], [0], [0], [1], [0, 0, 1, 1], [], []>} : vector<16x64xf32>, vector<64x32xf32>, vector<16x32xf32> -> vector<16x32xf32>
    %c0_105 = arith.constant 0 : index
    %c0_106 = arith.constant 0 : index
    %c0_107 = arith.constant 0 : index
    %218 = vector.load %arg20[%c0_105, %c0_106, %c0_107] : memref<2x1x32xf32, #tpu.memory_space<vmem>>, vector<1x1x32xf32>
    %219 = vector.shape_cast %218 : vector<1x1x32xf32> to vector<1x32xf32>
    %220 = vector.broadcast %219 : vector<1x32xf32> to vector<16x32xf32>
    %221 = arith.addf %217, %220 : vector<16x32xf32>
    %222 = arith.addf %167, %221 : vector<16x32xf32>
    %c0_108 = arith.constant 0 : index
    %c0_109 = arith.constant 0 : index
    %c0_110 = arith.constant 0 : index
    %223 = vector.load %arg21[%c0_108, %c0_109, %c0_110] : memref<2x1x32xf32, #tpu.memory_space<vmem>>, vector<1x1x32xf32>
    %224 = vector.shape_cast %223 : vector<1x1x32xf32> to vector<1x32xf32>
    %c0_111 = arith.constant 0 : index
    %c0_112 = arith.constant 0 : index
    %c0_113 = arith.constant 0 : index
    %225 = vector.load %arg22[%c0_111, %c0_112, %c0_113] : memref<2x1x32xf32, #tpu.memory_space<vmem>>, vector<1x1x32xf32>
    %226 = vector.shape_cast %225 : vector<1x1x32xf32> to vector<1x32xf32>
    %cst_114 = arith.constant dense<0.000000e+00> : vector<16xf32>
    %227 = vector.multi_reduction <add>, %222, %cst_114 [1] : vector<16x32xf32> to vector<16xf32>
    %228 = vector.shape_cast %227 : vector<16xf32> to vector<16x1xf32>
    %cst_115 = arith.constant 3.200000e+01 : f32
    %229 = vector.broadcast %cst_115 : f32 to vector<16x1xf32>
    %230 = arith.divf %228, %229 : vector<16x1xf32>
    %231 = vector.broadcast %230 : vector<16x1xf32> to vector<16x32xf32>
    %232 = arith.subf %222, %231 : vector<16x32xf32>
    %233 = arith.mulf %232, %232 : vector<16x32xf32>
    %cst_116 = arith.constant dense<0.000000e+00> : vector<16xf32>
    %234 = vector.multi_reduction <add>, %233, %cst_116 [1] : vector<16x32xf32> to vector<16xf32>
    %235 = vector.shape_cast %234 : vector<16xf32> to vector<16x1xf32>
    %cst_117 = arith.constant 3.200000e+01 : f32
    %236 = vector.broadcast %cst_117 : f32 to vector<16x1xf32>
    %237 = arith.divf %235, %236 : vector<16x1xf32>
    %cst_118 = arith.constant 9.99999996E-13 : f32
    %238 = vector.broadcast %cst_118 : f32 to vector<16x1xf32>
    %239 = arith.addf %237, %238 : vector<16x1xf32>
    %240 = math.rsqrt %239 : vector<16x1xf32>
    %241 = vector.broadcast %240 : vector<16x1xf32> to vector<16x32xf32>
    %242 = arith.mulf %232, %241 : vector<16x32xf32>
    %243 = vector.broadcast %224 : vector<1x32xf32> to vector<16x32xf32>
    %244 = arith.mulf %242, %243 : vector<16x32xf32>
    %245 = vector.broadcast %226 : vector<1x32xf32> to vector<16x32xf32>
    %246 = arith.addf %244, %245 : vector<16x32xf32>
    %c1 = arith.constant 1 : index
    %c0_119 = arith.constant 0 : index
    %c0_120 = arith.constant 0 : index
    %247 = vector.load %arg7[%c1, %c0_119, %c0_120] : memref<2x32x32xf32, #tpu.memory_space<vmem>>, vector<1x32x32xf32>
    %248 = vector.shape_cast %247 : vector<1x32x32xf32> to vector<32x32xf32>
    %c1_121 = arith.constant 1 : index
    %c0_122 = arith.constant 0 : index
    %c0_123 = arith.constant 0 : index
    %249 = vector.load %arg9[%c1_121, %c0_122, %c0_123] : memref<2x32x32xf32, #tpu.memory_space<vmem>>, vector<1x32x32xf32>
    %250 = vector.shape_cast %249 : vector<1x32x32xf32> to vector<32x32xf32>
    %c1_124 = arith.constant 1 : index
    %c0_125 = arith.constant 0 : index
    %c0_126 = arith.constant 0 : index
    %251 = vector.load %arg11[%c1_124, %c0_125, %c0_126] : memref<2x32x32xf32, #tpu.memory_space<vmem>>, vector<1x32x32xf32>
    %252 = vector.shape_cast %251 : vector<1x32x32xf32> to vector<32x32xf32>
    %c1_127 = arith.constant 1 : index
    %c0_128 = arith.constant 0 : index
    %c0_129 = arith.constant 0 : index
    %253 = vector.load %arg13[%c1_127, %c0_128, %c0_129] : memref<2x32x32xf32, #tpu.memory_space<vmem>>, vector<1x32x32xf32>
    %254 = vector.shape_cast %253 : vector<1x32x32xf32> to vector<32x32xf32>
    %cst_130 = arith.constant dense<0.000000e+00> : vector<16x32xf32>
    %255 = tpu.matmul %246, %248, %cst_130 {dimension_numbers = #tpu.dot_dimension_numbers<[1], [0], [0], [1], [0, 0, 1, 1], [], []>} : vector<16x32xf32>, vector<32x32xf32>, vector<16x32xf32> -> vector<16x32xf32>
    %c1_131 = arith.constant 1 : index
    %c0_132 = arith.constant 0 : index
    %c0_133 = arith.constant 0 : index
    %256 = vector.load %arg8[%c1_131, %c0_132, %c0_133] : memref<2x1x32xf32, #tpu.memory_space<vmem>>, vector<1x1x32xf32>
    %257 = vector.shape_cast %256 : vector<1x1x32xf32> to vector<1x32xf32>
    %258 = vector.broadcast %257 : vector<1x32xf32> to vector<16x32xf32>
    %259 = arith.addf %255, %258 : vector<16x32xf32>
    %cst_134 = arith.constant dense<0.000000e+00> : vector<16x32xf32>
    %260 = tpu.matmul %246, %250, %cst_134 {dimension_numbers = #tpu.dot_dimension_numbers<[1], [0], [0], [1], [0, 0, 1, 1], [], []>} : vector<16x32xf32>, vector<32x32xf32>, vector<16x32xf32> -> vector<16x32xf32>
    %c1_135 = arith.constant 1 : index
    %c0_136 = arith.constant 0 : index
    %c0_137 = arith.constant 0 : index
    %261 = vector.load %arg10[%c1_135, %c0_136, %c0_137] : memref<2x1x32xf32, #tpu.memory_space<vmem>>, vector<1x1x32xf32>
    %262 = vector.shape_cast %261 : vector<1x1x32xf32> to vector<1x32xf32>
    %263 = vector.broadcast %262 : vector<1x32xf32> to vector<16x32xf32>
    %264 = arith.addf %260, %263 : vector<16x32xf32>
    %cst_138 = arith.constant dense<0.000000e+00> : vector<16x32xf32>
    %265 = tpu.matmul %246, %252, %cst_138 {dimension_numbers = #tpu.dot_dimension_numbers<[1], [0], [0], [1], [0, 0, 1, 1], [], []>} : vector<16x32xf32>, vector<32x32xf32>, vector<16x32xf32> -> vector<16x32xf32>
    %c1_139 = arith.constant 1 : index
    %c0_140 = arith.constant 0 : index
    %c0_141 = arith.constant 0 : index
    %266 = vector.load %arg12[%c1_139, %c0_140, %c0_141] : memref<2x1x32xf32, #tpu.memory_space<vmem>>, vector<1x1x32xf32>
    %267 = vector.shape_cast %266 : vector<1x1x32xf32> to vector<1x32xf32>
    %268 = vector.broadcast %267 : vector<1x32xf32> to vector<16x32xf32>
    %269 = arith.addf %265, %268 : vector<16x32xf32>
    %270 = vector.shape_cast %259 : vector<16x32xf32> to vector<2x8x32xf32>
    %271 = vector.shape_cast %264 : vector<16x32xf32> to vector<2x8x32xf32>
    %272 = vector.shape_cast %269 : vector<16x32xf32> to vector<2x8x32xf32>
    %cst_142 = arith.constant 0.000000e+00 : f32
    %273 = vector.broadcast %cst_142 : f32 to vector<16x32xf32>
    %274 = vector.extract_strided_slice %270 {offsets = [0, 0, 0], sizes = [2, 8, 8], strides = [1, 1, 1]} : vector<2x8x32xf32> to vector<2x8x8xf32>
    %275 = vector.extract_strided_slice %271 {offsets = [0, 0, 0], sizes = [2, 8, 8], strides = [1, 1, 1]} : vector<2x8x32xf32> to vector<2x8x8xf32>
    %276 = vector.extract_strided_slice %272 {offsets = [0, 0, 0], sizes = [2, 8, 8], strides = [1, 1, 1]} : vector<2x8x32xf32> to vector<2x8x8xf32>
    "tpu.trace_start"() <{level = 10 : i32, message = "bsw,btw->bst"}> : () -> ()
    %cst_143 = arith.constant dense<0.000000e+00> : vector<2x8x8xf32>
    %277 = tpu.matmul %274, %275, %cst_143 {dimension_numbers = #tpu.dot_dimension_numbers<[2], [2], [1], [1], [0, 0, 0, 1, 1, 1], [0], [0]>} : vector<2x8x8xf32>, vector<2x8x8xf32>, vector<2x8x8xf32> -> vector<2x8x8xf32>
    "tpu.trace_stop"() : () -> ()
    %cst_144 = arith.constant dense<0xFF800000> : vector<2x8xf32>
    %278 = vector.multi_reduction <maximumf>, %277, %cst_144 [2] : vector<2x8x8xf32> to vector<2x8xf32>
    %279 = vector.shape_cast %278 : vector<2x8xf32> to vector<2x8x1xf32>
    %280 = vector.broadcast %279 : vector<2x8x1xf32> to vector<2x8x8xf32>
    %281 = arith.subf %277, %280 : vector<2x8x8xf32>
    %282 = math.exp %281 : vector<2x8x8xf32>
    %cst_145 = arith.constant dense<0.000000e+00> : vector<2x8xf32>
    %283 = vector.multi_reduction <add>, %282, %cst_145 [2] : vector<2x8x8xf32> to vector<2x8xf32>
    %284 = vector.shape_cast %283 : vector<2x8xf32> to vector<2x8x1xf32>
    %285 = tpu.reciprocal %284 : vector<2x8x1xf32> -> vector<2x8x1xf32>
    %286 = vector.broadcast %285 : vector<2x8x1xf32> to vector<2x8x8xf32>
    %287 = arith.mulf %282, %286 : vector<2x8x8xf32>
    "tpu.trace_start"() <{level = 10 : i32, message = "bst,btw->bsw"}> : () -> ()
    %cst_146 = arith.constant dense<0.000000e+00> : vector<2x8x8xf32>
    %288 = tpu.matmul %287, %276, %cst_146 {dimension_numbers = #tpu.dot_dimension_numbers<[2], [1], [1], [2], [0, 0, 0, 1, 1, 2], [0], [0]>} : vector<2x8x8xf32>, vector<2x8x8xf32>, vector<2x8x8xf32> -> vector<2x8x8xf32>
    "tpu.trace_stop"() : () -> ()
    %289 = vector.shape_cast %288 : vector<2x8x8xf32> to vector<16x8xf32>
    %290 = vector.extract_strided_slice %254 {offsets = [0, 0], sizes = [8, 32], strides = [1, 1]} : vector<32x32xf32> to vector<8x32xf32>
    %cst_147 = arith.constant dense<0.000000e+00> : vector<16x32xf32>
    %291 = tpu.matmul %289, %290, %cst_147 {dimension_numbers = #tpu.dot_dimension_numbers<[1], [0], [0], [1], [0, 0, 1, 1], [], []>} : vector<16x8xf32>, vector<8x32xf32>, vector<16x32xf32> -> vector<16x32xf32>
    %292 = arith.addf %273, %291 : vector<16x32xf32>
    %293 = vector.extract_strided_slice %270 {offsets = [0, 0, 8], sizes = [2, 8, 8], strides = [1, 1, 1]} : vector<2x8x32xf32> to vector<2x8x8xf32>
    %294 = vector.extract_strided_slice %271 {offsets = [0, 0, 8], sizes = [2, 8, 8], strides = [1, 1, 1]} : vector<2x8x32xf32> to vector<2x8x8xf32>
    %295 = vector.extract_strided_slice %272 {offsets = [0, 0, 8], sizes = [2, 8, 8], strides = [1, 1, 1]} : vector<2x8x32xf32> to vector<2x8x8xf32>
    "tpu.trace_start"() <{level = 10 : i32, message = "bsw,btw->bst"}> : () -> ()
    %cst_148 = arith.constant dense<0.000000e+00> : vector<2x8x8xf32>
    %296 = tpu.matmul %293, %294, %cst_148 {dimension_numbers = #tpu.dot_dimension_numbers<[2], [2], [1], [1], [0, 0, 0, 1, 1, 1], [0], [0]>} : vector<2x8x8xf32>, vector<2x8x8xf32>, vector<2x8x8xf32> -> vector<2x8x8xf32>
    "tpu.trace_stop"() : () -> ()
    %cst_149 = arith.constant dense<0xFF800000> : vector<2x8xf32>
    %297 = vector.multi_reduction <maximumf>, %296, %cst_149 [2] : vector<2x8x8xf32> to vector<2x8xf32>
    %298 = vector.shape_cast %297 : vector<2x8xf32> to vector<2x8x1xf32>
    %299 = vector.broadcast %298 : vector<2x8x1xf32> to vector<2x8x8xf32>
    %300 = arith.subf %296, %299 : vector<2x8x8xf32>
    %301 = math.exp %300 : vector<2x8x8xf32>
    %cst_150 = arith.constant dense<0.000000e+00> : vector<2x8xf32>
    %302 = vector.multi_reduction <add>, %301, %cst_150 [2] : vector<2x8x8xf32> to vector<2x8xf32>
    %303 = vector.shape_cast %302 : vector<2x8xf32> to vector<2x8x1xf32>
    %304 = tpu.reciprocal %303 : vector<2x8x1xf32> -> vector<2x8x1xf32>
    %305 = vector.broadcast %304 : vector<2x8x1xf32> to vector<2x8x8xf32>
    %306 = arith.mulf %301, %305 : vector<2x8x8xf32>
    "tpu.trace_start"() <{level = 10 : i32, message = "bst,btw->bsw"}> : () -> ()
    %cst_151 = arith.constant dense<0.000000e+00> : vector<2x8x8xf32>
    %307 = tpu.matmul %306, %295, %cst_151 {dimension_numbers = #tpu.dot_dimension_numbers<[2], [1], [1], [2], [0, 0, 0, 1, 1, 2], [0], [0]>} : vector<2x8x8xf32>, vector<2x8x8xf32>, vector<2x8x8xf32> -> vector<2x8x8xf32>
    "tpu.trace_stop"() : () -> ()
    %308 = vector.shape_cast %307 : vector<2x8x8xf32> to vector<16x8xf32>
    %309 = vector.extract_strided_slice %254 {offsets = [8, 0], sizes = [8, 32], strides = [1, 1]} : vector<32x32xf32> to vector<8x32xf32>
    %cst_152 = arith.constant dense<0.000000e+00> : vector<16x32xf32>
    %310 = tpu.matmul %308, %309, %cst_152 {dimension_numbers = #tpu.dot_dimension_numbers<[1], [0], [0], [1], [0, 0, 1, 1], [], []>} : vector<16x8xf32>, vector<8x32xf32>, vector<16x32xf32> -> vector<16x32xf32>
    %311 = arith.addf %292, %310 : vector<16x32xf32>
    %312 = vector.extract_strided_slice %270 {offsets = [0, 0, 16], sizes = [2, 8, 8], strides = [1, 1, 1]} : vector<2x8x32xf32> to vector<2x8x8xf32>
    %313 = vector.extract_strided_slice %271 {offsets = [0, 0, 16], sizes = [2, 8, 8], strides = [1, 1, 1]} : vector<2x8x32xf32> to vector<2x8x8xf32>
    %314 = vector.extract_strided_slice %272 {offsets = [0, 0, 16], sizes = [2, 8, 8], strides = [1, 1, 1]} : vector<2x8x32xf32> to vector<2x8x8xf32>
    "tpu.trace_start"() <{level = 10 : i32, message = "bsw,btw->bst"}> : () -> ()
    %cst_153 = arith.constant dense<0.000000e+00> : vector<2x8x8xf32>
    %315 = tpu.matmul %312, %313, %cst_153 {dimension_numbers = #tpu.dot_dimension_numbers<[2], [2], [1], [1], [0, 0, 0, 1, 1, 1], [0], [0]>} : vector<2x8x8xf32>, vector<2x8x8xf32>, vector<2x8x8xf32> -> vector<2x8x8xf32>
    "tpu.trace_stop"() : () -> ()
    %cst_154 = arith.constant dense<0xFF800000> : vector<2x8xf32>
    %316 = vector.multi_reduction <maximumf>, %315, %cst_154 [2] : vector<2x8x8xf32> to vector<2x8xf32>
    %317 = vector.shape_cast %316 : vector<2x8xf32> to vector<2x8x1xf32>
    %318 = vector.broadcast %317 : vector<2x8x1xf32> to vector<2x8x8xf32>
    %319 = arith.subf %315, %318 : vector<2x8x8xf32>
    %320 = math.exp %319 : vector<2x8x8xf32>
    %cst_155 = arith.constant dense<0.000000e+00> : vector<2x8xf32>
    %321 = vector.multi_reduction <add>, %320, %cst_155 [2] : vector<2x8x8xf32> to vector<2x8xf32>
    %322 = vector.shape_cast %321 : vector<2x8xf32> to vector<2x8x1xf32>
    %323 = tpu.reciprocal %322 : vector<2x8x1xf32> -> vector<2x8x1xf32>
    %324 = vector.broadcast %323 : vector<2x8x1xf32> to vector<2x8x8xf32>
    %325 = arith.mulf %320, %324 : vector<2x8x8xf32>
    "tpu.trace_start"() <{level = 10 : i32, message = "bst,btw->bsw"}> : () -> ()
    %cst_156 = arith.constant dense<0.000000e+00> : vector<2x8x8xf32>
    %326 = tpu.matmul %325, %314, %cst_156 {dimension_numbers = #tpu.dot_dimension_numbers<[2], [1], [1], [2], [0, 0, 0, 1, 1, 2], [0], [0]>} : vector<2x8x8xf32>, vector<2x8x8xf32>, vector<2x8x8xf32> -> vector<2x8x8xf32>
    "tpu.trace_stop"() : () -> ()
    %327 = vector.shape_cast %326 : vector<2x8x8xf32> to vector<16x8xf32>
    %328 = vector.extract_strided_slice %254 {offsets = [16, 0], sizes = [8, 32], strides = [1, 1]} : vector<32x32xf32> to vector<8x32xf32>
    %cst_157 = arith.constant dense<0.000000e+00> : vector<16x32xf32>
    %329 = tpu.matmul %327, %328, %cst_157 {dimension_numbers = #tpu.dot_dimension_numbers<[1], [0], [0], [1], [0, 0, 1, 1], [], []>} : vector<16x8xf32>, vector<8x32xf32>, vector<16x32xf32> -> vector<16x32xf32>
    %330 = arith.addf %311, %329 : vector<16x32xf32>
    %331 = vector.extract_strided_slice %270 {offsets = [0, 0, 24], sizes = [2, 8, 8], strides = [1, 1, 1]} : vector<2x8x32xf32> to vector<2x8x8xf32>
    %332 = vector.extract_strided_slice %271 {offsets = [0, 0, 24], sizes = [2, 8, 8], strides = [1, 1, 1]} : vector<2x8x32xf32> to vector<2x8x8xf32>
    %333 = vector.extract_strided_slice %272 {offsets = [0, 0, 24], sizes = [2, 8, 8], strides = [1, 1, 1]} : vector<2x8x32xf32> to vector<2x8x8xf32>
    "tpu.trace_start"() <{level = 10 : i32, message = "bsw,btw->bst"}> : () -> ()
    %cst_158 = arith.constant dense<0.000000e+00> : vector<2x8x8xf32>
    %334 = tpu.matmul %331, %332, %cst_158 {dimension_numbers = #tpu.dot_dimension_numbers<[2], [2], [1], [1], [0, 0, 0, 1, 1, 1], [0], [0]>} : vector<2x8x8xf32>, vector<2x8x8xf32>, vector<2x8x8xf32> -> vector<2x8x8xf32>
    "tpu.trace_stop"() : () -> ()
    %cst_159 = arith.constant dense<0xFF800000> : vector<2x8xf32>
    %335 = vector.multi_reduction <maximumf>, %334, %cst_159 [2] : vector<2x8x8xf32> to vector<2x8xf32>
    %336 = vector.shape_cast %335 : vector<2x8xf32> to vector<2x8x1xf32>
    %337 = vector.broadcast %336 : vector<2x8x1xf32> to vector<2x8x8xf32>
    %338 = arith.subf %334, %337 : vector<2x8x8xf32>
    %339 = math.exp %338 : vector<2x8x8xf32>
    %cst_160 = arith.constant dense<0.000000e+00> : vector<2x8xf32>
    %340 = vector.multi_reduction <add>, %339, %cst_160 [2] : vector<2x8x8xf32> to vector<2x8xf32>
    %341 = vector.shape_cast %340 : vector<2x8xf32> to vector<2x8x1xf32>
    %342 = tpu.reciprocal %341 : vector<2x8x1xf32> -> vector<2x8x1xf32>
    %343 = vector.broadcast %342 : vector<2x8x1xf32> to vector<2x8x8xf32>
    %344 = arith.mulf %339, %343 : vector<2x8x8xf32>
    "tpu.trace_start"() <{level = 10 : i32, message = "bst,btw->bsw"}> : () -> ()
    %cst_161 = arith.constant dense<0.000000e+00> : vector<2x8x8xf32>
    %345 = tpu.matmul %344, %333, %cst_161 {dimension_numbers = #tpu.dot_dimension_numbers<[2], [1], [1], [2], [0, 0, 0, 1, 1, 2], [0], [0]>} : vector<2x8x8xf32>, vector<2x8x8xf32>, vector<2x8x8xf32> -> vector<2x8x8xf32>
    "tpu.trace_stop"() : () -> ()
    %346 = vector.shape_cast %345 : vector<2x8x8xf32> to vector<16x8xf32>
    %347 = vector.extract_strided_slice %254 {offsets = [24, 0], sizes = [8, 32], strides = [1, 1]} : vector<32x32xf32> to vector<8x32xf32>
    %cst_162 = arith.constant dense<0.000000e+00> : vector<16x32xf32>
    %348 = tpu.matmul %346, %347, %cst_162 {dimension_numbers = #tpu.dot_dimension_numbers<[1], [0], [0], [1], [0, 0, 1, 1], [], []>} : vector<16x8xf32>, vector<8x32xf32>, vector<16x32xf32> -> vector<16x32xf32>
    %349 = arith.addf %330, %348 : vector<16x32xf32>
    %c1_163 = arith.constant 1 : index
    %c0_164 = arith.constant 0 : index
    %c0_165 = arith.constant 0 : index
    %350 = vector.load %arg14[%c1_163, %c0_164, %c0_165] : memref<2x1x32xf32, #tpu.memory_space<vmem>>, vector<1x1x32xf32>
    %351 = vector.shape_cast %350 : vector<1x1x32xf32> to vector<1x32xf32>
    %352 = vector.broadcast %351 : vector<1x32xf32> to vector<16x32xf32>
    %353 = arith.addf %349, %352 : vector<16x32xf32>
    %354 = arith.addf %246, %353 : vector<16x32xf32>
    %c1_166 = arith.constant 1 : index
    %c0_167 = arith.constant 0 : index
    %c0_168 = arith.constant 0 : index
    %355 = vector.load %arg15[%c1_166, %c0_167, %c0_168] : memref<2x1x32xf32, #tpu.memory_space<vmem>>, vector<1x1x32xf32>
    %356 = vector.shape_cast %355 : vector<1x1x32xf32> to vector<1x32xf32>
    %c1_169 = arith.constant 1 : index
    %c0_170 = arith.constant 0 : index
    %c0_171 = arith.constant 0 : index
    %357 = vector.load %arg16[%c1_169, %c0_170, %c0_171] : memref<2x1x32xf32, #tpu.memory_space<vmem>>, vector<1x1x32xf32>
    %358 = vector.shape_cast %357 : vector<1x1x32xf32> to vector<1x32xf32>
    %cst_172 = arith.constant dense<0.000000e+00> : vector<16xf32>
    %359 = vector.multi_reduction <add>, %354, %cst_172 [1] : vector<16x32xf32> to vector<16xf32>
    %360 = vector.shape_cast %359 : vector<16xf32> to vector<16x1xf32>
    %cst_173 = arith.constant 3.200000e+01 : f32
    %361 = vector.broadcast %cst_173 : f32 to vector<16x1xf32>
    %362 = arith.divf %360, %361 : vector<16x1xf32>
    %363 = vector.broadcast %362 : vector<16x1xf32> to vector<16x32xf32>
    %364 = arith.subf %354, %363 : vector<16x32xf32>
    %365 = arith.mulf %364, %364 : vector<16x32xf32>
    %cst_174 = arith.constant dense<0.000000e+00> : vector<16xf32>
    %366 = vector.multi_reduction <add>, %365, %cst_174 [1] : vector<16x32xf32> to vector<16xf32>
    %367 = vector.shape_cast %366 : vector<16xf32> to vector<16x1xf32>
    %cst_175 = arith.constant 3.200000e+01 : f32
    %368 = vector.broadcast %cst_175 : f32 to vector<16x1xf32>
    %369 = arith.divf %367, %368 : vector<16x1xf32>
    %cst_176 = arith.constant 9.99999996E-13 : f32
    %370 = vector.broadcast %cst_176 : f32 to vector<16x1xf32>
    %371 = arith.addf %369, %370 : vector<16x1xf32>
    %372 = math.rsqrt %371 : vector<16x1xf32>
    %373 = vector.broadcast %372 : vector<16x1xf32> to vector<16x32xf32>
    %374 = arith.mulf %364, %373 : vector<16x32xf32>
    %375 = vector.broadcast %356 : vector<1x32xf32> to vector<16x32xf32>
    %376 = arith.mulf %374, %375 : vector<16x32xf32>
    %377 = vector.broadcast %358 : vector<1x32xf32> to vector<16x32xf32>
    %378 = arith.addf %376, %377 : vector<16x32xf32>
    %c1_177 = arith.constant 1 : index
    %c0_178 = arith.constant 0 : index
    %c0_179 = arith.constant 0 : index
    %379 = vector.load %arg17[%c1_177, %c0_178, %c0_179] : memref<2x32x64xf32, #tpu.memory_space<vmem>>, vector<1x32x64xf32>
    %380 = vector.shape_cast %379 : vector<1x32x64xf32> to vector<32x64xf32>
    %cst_180 = arith.constant dense<0.000000e+00> : vector<16x64xf32>
    %381 = tpu.matmul %378, %380, %cst_180 {dimension_numbers = #tpu.dot_dimension_numbers<[1], [0], [0], [1], [0, 0, 1, 1], [], []>} : vector<16x32xf32>, vector<32x64xf32>, vector<16x64xf32> -> vector<16x64xf32>
    %c1_181 = arith.constant 1 : index
    %c0_182 = arith.constant 0 : index
    %c0_183 = arith.constant 0 : index
    %382 = vector.load %arg18[%c1_181, %c0_182, %c0_183] : memref<2x1x64xf32, #tpu.memory_space<vmem>>, vector<1x1x64xf32>
    %383 = vector.shape_cast %382 : vector<1x1x64xf32> to vector<1x64xf32>
    %384 = vector.broadcast %383 : vector<1x64xf32> to vector<16x64xf32>
    %385 = arith.addf %381, %384 : vector<16x64xf32>
    %cst_184 = arith.constant 5.000000e-01 : f32
    %386 = vector.broadcast %cst_184 : f32 to vector<16x64xf32>
    %387 = arith.mulf %385, %386 : vector<16x64xf32>
    %cst_185 = arith.constant 0.707106769 : f32
    %388 = vector.broadcast %cst_185 : f32 to vector<16x64xf32>
    %389 = arith.mulf %385, %388 : vector<16x64xf32>
    %390 = math.absf %389 : vector<16x64xf32>
    %cst_186 = arith.constant 0.327591091 : f32
    %391 = vector.broadcast %cst_186 : f32 to vector<16x64xf32>
    %392 = arith.mulf %391, %390 : vector<16x64xf32>
    %cst_187 = arith.constant 1.000000e+00 : f32
    %393 = vector.broadcast %cst_187 : f32 to vector<16x64xf32>
    %394 = arith.addf %393, %392 : vector<16x64xf32>
    %cst_188 = arith.constant 1.000000e+00 : f32
    %395 = vector.broadcast %cst_188 : f32 to vector<16x64xf32>
    %396 = arith.divf %395, %394 : vector<16x64xf32>
    %cst_189 = arith.constant 1.06140542 : f32
    %397 = vector.broadcast %cst_189 : f32 to vector<16x64xf32>
    %398 = arith.mulf %397, %396 : vector<16x64xf32>
    %cst_190 = arith.constant 1.45315206 : f32
    %399 = vector.broadcast %cst_190 : f32 to vector<16x64xf32>
    %400 = arith.subf %398, %399 : vector<16x64xf32>
    %401 = arith.mulf %400, %396 : vector<16x64xf32>
    %cst_191 = arith.constant 1.42141378 : f32
    %402 = vector.broadcast %cst_191 : f32 to vector<16x64xf32>
    %403 = arith.addf %401, %402 : vector<16x64xf32>
    %404 = arith.mulf %403, %396 : vector<16x64xf32>
    %cst_192 = arith.constant 0.284496725 : f32
    %405 = vector.broadcast %cst_192 : f32 to vector<16x64xf32>
    %406 = arith.subf %404, %405 : vector<16x64xf32>
    %407 = arith.mulf %406, %396 : vector<16x64xf32>
    %cst_193 = arith.constant 0.254829586 : f32
    %408 = vector.broadcast %cst_193 : f32 to vector<16x64xf32>
    %409 = arith.addf %407, %408 : vector<16x64xf32>
    %410 = arith.mulf %409, %396 : vector<16x64xf32>
    %cst_194 = arith.constant 0.000000e+00 : f32
    %411 = vector.broadcast %cst_194 : f32 to vector<16x64xf32>
    %412 = arith.subf %411, %390 : vector<16x64xf32>
    %413 = arith.mulf %412, %390 : vector<16x64xf32>
    %414 = math.exp %413 : vector<16x64xf32>
    %415 = arith.mulf %410, %414 : vector<16x64xf32>
    %cst_195 = arith.constant 1.000000e+00 : f32
    %416 = vector.broadcast %cst_195 : f32 to vector<16x64xf32>
    %417 = arith.subf %416, %415 : vector<16x64xf32>
    %cst_196 = arith.constant 0.000000e+00 : f32
    %418 = vector.broadcast %cst_196 : f32 to vector<16x64xf32>
    %419 = arith.cmpf oge, %389, %418 : vector<16x64xf32>
    %cst_197 = arith.constant 0.000000e+00 : f32
    %420 = vector.broadcast %cst_197 : f32 to vector<16x64xf32>
    %421 = arith.subf %420, %417 : vector<16x64xf32>
    %422 = arith.select %419, %417, %421 : vector<16x64xi1>, vector<16x64xf32>
    %cst_198 = arith.constant 1.000000e+00 : f32
    %423 = vector.broadcast %cst_198 : f32 to vector<16x64xf32>
    %424 = arith.addf %423, %422 : vector<16x64xf32>
    %425 = arith.mulf %387, %424 : vector<16x64xf32>
    %c1_199 = arith.constant 1 : index
    %c0_200 = arith.constant 0 : index
    %c0_201 = arith.constant 0 : index
    %426 = vector.load %arg19[%c1_199, %c0_200, %c0_201] : memref<2x64x32xf32, #tpu.memory_space<vmem>>, vector<1x64x32xf32>
    %427 = vector.shape_cast %426 : vector<1x64x32xf32> to vector<64x32xf32>
    %cst_202 = arith.constant dense<0.000000e+00> : vector<16x32xf32>
    %428 = tpu.matmul %425, %427, %cst_202 {dimension_numbers = #tpu.dot_dimension_numbers<[1], [0], [0], [1], [0, 0, 1, 1], [], []>} : vector<16x64xf32>, vector<64x32xf32>, vector<16x32xf32> -> vector<16x32xf32>
    %c1_203 = arith.constant 1 : index
    %c0_204 = arith.constant 0 : index
    %c0_205 = arith.constant 0 : index
    %429 = vector.load %arg20[%c1_203, %c0_204, %c0_205] : memref<2x1x32xf32, #tpu.memory_space<vmem>>, vector<1x1x32xf32>
    %430 = vector.shape_cast %429 : vector<1x1x32xf32> to vector<1x32xf32>
    %431 = vector.broadcast %430 : vector<1x32xf32> to vector<16x32xf32>
    %432 = arith.addf %428, %431 : vector<16x32xf32>
    %433 = arith.addf %378, %432 : vector<16x32xf32>
    %c1_206 = arith.constant 1 : index
    %c0_207 = arith.constant 0 : index
    %c0_208 = arith.constant 0 : index
    %434 = vector.load %arg21[%c1_206, %c0_207, %c0_208] : memref<2x1x32xf32, #tpu.memory_space<vmem>>, vector<1x1x32xf32>
    %435 = vector.shape_cast %434 : vector<1x1x32xf32> to vector<1x32xf32>
    %c1_209 = arith.constant 1 : index
    %c0_210 = arith.constant 0 : index
    %c0_211 = arith.constant 0 : index
    %436 = vector.load %arg22[%c1_209, %c0_210, %c0_211] : memref<2x1x32xf32, #tpu.memory_space<vmem>>, vector<1x1x32xf32>
    %437 = vector.shape_cast %436 : vector<1x1x32xf32> to vector<1x32xf32>
    %cst_212 = arith.constant dense<0.000000e+00> : vector<16xf32>
    %438 = vector.multi_reduction <add>, %433, %cst_212 [1] : vector<16x32xf32> to vector<16xf32>
    %439 = vector.shape_cast %438 : vector<16xf32> to vector<16x1xf32>
    %cst_213 = arith.constant 3.200000e+01 : f32
    %440 = vector.broadcast %cst_213 : f32 to vector<16x1xf32>
    %441 = arith.divf %439, %440 : vector<16x1xf32>
    %442 = vector.broadcast %441 : vector<16x1xf32> to vector<16x32xf32>
    %443 = arith.subf %433, %442 : vector<16x32xf32>
    %444 = arith.mulf %443, %443 : vector<16x32xf32>
    %cst_214 = arith.constant dense<0.000000e+00> : vector<16xf32>
    %445 = vector.multi_reduction <add>, %444, %cst_214 [1] : vector<16x32xf32> to vector<16xf32>
    %446 = vector.shape_cast %445 : vector<16xf32> to vector<16x1xf32>
    %cst_215 = arith.constant 3.200000e+01 : f32
    %447 = vector.broadcast %cst_215 : f32 to vector<16x1xf32>
    %448 = arith.divf %446, %447 : vector<16x1xf32>
    %cst_216 = arith.constant 9.99999996E-13 : f32
    %449 = vector.broadcast %cst_216 : f32 to vector<16x1xf32>
    %450 = arith.addf %448, %449 : vector<16x1xf32>
    %451 = math.rsqrt %450 : vector<16x1xf32>
    %452 = vector.broadcast %451 : vector<16x1xf32> to vector<16x32xf32>
    %453 = arith.mulf %443, %452 : vector<16x32xf32>
    %454 = vector.broadcast %435 : vector<1x32xf32> to vector<16x32xf32>
    %455 = arith.mulf %453, %454 : vector<16x32xf32>
    %456 = vector.broadcast %437 : vector<1x32xf32> to vector<16x32xf32>
    %457 = arith.addf %455, %456 : vector<16x32xf32>
    %c0_217 = arith.constant 0 : index
    %c0_218 = arith.constant 0 : index
    %458 = vector.load %arg23[%c0_217, %c0_218] : memref<32x16xf32, #tpu.memory_space<vmem>>, vector<32x16xf32>
    %cst_219 = arith.constant dense<0.000000e+00> : vector<16x16xf32>
    %459 = tpu.matmul %457, %458, %cst_219 {dimension_numbers = #tpu.dot_dimension_numbers<[1], [0], [0], [1], [0, 0, 1, 1], [], []>} : vector<16x32xf32>, vector<32x16xf32>, vector<16x16xf32> -> vector<16x16xf32>
    %c0_220 = arith.constant 0 : index
    %c0_221 = arith.constant 0 : index
    %460 = vector.load %arg24[%c0_220, %c0_221] : memref<1x16xf32, #tpu.memory_space<vmem>>, vector<1x16xf32>
    %461 = vector.broadcast %460 : vector<1x16xf32> to vector<16x16xf32>
    %462 = arith.addf %459, %461 : vector<16x16xf32>
    %463 = vector.shape_cast %462 : vector<16x16xf32> to vector<2x8x16xf32>
    %c0_222 = arith.constant 0 : index
    %c0_223 = arith.constant 0 : index
    %c0_224 = arith.constant 0 : index
    %464 = vector.load %arg26[%c0_222, %c0_223, %c0_224] : memref<2x8x16xf32, #tpu.memory_space<vmem>>, vector<2x8x16xf32>
    tpu.vector_store %arg26[%c0_222, %c0_223, %c0_224], %463 {strides = array<i32>} : memref<2x8x16xf32, #tpu.memory_space<vmem>>, vector<2x8x16xf32>,
    return
  }
  func.func @transform_0(%arg0: i32) -> (i32, i32, i32) {
    %c0_i32 = arith.constant 0 : i32
    %c0_i32_0 = arith.constant 0 : i32
    %c0_i32_1 = arith.constant 0 : i32
    return %arg0, %c0_i32, %c0_i32_0 : i32, i32, i32
  }
  func.func @transform_1(%arg0: i32) -> (i32, i32) {
    %c0_i32 = arith.constant 0 : i32
    %c0_i32_0 = arith.constant 0 : i32
    %c0_i32_1 = arith.constant 0 : i32
    return %c0_i32, %c0_i32_0 : i32, i32
  }
  func.func @transform_2(%arg0: i32) -> (i32, i32) {
    %c0_i32 = arith.constant 0 : i32
    %c0_i32_0 = arith.constant 0 : i32
    %c0_i32_1 = arith.constant 0 : i32
    return %c0_i32, %c0_i32_0 : i32, i32
  }
  func.func @transform_3(%arg0: i32) -> (i32, i32) {
    %c0_i32 = arith.constant 0 : i32
    %c0_i32_0 = arith.constant 0 : i32
    %c0_i32_1 = arith.constant 0 : i32
    return %c0_i32, %c0_i32_0 : i32, i32
  }
  func.func @transform_4(%arg0: i32) -> (i32, i32) {
    %c0_i32 = arith.constant 0 : i32
    %c0_i32_0 = arith.constant 0 : i32
    %c0_i32_1 = arith.constant 0 : i32
    return %c0_i32, %c0_i32_0 : i32, i32
  }
  func.func @transform_5(%arg0: i32) -> (i32, i32) {
    %c0_i32 = arith.constant 0 : i32
    %c0_i32_0 = arith.constant 0 : i32
    %c0_i32_1 = arith.constant 0 : i32
    return %c0_i32, %c0_i32_0 : i32, i32
  }
  func.func @transform_6(%arg0: i32) -> (i32, i32, i32) {
    %c0_i32 = arith.constant 0 : i32
    %c0_i32_0 = arith.constant 0 : i32
    %c0_i32_1 = arith.constant 0 : i32
    %c0_i32_2 = arith.constant 0 : i32
    return %c0_i32, %c0_i32_0, %c0_i32_1 : i32, i32, i32
  }
  func.func @transform_7(%arg0: i32) -> (i32, i32, i32) {
    %c0_i32 = arith.constant 0 : i32
    %c0_i32_0 = arith.constant 0 : i32
    %c0_i32_1 = arith.constant 0 : i32
    %c0_i32_2 = arith.constant 0 : i32
    return %c0_i32, %c0_i32_0, %c0_i32_1 : i32, i32, i32
  }
  func.func @transform_8(%arg0: i32) -> (i32, i32, i32) {
    %c0_i32 = arith.constant 0 : i32
    %c0_i32_0 = arith.constant 0 : i32
    %c0_i32_1 = arith.constant 0 : i32
    %c0_i32_2 = arith.constant 0 : i32
    return %c0_i32, %c0_i32_0, %c0_i32_1 : i32, i32, i32
  }
  func.func @transform_9(%arg0: i32) -> (i32, i32, i32) {
    %c0_i32 = arith.constant 0 : i32
    %c0_i32_0 = arith.constant 0 : i32
    %c0_i32_1 = arith.constant 0 : i32
    %c0_i32_2 = arith.constant 0 : i32
    return %c0_i32, %c0_i32_0, %c0_i32_1 : i32, i32, i32
  }
  func.func @transform_10(%arg0: i32) -> (i32, i32, i32) {
    %c0_i32 = arith.constant 0 : i32
    %c0_i32_0 = arith.constant 0 : i32
    %c0_i32_1 = arith.constant 0 : i32
    %c0_i32_2 = arith.constant 0 : i32
    return %c0_i32, %c0_i32_0, %c0_i32_1 : i32, i32, i32
  }
  func.func @transform_11(%arg0: i32) -> (i32, i32, i32) {
    %c0_i32 = arith.constant 0 : i32
    %c0_i32_0 = arith.constant 0 : i32
    %c0_i32_1 = arith.constant 0 : i32
    %c0_i32_2 = arith.constant 0 : i32
    return %c0_i32, %c0_i32_0, %c0_i32_1 : i32, i32, i32
  }
  func.func @transform_12(%arg0: i32) -> (i32, i32, i32) {
    %c0_i32 = arith.constant 0 : i32
    %c0_i32_0 = arith.constant 0 : i32
    %c0_i32_1 = arith.constant 0 : i32
    %c0_i32_2 = arith.constant 0 : i32
    return %c0_i32, %c0_i32_0, %c0_i32_1 : i32, i32, i32
  }
  func.func @transform_13(%arg0: i32) -> (i32, i32, i32) {
    %c0_i32 = arith.constant 0 : i32
    %c0_i32_0 = arith.constant 0 : i32
    %c0_i32_1 = arith.constant 0 : i32
    %c0_i32_2 = arith.constant 0 : i32
    return %c0_i32, %c0_i32_0, %c0_i32_1 : i32, i32, i32
  }
  func.func @transform_14(%arg0: i32) -> (i32, i32, i32) {
    %c0_i32 = arith.constant 0 : i32
    %c0_i32_0 = arith.constant 0 : i32
    %c0_i32_1 = arith.constant 0 : i32
    %c0_i32_2 = arith.constant 0 : i32
    return %c0_i32, %c0_i32_0, %c0_i32_1 : i32, i32, i32
  }
  func.func @transform_15(%arg0: i32) -> (i32, i32, i32) {
    %c0_i32 = arith.constant 0 : i32
    %c0_i32_0 = arith.constant 0 : i32
    %c0_i32_1 = arith.constant 0 : i32
    %c0_i32_2 = arith.constant 0 : i32
    return %c0_i32, %c0_i32_0, %c0_i32_1 : i32, i32, i32
  }
  func.func @transform_16(%arg0: i32) -> (i32, i32, i32) {
    %c0_i32 = arith.constant 0 : i32
    %c0_i32_0 = arith.constant 0 : i32
    %c0_i32_1 = arith.constant 0 : i32
    %c0_i32_2 = arith.constant 0 : i32
    return %c0_i32, %c0_i32_0, %c0_i32_1 : i32, i32, i32
  }
  func.func @transform_17(%arg0: i32) -> (i32, i32, i32) {
    %c0_i32 = arith.constant 0 : i32
    %c0_i32_0 = arith.constant 0 : i32
    %c0_i32_1 = arith.constant 0 : i32
    %c0_i32_2 = arith.constant 0 : i32
    return %c0_i32, %c0_i32_0, %c0_i32_1 : i32, i32, i32
  }
  func.func @transform_18(%arg0: i32) -> (i32, i32, i32) {
    %c0_i32 = arith.constant 0 : i32
    %c0_i32_0 = arith.constant 0 : i32
    %c0_i32_1 = arith.constant 0 : i32
    %c0_i32_2 = arith.constant 0 : i32
    return %c0_i32, %c0_i32_0, %c0_i32_1 : i32, i32, i32
  }
  func.func @transform_19(%arg0: i32) -> (i32, i32, i32) {
    %c0_i32 = arith.constant 0 : i32
    %c0_i32_0 = arith.constant 0 : i32
    %c0_i32_1 = arith.constant 0 : i32
    %c0_i32_2 = arith.constant 0 : i32
    return %c0_i32, %c0_i32_0, %c0_i32_1 : i32, i32, i32
  }
  func.func @transform_20(%arg0: i32) -> (i32, i32, i32) {
    %c0_i32 = arith.constant 0 : i32
    %c0_i32_0 = arith.constant 0 : i32
    %c0_i32_1 = arith.constant 0 : i32
    %c0_i32_2 = arith.constant 0 : i32
    return %c0_i32, %c0_i32_0, %c0_i32_1 : i32, i32, i32
  }
  func.func @transform_21(%arg0: i32) -> (i32, i32, i32) {
    %c0_i32 = arith.constant 0 : i32
    %c0_i32_0 = arith.constant 0 : i32
    %c0_i32_1 = arith.constant 0 : i32
    %c0_i32_2 = arith.constant 0 : i32
    return %c0_i32, %c0_i32_0, %c0_i32_1 : i32, i32, i32
  }
  func.func @transform_22(%arg0: i32) -> (i32, i32) {
    %c0_i32 = arith.constant 0 : i32
    %c0_i32_0 = arith.constant 0 : i32
    %c0_i32_1 = arith.constant 0 : i32
    return %c0_i32, %c0_i32_0 : i32, i32
  }
  func.func @transform_23(%arg0: i32) -> (i32, i32) {
    %c0_i32 = arith.constant 0 : i32
    %c0_i32_0 = arith.constant 0 : i32
    %c0_i32_1 = arith.constant 0 : i32
    return %c0_i32, %c0_i32_0 : i32, i32
  }
  func.func @transform_24(%arg0: i32) -> (i32, i32, i32) {
    %c0_i32 = arith.constant 0 : i32
    %c0_i32_0 = arith.constant 0 : i32
    %c0_i32_1 = arith.constant 0 : i32
    return %arg0, %c0_i32, %c0_i32_0 : i32, i32, i32
  }
  func.func @transform_25(%arg0: i32) -> (i32, i32, i32) {
    %c0_i32 = arith.constant 0 : i32
    %c0_i32_0 = arith.constant 0 : i32
    %c0_i32_1 = arith.constant 0 : i32
    return %arg0, %c0_i32, %c0_i32_0 : i32, i32, i32
  }
}

</mosaic_0001>

<bundles_post_ra>
// kernel: tpu_custom_call.1
= control target key start
LH: loop header
LB: loop body
LE: loop exit
PB: predicated region body
PF: predicated region fallthrough
CT: control target
= control target key end

     0   :  { %s7124_s0 = inlined_call_operand.hbm [shape: f32[2,8,32], index: 0, kind: input, shape index: {}]   ;;  %s7125_s1 = inlined_call_operand.hbm [shape: f32[8,32], index: 1, kind: input, shape index: {}]   ;;  %s7126_s2 = inlined_call_operand.vmem [shape: f32[32,16], index: 2, kind: input, shape index: {}]   ;;  %s7127_s3 = inlined_call_operand.hbm [shape: f32[1,16], index: 3, kind: input, shape index: {}]   ;;  %s7128_s4 = inlined_call_operand.hbm [shape: f32[1,32], index: 4, kind: input, shape index: {}]   ;;  %s7129_s5 = inlined_call_operand.hbm [shape: f32[1,32], index: 5, kind: input, shape index: {}]   ;;  %s7130_s6 = inlined_call_operand.vmem [shape: f32[2,32,32], index: 6, kind: input, shape index: {}]   ;;  %s7131_s7 = inlined_call_operand.hbm [shape: f32[2,1,32], index: 7, kind: input, shape index: {}]   ;;  %s7132_s8 = inlined_call_operand.vmem [shape: f32[2,32,32], index: 8, kind: input, shape index: {}]   ;;  %s7133_s9 = inlined_call_operand.hbm [shape: f32[2,1,32], index: 9, kind: input, shape index: {}]   ;;  %s7134_s10 = inlined_call_operand.vmem [shape: f32[2,32,32], index: 10, kind: input, shape index: {}]   ;;  %s7135_s11 = inlined_call_operand.hbm [shape: f32[2,1,32], index: 11, kind: input, shape index: {}]   ;;  %s7136_s12 = inlined_call_operand.vmem [shape: f32[2,32,32], index: 12, kind: input, shape index: {}]   ;;  %s7137_s13 = inlined_call_operand.hbm [shape: f32[2,1,32], index: 13, kind: input, shape index: {}]   ;;  %s7138_s14 = inlined_call_operand.vmem [shape: f32[2,1,32], index: 14, kind: input, shape index: {}]   ;;  %s7139_s15 = inlined_call_operand.vmem [shape: f32[2,1,32], index: 15, kind: input, shape index: {}]   ;;  %s7140_s16 = inlined_call_operand.hbm [shape: f32[2,32,64], index: 16, kind: input, shape index: {}]   ;;  %s7141_s17 = inlined_call_operand.vmem [shape: f32[2,1,64], index: 17, kind: input, shape index: {}]   ;;  %s7142_s18 = inlined_call_operand.vmem [shape: f32[2,64,32], index: 18, kind: input, shape index: {}]   ;;  %s7143_s19 = inlined_call_operand.vmem [shape: f32[2,1,32], index: 19, kind: input, shape index: {}]   ;;  %s7144_s20 = inlined_call_operand.vmem [shape: f32[2,1,32], index: 20, kind: input, shape index: {}]   ;;  %s7145_s21 = inlined_call_operand.vmem [shape: f32[2,1,32], index: 21, kind: input, shape index: {}]   ;;  %s7146_s22 = inlined_call_operand.vmem [shape: f32[32,16], index: 22, kind: input, shape index: {}]   ;;  %s7147_s23 = inlined_call_operand.vmem [shape: f32[1,16], index: 23, kind: input, shape index: {}]   ;;  %s7148_s24 = inlined_call_operand.hbm [shape: f32[2,8,16], index: 24, kind: output, shape index: {0}]   ;;  %s7149_s25 = inlined_call_operand.hbm [shape: f32[2,8,16], index: 25, kind: output, shape index: {1}]  }
   0x1   :  { %7165 = sst [smem:[#allocation30_spill]] %s7124_s0 }
   0x2   :  { %7166 = sst [smem:[#allocation31_spill]] %s7125_s1 }
   0x3   :  { %7167 = sst [smem:[#allocation32_spill]] %s7126_s2 }
   0x4   :  { %7168 = sst [smem:[#allocation33_spill]] %s7127_s3 }
   0x5   :  { %7169 = sst [smem:[#allocation34_spill]] %s7128_s4 }
   0x6   :  { %7170 = sst [smem:[#allocation35_spill]] %s7129_s5 }
   0x7   :  { %7171 = sst [smem:[#allocation36_spill]] %s7130_s6 }
   0x8   :  { %7172 = sst [smem:[#allocation37_spill]] %s7131_s7 }
   0x9   :  { %7173 = sst [smem:[#allocation38_spill]] %s7132_s8 }
   0xa   :  { %7174 = sst [smem:[#allocation39_spill]] %s7133_s9 }
   0xb   :  { %7175 = sst [smem:[#allocation40_spill]] %s7147_s23 }
   0xc   :  { %7176 = sst [smem:[#allocation41_spill]] %s7149_s25 }
   0xd   :  { %31 = vsyncpa [#allocation3], 0 }
   0xe   :  { %32 = vsyncpa [#allocation6], 0 }
   0xf   :  { %33 = vsyncpa [#allocation9], 0 }
  0x10   :  { %34 = vsyncpa [#allocation12], 0 }
  0x11   :  { %35 = vsyncpa [#allocation15], 0 }
  0x12   :  { %36 = vsyncpa [#allocation18], 0 }
  0x13   :  { %37 = vsyncpa [#allocation4], 0 }
  0x14   :  { %38 = vsyncpa [#allocation21], 0  ;;  %s6198_s29 = smov [#allocation5]   ;;  %s6199_s6 = smov [#allocation8]  }
  0x15   :  { %s57_s2 = sshll.u32 %s6198_s29, 4  ;;  %s79_s30 = sshll.u32 %s6199_s6, 4  ;;  %s58_s2 = int_to_ptr.vmem [resolvable:$true] %s57_s2  ;;  %s80_s30 = int_to_ptr.vmem [resolvable:$true] %s79_s30 }
  0x16   :  { %s7177_s26 = sld [smem:[#allocation31_spill]] }
  0x1c   :  { %s5918_s1 = scalar_lea.hbm %s7177_s26, 128 }
  0x1d   :  { %p5919_p0 = scmp.ne.s32.totalorder %s7177_s26, %s5918_s1  ;;  %p5922_p1 = scmp.lt.u32.totalorder %s5918_s1, %s7177_s26 }
  0x1f   :  { %p5924_p2 = pnand %p5922_p1, %p5919_p0 }
  0x21   :  { %5927 = shalt.err (!%p5924_p2)
}
  0x22   :  { %s5928_s9 = scalar_lea.vmem %s58_s2, 128  ;;  %p5933_p4 = scmp.lt.s32.totalorder %s58_s2, %s58_s2 }
  0x23   :  { %p5929_p3 = scmp.ne.s32.totalorder %s58_s2, %s5928_s9  ;;  %p5934_p5 = scmp.lt.s32.totalorder %s5928_s9, %s5928_s9 }
  0x25   :  { %p5935_p6 = por %p5934_p5, %p5933_p4 }
  0x27   :  { %p5936_p7 = pnand %p5935_p6, %p5929_p3 }
  0x29   :  { %5939 = shalt.err (!%p5936_p7)
}
  0x2a   :  { %60 = dma.hbm_to_vmem [thread:$0]  %s7177_s26, 128, %s58_s2, [#allocation6]  }
  0x2b   :  { %s7178_s7 = sld [smem:[#allocation34_spill]] }
  0x31   :  { %s5940_s3 = scalar_lea.hbm %s7178_s7, 16 }
  0x32   :  { %p5941_p8 = scmp.ne.s32.totalorder %s7178_s7, %s5940_s3  ;;  %p5944_p9 = scmp.lt.u32.totalorder %s5940_s3, %s7178_s7 }
  0x34   :  { %p5946_p10 = pnand %p5944_p9, %p5941_p8 }
  0x36   :  { %5949 = shalt.err (!%p5946_p10)
}
  0x37   :  { %s5950_s28 = scalar_lea.vmem %s80_s30, 16  ;;  %s5954_s9 = scalar_lea.vmem %s80_s30, 32 }
  0x38   :  { %p5951_p11 = scmp.ne.s32.totalorder %s80_s30, %s5950_s28  ;;  %p5955_p12 = scmp.lt.s32.totalorder %s80_s30, %s80_s30 }
  0x39   :  { %p5956_p13 = scmp.lt.s32.totalorder %s5954_s9, %s5950_s28 }
  0x3b   :  { %p5957_p0 = por %p5956_p13, %p5955_p12 }
  0x3d   :  { %p5958_p1 = pnand %p5957_p0, %p5951_p11 }
  0x3f   :  { %5961 = shalt.err (!%p5958_p1)
}
  0x40   :  { %82 = dma.hbm_to_vmem [thread:$0]  %s7178_s7, 16, %s80_s30, [#allocation9]  }
  0x41   :  { %s6200_s5 = smov [#allocation11]   ;;  %s7179_s3 = sld [smem:[#allocation37_spill]] }
  0x42   :  { %s100_s0 = sshll.u32 %s6200_s5, 4  ;;  %s101_s0 = int_to_ptr.vmem [resolvable:$true] %s100_s0 }
  0x47   :  { %s5962_s8 = scalar_lea.hbm %s7179_s3, 32 }
  0x48   :  { %p5963_p2 = scmp.ne.s32.totalorder %s7179_s3, %s5962_s8  ;;  %p5966_p3 = scmp.lt.u32.totalorder %s5962_s8, %s7179_s3 }
  0x4a   :  { %p5968_p4 = pnand %p5966_p3, %p5963_p2 }
  0x4c   :  { %5971 = shalt.err (!%p5968_p4)
}
  0x4d   :  { %s5972_s9 = scalar_lea.vmem %s101_s0, 32  ;;  %p5977_p6 = scmp.lt.s32.totalorder %s101_s0, %s101_s0 }
  0x4e   :  { %p5973_p5 = scmp.ne.s32.totalorder %s101_s0, %s5972_s9  ;;  %p5978_p7 = scmp.lt.s32.totalorder %s5972_s9, %s5972_s9 }
  0x50   :  { %p5979_p8 = por %p5978_p7, %p5977_p6 }
  0x52   :  { %p5980_p9 = pnand %p5979_p8, %p5973_p5 }
  0x54   :  { %5983 = shalt.err (!%p5980_p9)
}
  0x55   :  { %s7161_s30 = smov 16   ;;  %s7163_s7 = smov 1  }
  0x56   :  { %106 = dma.hbm_to_vmem [thread:$0]  %s7179_s3, 32, %s101_s0, [#allocation12], %s7161_s30, %s7161_s30, %s7163_s7  }
  0x57   :  { %s6203_s5 = smov [#allocation14]   ;;  %s6204_s6 = smov [#allocation2]  }
  0x58   :  { %s128_s29 = sshll.u32 %s6203_s5, 4  ;;  %s44_s8 = sshll.u32 %s6204_s6, 4  ;;  %s129_s29 = int_to_ptr.vmem [resolvable:$true] %s128_s29  ;;  %s45_s8 = int_to_ptr.vmem [resolvable:$true] %s44_s8 }
  0x59   :  { %s5984_s4 = scalar_lea.hbm %s7135_s11, 32 }
  0x5a   :  { %p5985_p10 = scmp.ne.s32.totalorder %s7135_s11, %s5984_s4  ;;  %p5988_p11 = scmp.lt.u32.totalorder %s5984_s4, %s7135_s11 }
  0x5c   :  { %p5990_p12 = pnand %p5988_p11, %p5985_p10 }
  0x5e   :  { %5993 = shalt.err (!%p5990_p12)
}
  0x5f   :  { %s5994_s0 = scalar_lea.vmem %s129_s29, 32  ;;  %p5999_p0 = scmp.lt.s32.totalorder %s129_s29, %s129_s29 }
  0x60   :  { %p5995_p13 = scmp.ne.s32.totalorder %s129_s29, %s5994_s0  ;;  %p6000_p1 = scmp.lt.s32.totalorder %s5994_s0, %s5994_s0 }
  0x62   :  { %p6001_p2 = por %p6000_p1, %p5999_p0 }
  0x64   :  { %p6002_p3 = pnand %p6001_p2, %p5995_p13 }
  0x66   :  { %6005 = shalt.err (!%p6002_p3)
}
  0x67   :  { %134 = dma.hbm_to_vmem [thread:$0]  %s7135_s11, 32, %s129_s29, [#allocation15], %s7161_s30, %s7161_s30, %s7163_s7  }
  0x68   :  { %s7180_s25 = sld [smem:[#allocation30_spill]] }
  0x6e   :  { %s6006_s5 = scalar_lea.hbm %s7180_s25, 256 }
  0x6f   :  { %p6007_p4 = scmp.ne.s32.totalorder %s7180_s25, %s6006_s5  ;;  %p6010_p5 = scmp.lt.u32.totalorder %s6006_s5, %s7180_s25 }
  0x71   :  { %p6012_p6 = pnand %p6010_p5, %p6007_p4 }
  0x73   :  { %6015 = shalt.err (!%p6012_p6)
}
  0x74   :  { %s6016_s28 = scalar_lea.vmem %s45_s8, 256  ;;  %p6021_p8 = scmp.lt.s32.totalorder %s45_s8, %s45_s8 }
  0x75   :  { %p6017_p7 = scmp.ne.s32.totalorder %s45_s8, %s6016_s28  ;;  %p6022_p9 = scmp.lt.s32.totalorder %s6016_s28, %s6016_s28 }
  0x77   :  { %p6023_p10 = por %p6022_p9, %p6021_p8 }
  0x79   :  { %p6024_p11 = pnand %p6023_p10, %p6017_p7 }
  0x7b   :  { %6027 = shalt.err (!%p6024_p11)
}
  0x7c   :  { %s6205_s11 = smov 128   ;;  %s6206_s29 = smov 8  }
  0x7d   :  { %50 = dma.hbm_to_vmem [thread:$0]  %s7180_s25, 256, %s45_s8, [#allocation3], %s6205_s11, %s6205_s11, %s6206_s29  }
  0x7e   :  { %s6207_s3 = smov [#allocation7]   ;;  %s6208_s26 = smov [#allocation10]  }
  0x7f   :  { %s69_s2 = sshll.u32 %s6207_s3, 4  ;;  %s89_s23 = sshll.u32 %s6208_s26, 4  ;;  %s70_s2 = int_to_ptr.vmem [resolvable:$true] %s69_s2  ;;  %s90_s23 = int_to_ptr.vmem [resolvable:$true] %s89_s23 }
  0x80   :  { %s7181_s27 = sld [smem:[#allocation33_spill]] }
  0x86   :  { %s6028_s1 = scalar_lea.hbm %s7181_s27, 16 }
  0x87   :  { %p6029_p12 = scmp.ne.s32.totalorder %s7181_s27, %s6028_s1  ;;  %p6032_p13 = scmp.lt.u32.totalorder %s6028_s1, %s7181_s27 }
  0x89   :  { %p6034_p0 = pnand %p6032_p13, %p6029_p12 }
  0x8b   :  { %6037 = shalt.err (!%p6034_p0)
}
  0x8c   :  { %s6038_s8 = scalar_lea.vmem %s70_s2, 16  ;;  %s6042_s25 = scalar_lea.vmem %s70_s2, 32 }
  0x8d   :  { %p6039_p1 = scmp.ne.s32.totalorder %s70_s2, %s6038_s8  ;;  %p6043_p2 = scmp.lt.s32.totalorder %s70_s2, %s70_s2 }
  0x8e   :  { %p6044_p3 = scmp.lt.s32.totalorder %s6042_s25, %s6038_s8 }
  0x90   :  { %p6045_p4 = por %p6044_p3, %p6043_p2 }
  0x92   :  { %p6046_p5 = pnand %p6045_p4, %p6039_p1 }
  0x94   :  { %6049 = shalt.err (!%p6046_p5)
}
  0x95   :  { %72 = dma.hbm_to_vmem [thread:$0]  %s7181_s27, 16, %s70_s2, [#allocation6]  }
  0x96   :  { %s7182_s5 = sld [smem:[#allocation35_spill]] }
  0x9c   :  { %s6050_s30 = scalar_lea.hbm %s7182_s5, 16 }
  0x9d   :  { %p6051_p6 = scmp.ne.s32.totalorder %s7182_s5, %s6050_s30  ;;  %p6054_p7 = scmp.lt.u32.totalorder %s6050_s30, %s7182_s5 }
  0x9f   :  { %p6056_p8 = pnand %p6054_p7, %p6051_p6 }
  0xa1   :  { %6059 = shalt.err (!%p6056_p8)
}
  0xa2   :  { %s6060_s28 = scalar_lea.vmem %s90_s23, 16  ;;  %s6064_s8 = scalar_lea.vmem %s90_s23, 32 }
  0xa3   :  { %p6061_p9 = scmp.ne.s32.totalorder %s90_s23, %s6060_s28  ;;  %p6065_p10 = scmp.lt.s32.totalorder %s90_s23, %s90_s23 }
  0xa4   :  { %p6066_p11 = scmp.lt.s32.totalorder %s6064_s8, %s6060_s28 }
  0xa6   :  { %p6067_p12 = por %p6066_p11, %p6065_p10 }
  0xa8   :  { %p6068_p13 = pnand %p6067_p12, %p6061_p9 }
  0xaa   :  { %6071 = shalt.err (!%p6068_p13)
}
  0xab   :  { %92 = dma.hbm_to_vmem [thread:$0]  %s7182_s5, 16, %s90_s23, [#allocation9]  }
  0xac   :  { %s6209_s25 = smov [#allocation13]   ;;  %s6210_s0 = smov [#allocation16]  }
  0xad   :  { %s114_s9 = sshll.u32 %s6209_s25, 4  ;;  %s142_s3 = sshll.u32 %s6210_s0, 4  ;;  %s115_s9 = int_to_ptr.vmem [resolvable:$true] %s114_s9  ;;  %s143_s3 = int_to_ptr.vmem [resolvable:$true] %s142_s3 }
  0xae   :  { %s7183_s7 = sld [smem:[#allocation39_spill]] }
  0xb4   :  { %s6072_s6 = scalar_lea.hbm %s7183_s7, 32 }
  0xb5   :  { %p6073_p0 = scmp.ne.s32.totalorder %s7183_s7, %s6072_s6  ;;  %p6076_p1 = scmp.lt.u32.totalorder %s6072_s6, %s7183_s7 }
  0xb7   :  { %p6078_p2 = pnand %p6076_p1, %p6073_p0 }
  0xb9   :  { %6081 = shalt.err (!%p6078_p2)
}
  0xba   :  { %s6082_s23 = scalar_lea.vmem %s115_s9, 32  ;;  %p6087_p4 = scmp.lt.s32.totalorder %s115_s9, %s115_s9 }
  0xbb   :  { %p6083_p3 = scmp.ne.s32.totalorder %s115_s9, %s6082_s23  ;;  %p6088_p5 = scmp.lt.s32.totalorder %s6082_s23, %s6082_s23 }
  0xbd   :  { %p6089_p6 = por %p6088_p5, %p6087_p4 }
  0xbf   :  { %p6090_p7 = pnand %p6089_p6, %p6083_p3 }
  0xc1   :  { %6093 = shalt.err (!%p6090_p7)
}
  0xc2   :  { %s7184_s5 = smov 1   ;;  %s7185_s2 = smov 16  }
  0xc3   :  { %120 = dma.hbm_to_vmem [thread:$0]  %s7183_s7, 32, %s115_s9, [#allocation12], %s7185_s2, %s7185_s2, %s7184_s5  }
  0xc4   :  { %s6094_s30 = scalar_lea.hbm %s7137_s13, 32 }
  0xc5   :  { %p6095_p8 = scmp.ne.s32.totalorder %s7137_s13, %s6094_s30  ;;  %p6098_p9 = scmp.lt.u32.totalorder %s6094_s30, %s7137_s13 }
  0xc7   :  { %p6100_p10 = pnand %p6098_p9, %p6095_p8 }
  0xc9   :  { %6103 = shalt.err (!%p6100_p10)
}
  0xca   :  { %s6104_s8 = scalar_lea.vmem %s143_s3, 32  ;;  %p6109_p12 = scmp.lt.s32.totalorder %s143_s3, %s143_s3 }
  0xcb   :  { %p6105_p11 = scmp.ne.s32.totalorder %s143_s3, %s6104_s8  ;;  %p6110_p13 = scmp.lt.s32.totalorder %s6104_s8, %s6104_s8 }
  0xcd   :  { %p6111_p0 = por %p6110_p13, %p6109_p12 }
  0xcf   :  { %p6112_p1 = pnand %p6111_p0, %p6105_p11 }
  0xd1   :  { %6115 = shalt.err (!%p6112_p1)
}
  0xd2   :  { %148 = dma.hbm_to_vmem [thread:$0]  %s7137_s13, 32, %s143_s3, [#allocation15], %s7185_s2, %s7185_s2, %s7184_s5  }
  0xd3   :  { %s6211_s23 = smov [#allocation17]   ;;  %s6116_s26 = scalar_lea.hbm %s7140_s16, 1024 }
  0xd4   :  { %s158_s27 = sshll.u32 %s6211_s23, 4  ;;  %p6117_p2 = scmp.ne.s32.totalorder %s7140_s16, %s6116_s26  ;;  %s159_s27 = int_to_ptr.vmem [resolvable:$true] %s158_s27 }
  0xd5   :  { %p6120_p3 = scmp.lt.u32.totalorder %s6116_s26, %s7140_s16 }
  0xd7   :  { %p6122_p4 = pnand %p6120_p3, %p6117_p2 }
  0xd9   :  { %6125 = shalt.err (!%p6122_p4)
}
  0xda   :  { %s6126_s28 = scalar_lea.vmem %s159_s27, 1024  ;;  %p6131_p6 = scmp.lt.s32.totalorder %s159_s27, %s159_s27 }
  0xdb   :  { %p6127_p5 = scmp.ne.s32.totalorder %s159_s27, %s6126_s28  ;;  %p6132_p7 = scmp.lt.s32.totalorder %s6126_s28, %s6126_s28 }
  0xdd   :  { %p6133_p8 = por %p6132_p7, %p6131_p6 }
  0xdf   :  { %p6134_p9 = pnand %p6133_p8, %p6127_p5 }
  0xe1   :  { %6137 = shalt.err (!%p6134_p9)
}
  0xe2   :  { %164 = dma.hbm_to_vmem [thread:$0]  %s7140_s16, 1024, %s159_s27, [#allocation18], %s6205_s11, %s6205_s11, %s6206_s29  }
  0xe3   :  { %6182 = dma.done.wait [#allocation3], 256  }
  0xe4   :  { %6183 = vsyncadd [#allocation3], 4294967040 }
  0xe5   :  { %6184 = dma.done.wait [#allocation6], 144  }
  0xe6   :  { %6185 = vsyncadd [#allocation6], 4294967152 }
  0xe7   :  { %6186 = dma.done.wait [#allocation9], 32  }
  0xe8   :  { %6187 = vsyncadd [#allocation9], 4294967264 }
  0xe9   :  { %6188 = dma.done.wait [#allocation12], 64  }
  0xea   :  { %6189 = vsyncadd [#allocation12], 4294967232 }
  0xeb   :  { %6190 = dma.done.wait [#allocation15], 64  }
  0xec   :  { %6191 = vsyncadd [#allocation15], 4294967232 }
  0xed   :  { %6192 = dma.done.wait [#allocation18], 1024  }
  0xee   :  { %6193 = vsyncadd [#allocation18], 4294966272  ;;  %v209_v0 = vld [vmem:[#allocation2] sm:$0xff]  ;;  %vm222_vm0 = vcmask 261120   ;;  %v307_v1 = vld [vmem:[#allocation5] sm:$0xff]  ;;  %s7186_s2 = sld [smem:[#allocation32_spill]] }
  0xef   :  { %v210_v2 = vld [vmem:[#allocation2 + $0x8] sm:$0xff]  ;;  %v308_v3 = vadd.f32 %v307_v1, %v209_v0  ;;  %5333 = vmatprep.mubr.msk.f32.mxu0 %vm222_vm0, %v209_v0  ;;  %s7187_s30 = sld [smem:[#allocation36_spill]]  ;;  %s7188_s13 = sld [smem:[#allocation38_spill]]  ;;  %v363_v35 = vld [vmem:[%s7134_s10] sm:$0xff]  ;;  %v5010_v45 = vld [vmem:[#allocation8] ss:$0 sm:$0xff] }
  0xf0   :  { %v309_v4 = vadd.f32 %v307_v1, %v210_v2  ;;  %v364_v36 = vld [vmem:[%s7134_s10 + $0x8] sm:$0xff]  ;;  %v5011_v47 = vld [vmem:[#allocation10] ss:$0 sm:$0xff]  ;;  %v365_v52 = vld [vmem:[%s7134_s10 + $0x10] sm:$0xff]  ;;  %vm304_vm1 = vcmask 130048   ;;  %v6212_v62 = vmov 0.0  }
  0xf1   :  { %v312_v5 = vsel %vm222_vm0, %v308_v3, 0.0  ;;  %v5697_v37 = vpack.c.bf16 %v364_v36, %v363_v35  ;;  %v366_v53 = vld [vmem:[%s7134_s10 + $0x18] sm:$0xff]  ;;  %vm6213_vm2 = vmmov 0   ;;  %v5015_v63 = vld [vmem:[#allocation13] ss:$0 sm:$0xff]  ;;  %vm623_vm3 = vcmask 64512  }
  0xf2   :  { %313 = vadd.xlane.f32.xlu0 %v312_v5  ;;  %v315_v6 = vsel %vm222_vm0, %v309_v4, 0.0  ;;  %v5701_v56 = vpack.c.bf16 %v366_v53, %v365_v52  ;;  %v5007_v57 = vld [vmem:[#allocation7] ss:$0 sm:$0xff]  ;;  %s6214_s5 = smov 120   ;;  %s6216_s8 = smov 104   ;;  %vm2480_vm6 = vcmask 523264  }
  0xf3   :  { %s6217_s23 = smov [#allocation19]  }
  0xf4   :  { %v211_v17 = vld [vmem:[%s7186_s2] sm:$0xff]  ;;  %v212_v18 = vld [vmem:[%s7186_s2 + $0x8] sm:$0xff]  ;;  %v213_v20 = vld [vmem:[%s7186_s2 + $0x10] sm:$0xff]  ;;  %s4974_s27 = sshll.u32 %s6217_s23, 4  ;;  %s4975_s27 = int_to_ptr.vmem [resolvable:$true] %s4974_s27 }
  0xf5   :  { %v5673_v19 = vpack.c.bf16 %v212_v18, %v211_v17  ;;  %v214_v21 = vld [vmem:[%s7186_s2 + $0x18] sm:$0xff]  ;;  %v355_v22 = vld [vmem:[%s7187_s30] sm:$0xff]  ;;  %v356_v24 = vld [vmem:[%s7187_s30 + $0x8] sm:$0xff]  ;;  %s6215_s2 = smov 112   ;;  %s6138_s25 = scalar_lea.vmem %s4975_s27, 256 }
  0xf6   :  { %316 = vadd.xlane.f32.xlu0 %v315_v6  ;;  %v5677_v23 = vpack.c.bf16 %v214_v21, %v213_v20  ;;  %v359_v25 = vld [vmem:[%s7188_s13] sm:$0xff]  ;;  %v360_v26 = vld [vmem:[%s7188_s13 + $0x8] sm:$0xff]  ;;  %v5681_v27 = vpack.c.bf16 %v356_v24, %v355_v22  ;;  %v357_v28 = vld [vmem:[%s7187_s30 + $0x10] sm:$0xff]  ;;  %p6139_p10 = scmp.ne.s32.totalorder %s4975_s27, %s6138_s25  ;;  %p6143_p11 = scmp.lt.s32.totalorder %s4975_s27, %s4975_s27 }
  0xf7   :  { %5674 = vmatprep.subr.bf16.mxu0 %v5673_v19  ;;  %v358_v29 = vld [vmem:[%s7187_s30 + $0x18] sm:$0xff]  ;;  %v5689_v30 = vpack.c.bf16 %v360_v26, %v359_v25  ;;  %v361_v32 = vld [vmem:[%s7188_s13 + $0x10] sm:$0xff]  ;;  %p6144_p12 = scmp.lt.s32.totalorder %s6138_s25, %s6138_s25 }
  0xf8   :  { %5676 = vmatpush3.bf16.msra.mxu0 %v5673_v19  ;;  %v5685_v31 = vpack.c.bf16 %v358_v29, %v357_v28  ;;  %5682 = vmatprep.subr.bf16.mxu1 %v5681_v27  ;;  %v362_v33 = vld [vmem:[%s7188_s13 + $0x18] sm:$0xff] }
  0xf9   :  { %5678 = vmatprep.subr.bf16.mxu0 %v5677_v23  ;;  %5684 = vmatpush3.bf16.msra.mxu1 %v5681_v27  ;;  %v5693_v34 = vpack.c.bf16 %v362_v33, %v361_v32  ;;  %p6145_p13 = por %p6144_p12, %p6143_p11 }
  0xfa   :  { %5686 = vmatprep.subr.bf16.mxu1 %v5685_v31 }
  0xfb   :  { %p6146_p0 = pnand %p6145_p13, %p6139_p10 }
  0xfc   :  { %5680 = vmatpush3.bf16.msra.mxu0 %v5677_v23 }
  0xfd   :  { %5690 = vmatprep.subr.bf16.mxu0 %v5689_v30  ;;  %5688 = vmatpush3.bf16.msra.mxu1 %v5685_v31 }
  0xfe   :  { %5698 = vmatprep.subr.bf16.mxu1 %v5697_v37 }
  0xff   :  { %5334 = vmatmul.mubr.msk.f32.vlgmr.msra.gmra.mrb[0].mxu0 %vm222_vm0, %v210_v2 }
 0x100   :  { %5692 = vmatpush3.bf16.msra.mxu0 %v5689_v30 }
 0x101   :  { %5694 = vmatprep.subr.bf16.mxu0 %v5693_v34 }
 0x104   :  { %5696 = vmatpush3.bf16.msra.mxu0 %v5693_v34 }
 0x105   :  { %5379 = vmatprep.subr.mxu0 %v6212_v62 }
 0x17f   :  { %v314_v7 = vpop.xlane.xlu0 %313 }
 0x180   :  { %v319_v8 = vmul.f32 0.03125, %v314_v7 }
 0x182   :  { %v321_v9 = vsub.f32 %v308_v3, %v319_v8  ;;  %v5018_v8 = vld [vmem:[#allocation14] ss:$0 sm:$0xff] }
 0x183   :  { %v317_v10 = vpop.xlane.xlu0 %316 }
 0x184   :  { %v320_v11 = vmul.f32 0.03125, %v317_v10  ;;  %v323_v12 = vmul.f32 %v321_v9, %v321_v9 }
 0x186   :  { %v322_v13 = vsub.f32 %v309_v4, %v320_v11  ;;  %v325_v14 = vsel %vm222_vm0, %v323_v12, 0.0  ;;  %v5012_v4 = vld [vmem:[#allocation11] ss:$0 sm:$0xff] }
 0x187   :  { %326 = vadd.xlane.f32.xlu1 %v325_v14 }
 0x188   :  { %v324_v15 = vmul.f32 %v322_v13, %v322_v13 }
 0x18a   :  { %v328_v16 = vsel %vm222_vm0, %v324_v15, 0.0 }
 0x18b   :  { %329 = vadd.xlane.f32.xlu1 %v328_v16 }
 0x1d2   :  { %v5335_v58 = vpop.f32.mrb[0].mxu0 }
 0x1d3   :  { %v295_v59 = vpop.f32.mrb[1].mxu0  ;;  %v301_v60 = vadd.f32 %v5335_v58, %v5007_v57 }
 0x1d4   :  { %v296_v61 = vadd.f32 %v5007_v57, %v295_v59 }
 0x1d5   :  { %306 = vst.msk [vmem:[#allocation19 + $0x8] sm:$0xff] %vm304_vm1, %v301_v60 }
 0x1d6   :  { %305 = vst.msk [vmem:[#allocation19] sm:$0xff] %vm304_vm1, %v296_v61 }
 0x214   :  { %v327_v38 = vpop.xlane.xlu1 %326 }
 0x215   :  { %v331_v39 = vmul.f32 0.03125, %v327_v38 }
 0x217   :  { %v333_v40 = vadd.f32 1e-12, %v331_v39 }
 0x218   :  { %v330_v41 = vpop.xlane.xlu1 %329 }
 0x219   :  { %5818 = vrsqrt.f32 %v333_v40  ;;  %v332_v42 = vmul.f32 0.03125, %v330_v41 }
 0x21b   :  { %v334_v43 = vadd.f32 1e-12, %v332_v42 }
 0x21d   :  { %5820 = vrsqrt.f32 %v334_v43 }
 0x223   :  { %v5819_v44 = vpop.eup %5818 }
 0x224   :  { %v337_v46 = vmul.f32 %v5819_v44, %v321_v9 }
 0x226   :  { %v345_v48 = vmul.f32 %v5010_v45, %v337_v46 }
 0x227   :  { %v5821_v49 = vpop.eup %5820 }
 0x228   :  { %v6535_v50 = vadd.f32 %v5011_v47, %v345_v48  ;;  %v338_v51 = vmul.f32 %v5821_v49, %v322_v13 }
 0x22a   :  { %5344 = vmatprep.mubr.msk.f32.mxu1 %vm222_vm0, %v6535_v50  ;;  %5355 = vmatprep.mubr.msk.f32.mxu0 %vm222_vm0, %v6535_v50  ;;  %v346_v54 = vmul.f32 %v5010_v45, %v338_v51 }
 0x22c   :  { %v6547_v55 = vadd.f32 %v5011_v47, %v346_v54 }
 0x22e   :  { %5345 = vmatmul.mubr.msk.f32.vlgmr.msra.gmra.mrb[0].mxu1 %vm222_vm0, %v6547_v55  ;;  %5356 = vmatmul.mubr.msk.f32.vlgmr.msra.gmra.mrb[2].mxu0 %vm222_vm0, %v6547_v55 }
 0x22f   :  { %5700 = vmatpush3.bf16.msra.mxu1 %v5697_v37  ;;  %5366 = vmatprep.mubr.msk.f32.mxu1 %vm222_vm0, %v6535_v50 }
 0x230   :  { %5702 = vmatprep.subr.bf16.mxu1 %v5701_v56  ;;  %5381 = vmatprep.mubr.msk.f32.mxu0 %vm6213_vm2, %v6212_v62 }
 0x233   :  { %5704 = vmatpush3.bf16.msra.mxu1 %v5701_v56 }
 0x234   :  { %5369 = vmatprep.subr.mxu1 %v6212_v62 }
 0x236   :  { %5367 = vmatmul.mubr.msk.f32.vlgmr.msra.gmra.mrb[2].mxu1 %vm222_vm0, %v6547_v55 }
 0x237   :  { %5371 = vmatprep.mubr.msk.f32.mxu1 %vm6213_vm2, %v6212_v62 }
 0x301   :  { %v5346_v0 = vpop.f32.mrb[0].mxu1  ;;  %v5357_v1 = vpop.f32.mrb[2].mxu0 }
 0x302   :  { %v450_v2 = vpop.f32.mrb[1].mxu1  ;;  %v532_v3 = vpop.f32.mrb[3].mxu0  ;;  %v6572_v7 = vadd.f32 %v5357_v1, %v5015_v63  ;;  %v6580_v10 = vadd.f32 %v5346_v0, %v5012_v4 }
 0x303   :  { %v6565_v5 = vadd.f32 %v5015_v63, %v532_v3  ;;  %v6569_v6 = vadd.f32 %v5012_v4, %v450_v2 }
 0x305   :  { %5370 = vmatpush3.xpose.msk.msra.mxu1 %vm623_vm3, %v6565_v5 }
 0x306   :  { %5374 = vmatprep.subr.mxu1 %v6212_v62 }
 0x308   :  { %5372 = vmatmul.mubr.msk.f32.vlgmr.msra.gmra.mrb[4].mxu1 %vm623_vm3, %v6569_v6 }
 0x309   :  { %v5368_v9 = vpop.f32.mrb[2].mxu1  ;;  %5375 = vmatpush3.xpose.msk.msra.mxu1 %vm623_vm3, %v6572_v7  ;;  %5376 = vmatprep.mubr.msk.f32.mxu1 %vm6213_vm2, %v6212_v62 }
 0x30a   :  { %v614_v11 = vpop.f32.mrb[3].mxu1  ;;  %5384 = vmatprep.subr.mxu1 %v6212_v62  ;;  %v6583_v12 = vadd.f32 %v5368_v9, %v5018_v8 }
 0x30b   :  { %v6585_v13 = vadd.f32 %v5018_v8, %v614_v11 }
 0x30c   :  { %5377 = vmatmul.mubr.msk.f32.vlgmr.msra.gmra.mrb[6].mxu1 %vm623_vm3, %v6580_v10 }
 0x30d   :  { %5380 = vmatpush3.msra.mxu0 %v6585_v13  ;;  %5385 = vmatpush3.msra.mxu1 %v6583_v12 }
 0x30e   :  { %5386 = vmatprep.mubr.msk.f32.mxu1 %vm6213_vm2, %v6212_v62  ;;  %5394 = vmatprep.subr.mxu1 %v6212_v62 }
 0x30f   :  { %5389 = vmatprep.subr.mxu0 %v6212_v62 }
 0x3db   :  { %v696_v14 = vpop.f32.mrb[4].mxu1 }
 0x3dc   :  { %v5373_v15 = vpop.f32.mrb[5].mxu1  ;;  %v776_v24 = vsel %vm623_vm3, %v696_v14, -inf }
 0x3df   :  { %v772_v16 = vpop.f32.mrb[6].mxu1 }
 0x3e0   :  { %v5378_v17 = vpop.f32.mrb[7].mxu1  ;;  %v779_v18 = vsel %vm623_vm3, %v772_v16, -inf }
 0x3e1   :  { %780 = vmax.xlane.f32.xlu0 %v779_v18 }
 0x3f7   :  { %1024 = vrot.lane.b32.xlu0 %v6572_v7, %s6214_s5 }
 0x46e   :  { %v781_v19 = vpop.xlane.xlu0 %780 }
 0x46f   :  { %v783_v20 = vsub.f32 %v772_v16, %v781_v19 }
 0x471   :  { %v786_v21 = vmul.f32 1.442695, %v783_v20 }
 0x472   :  { %v1025_v28 = vpop.permute.xlu0 %1024 }
 0x473   :  { %5822 = vpow2.f32 %v786_v21 }
 0x47d   :  { %v5823_v22 = vpop.eup %5822 }
 0x47e   :  { %v791_v23 = vsel %vm623_vm3, %v5823_v22, 0.0 }
 0x47f   :  { %792 = vadd.xlane.f32.xlu1 %v791_v23  ;;  %v368_v23 = vld [vmem:[%s7136_s12 + $0x8] sm:$0xff] }
 0x490   :  { %1022 = vrot.lane.b32.xlu1 %v6580_v10, %s6214_s5 }
 0x4b4   :  { %777 = vmax.xlane.f32.xlu1 %v776_v24  ;;  %v367_v24 = vld [vmem:[%s7136_s12] sm:$0xff] }
 0x4c5   :  { %944 = vrot.lane.b32.xlu1 %v6569_v6, %s6214_s5 }
 0x50c   :  { %v793_v25 = vpop.xlane.xlu1 %792 }
 0x50d   :  { %5824 = vrcp.f32 %v793_v25 }
 0x510   :  { %v1023_v29 = vpop.permute.xlu1 %1022 }
 0x517   :  { %v5825_v26 = vpop.eup %5824 }
 0x518   :  { %v797_v27 = vmul.f32 %v5825_v26, %v5823_v22 }
 0x51a   :  { %5387 = vmatmul.mubr.msk.f32.vlgmr.msra.gmra.mrb[8].mxu1 %vm623_vm3, %v797_v27 }
 0x51b   :  { %5395 = vmatpush3.xpose.msk.msra.mxu1 %vm623_vm3, %v1025_v28  ;;  %5396 = vmatprep.mubr.msk.f32.mxu1 %vm6213_vm2, %v6212_v62 }
 0x51c   :  { %5404 = vmatprep.subr.mxu1 %v6212_v62 }
 0x51e   :  { %5397 = vmatmul.mubr.msk.f32.vlgmr.msra.gmra.mrb[10].mxu1 %vm623_vm3, %v1023_v29 }
 0x51f   :  { %5406 = vmatprep.mubr.msk.f32.mxu1 %vm6213_vm2, %v6212_v62 }
 0x541   :  { %v778_v30 = vpop.xlane.xlu1 %777 }
 0x542   :  { %v782_v31 = vsub.f32 %v696_v14, %v778_v30 }
 0x544   :  { %v784_v32 = vmul.f32 1.442695, %v782_v31 }
 0x545   :  { %v945_v41 = vpop.permute.xlu1 %944 }
 0x546   :  { %5826 = vpow2.f32 %v784_v32 }
 0x550   :  { %v5827_v33 = vpop.eup %5826 }
 0x551   :  { %v788_v34 = vsel %vm623_vm3, %v5827_v33, 0.0 }
 0x552   :  { %789 = vadd.xlane.f32.xlu0 %v788_v34 }
 0x568   :  { %946 = vrot.lane.b32.xlu0 %v6565_v5, %s6214_s5 }
 0x5df   :  { %v790_v35 = vpop.xlane.xlu0 %789 }
 0x5e0   :  { %5828 = vrcp.f32 %v790_v35 }
 0x5e3   :  { %v947_v38 = vpop.permute.xlu0 %946 }
 0x5ea   :  { %v5829_v36 = vpop.eup %5828 }
 0x5eb   :  { %v796_v37 = vmul.f32 %v5829_v36, %v5827_v33 }
 0x5ed   :  { %5382 = vmatmul.mubr.msk.f32.vlgmr.msra.gmra.mrb[4].mxu0 %vm623_vm3, %v796_v37  ;;  %v6616_v39 = vpop.f32.mrb[8].mxu1 }
 0x5ee   :  { %5390 = vmatpush3.xpose.msk.msra.mxu0 %vm623_vm3, %v947_v38  ;;  %v5388_v40 = vpop.f32.mrb[9].mxu1  ;;  %5391 = vmatprep.mubr.msk.f32.mxu0 %vm6213_vm2, %v6212_v62  ;;  %v369_v38 = vld [vmem:[%s7136_s12 + $0x10] sm:$0xff] }
 0x5ef   :  { %5399 = vmatprep.subr.mxu0 %v6212_v62 }
 0x5f1   :  { %5392 = vmatmul.mubr.msk.f32.vlgmr.msra.gmra.mrb[6].mxu0 %vm623_vm3, %v945_v41  ;;  %v1096_v42 = vpop.f32.mrb[10].mxu1 }
 0x5f2   :  { %v5398_v43 = vpop.f32.mrb[11].mxu1  ;;  %v1103_v44 = vsel %vm623_vm3, %v1096_v42, -inf  ;;  %5401 = vmatprep.mubr.msk.f32.mxu0 %vm6213_vm2, %v6212_v62 }
 0x5f3   :  { %1104 = vmax.xlane.f32.xlu1 %v1103_v44 }
 0x604   :  { %1440 = vrot.lane.b32.xlu1 %v6565_v5, %s6215_s2 }
 0x608   :  { %1438 = vrot.lane.b32.xlu1 %v6569_v6, %s6215_s2 }
 0x60c   :  { %1518 = vrot.lane.b32.xlu1 %v6572_v7, %s6215_s2 }
 0x680   :  { %v1105_v45 = vpop.xlane.xlu1 %1104 }
 0x681   :  { %v1107_v46 = vsub.f32 %v1096_v42, %v1105_v45 }
 0x683   :  { %v1110_v47 = vmul.f32 1.442695, %v1107_v46 }
 0x684   :  { %v1441_v59 = vpop.permute.xlu1 %1440 }
 0x685   :  { %5830 = vpow2.f32 %v1110_v47 }
 0x688   :  { %v1439_v61 = vpop.permute.xlu1 %1438 }
 0x68c   :  { %v1519_v0 = vpop.permute.xlu1 %1518 }
 0x68f   :  { %v5831_v48 = vpop.eup %5830 }
 0x690   :  { %v1115_v49 = vsel %vm623_vm3, %v5831_v48, 0.0 }
 0x691   :  { %1116 = vadd.xlane.f32.xlu0 %v1115_v49 }
 0x6a7   :  { %1200 = vrot.lane.b32.xlu0 %v6583_v12, %s6214_s5 }
 0x6ab   :  { %1516 = vrot.lane.b32.xlu0 %v6580_v10, %s6215_s2 }
 0x6c0   :  { %v6637_v51 = vpop.f32.mrb[4].mxu0 }
 0x6c1   :  { %v5383_v52 = vpop.f32.mrb[5].mxu0 }
 0x6c4   :  { %v1018_v53 = vpop.f32.mrb[6].mxu0 }
 0x6c5   :  { %v5393_v54 = vpop.f32.mrb[7].mxu0  ;;  %v1100_v56 = vsel %vm623_vm3, %v1018_v53, -inf }
 0x6c6   :  { %1101 = vmax.xlane.f32.xlu1 %v1100_v56 }
 0x71e   :  { %v1117_v57 = vpop.xlane.xlu0 %1116 }
 0x71f   :  { %5832 = vrcp.f32 %v1117_v57 }
 0x722   :  { %v1201_v58 = vpop.permute.xlu0 %1200 }
 0x723   :  { %5405 = vmatpush3.msra.mxu1 %v1201_v58 }
 0x724   :  { %5419 = vmatprep.subr.mxu1 %v6212_v62 }
 0x726   :  { %v1517_v1 = vpop.permute.xlu0 %1516 }
 0x729   :  { %v5833_v60 = vpop.eup %5832 }
 0x72a   :  { %v1121_v63 = vmul.f32 %v5833_v60, %v5831_v48 }
 0x72c   :  { %5407 = vmatmul.mubr.msk.f32.vlgmr.msra.gmra.mrb[12].mxu1 %vm623_vm3, %v1121_v63 }
 0x72d   :  { %5420 = vmatpush3.xpose.msk.msra.mxu1 %vm623_vm3, %v1441_v59  ;;  %5421 = vmatprep.mubr.msk.f32.mxu1 %vm6213_vm2, %v6212_v62 }
 0x72e   :  { %5424 = vmatprep.subr.mxu1 %v6212_v62 }
 0x730   :  { %5422 = vmatmul.mubr.msk.f32.vlgmr.msra.gmra.mrb[14].mxu1 %vm623_vm3, %v1439_v61 }
 0x731   :  { %5425 = vmatpush3.xpose.msk.msra.mxu1 %vm623_vm3, %v1519_v0  ;;  %5426 = vmatprep.mubr.msk.f32.mxu1 %vm6213_vm2, %v6212_v62 }
 0x732   :  { %5434 = vmatprep.subr.mxu1 %v6212_v62 }
 0x734   :  { %5427 = vmatmul.mubr.msk.f32.vlgmr.msra.gmra.mrb[16].mxu1 %vm623_vm3, %v1517_v1 }
 0x735   :  { %5436 = vmatprep.mubr.msk.f32.mxu1 %vm6213_vm2, %v6212_v62 }
 0x753   :  { %v1102_v2 = vpop.xlane.xlu1 %1101 }
 0x754   :  { %v1106_v3 = vsub.f32 %v1018_v53, %v1102_v2 }
 0x756   :  { %v1108_v4 = vmul.f32 1.442695, %v1106_v3 }
 0x758   :  { %5834 = vpow2.f32 %v1108_v4 }
 0x762   :  { %v5835_v8 = vpop.eup %5834 }
 0x763   :  { %v1112_v9 = vsel %vm623_vm3, %v5835_v8, 0.0 }
 0x764   :  { %1113 = vadd.xlane.f32.xlu0 %v1112_v9 }
 0x77a   :  { %1123 = vrot.lane.b32.xlu0 %v6585_v13, %s6214_s5 }
 0x77e   :  { %1692 = vrot.lane.b32.xlu0 %v6583_v12, %s6215_s2 }
 0x782   :  { %1853 = vrot.lane.b32.xlu0 %v6565_v5, %s6216_s8 }
 0x786   :  { %1931 = vrot.lane.b32.xlu0 %v6572_v7, %s6216_s8 }
 0x78a   :  { %1851 = vrot.lane.b32.xlu0 %v6569_v6, %s6216_s8 }
 0x7f1   :  { %v1114_v11 = vpop.xlane.xlu0 %1113 }
 0x7f2   :  { %5836 = vrcp.f32 %v1114_v11 }
 0x7f5   :  { %v1124_v14 = vpop.permute.xlu0 %1123 }
 0x7f6   :  { %5400 = vmatpush3.msra.mxu0 %v1124_v14 }
 0x7f7   :  { %5409 = vmatprep.subr.mxu0 %v368_v23 }
 0x7f9   :  { %v1693_v15 = vpop.permute.xlu0 %1692 }
 0x7fa   :  { %5435 = vmatpush3.msra.mxu1 %v1693_v15 }
 0x7fb   :  { %5444 = vmatprep.subr.mxu1 %v6212_v62 }
 0x7fc   :  { %v5837_v16 = vpop.eup %5836 }
 0x7fd   :  { %v1120_v17 = vmul.f32 %v5837_v16, %v5835_v8  ;;  %v1854_v41 = vpop.permute.xlu0 %1853 }
 0x7ff   :  { %5402 = vmatmul.mubr.msk.f32.vlgmr.msra.gmra.mrb[8].mxu0 %vm623_vm3, %v1120_v17  ;;  %v1272_v18 = vpop.f32.mrb[12].mxu1 }
 0x800   :  { %v5408_v5 = vpop.f32.mrb[13].mxu1  ;;  %5410 = vmatpush3.msra.mxu0 %v368_v23 }
 0x801   :  { %5414 = vmatprep.subr.mxu0 %v367_v24  ;;  %v1932_v44 = vpop.permute.xlu0 %1931 }
 0x803   :  { %v1512_v19 = vpop.f32.mrb[14].mxu1 }
 0x804   :  { %v5423_v20 = vpop.f32.mrb[15].mxu1  ;;  %v1594_v7 = vsel %vm623_vm3, %v1512_v19, -inf }
 0x805   :  { %1595 = vmax.xlane.f32.xlu1 %v1594_v7  ;;  %v1852_v46 = vpop.permute.xlu0 %1851 }
 0x807   :  { %v1590_v6 = vpop.f32.mrb[16].mxu1 }
 0x808   :  { %v5428_v21 = vpop.f32.mrb[17].mxu1  ;;  %v1597_v22 = vsel %vm623_vm3, %v1590_v6, -inf }
 0x809   :  { %1598 = vmax.xlane.f32.xlu1 %v1597_v22  ;;  %v5053_v21 = vld [vmem:[#allocation16] ss:$0 sm:$0xff] }
 0x892   :  { %v1596_v25 = vpop.xlane.xlu1 %1595 }
 0x893   :  { %v1600_v26 = vsub.f32 %v1512_v19, %v1596_v25  ;;  %v370_v19 = vld [vmem:[%s7136_s12 + $0x18] sm:$0xff] }
 0x895   :  { %v1602_v27 = vmul.f32 1.442695, %v1600_v26 }
 0x896   :  { %v1599_v28 = vpop.xlane.xlu1 %1598 }
 0x897   :  { %5838 = vpow2.f32 %v1602_v27  ;;  %v1601_v29 = vsub.f32 %v1590_v6, %v1599_v28 }
 0x899   :  { %v1604_v30 = vmul.f32 1.442695, %v1601_v29 }
 0x89b   :  { %5840 = vpow2.f32 %v1604_v30 }
 0x8a1   :  { %v5839_v31 = vpop.eup %5838 }
 0x8a2   :  { %v1606_v32 = vsel %vm623_vm3, %v5839_v31, 0.0 }
 0x8a3   :  { %1607 = vadd.xlane.f32.xlu1 %v1606_v32 }
 0x8a5   :  { %v5841_v33 = vpop.eup %5840 }
 0x8a6   :  { %v1609_v34 = vsel %vm623_vm3, %v5841_v33, 0.0 }
 0x8a7   :  { %1610 = vadd.xlane.f32.xlu1 %v1609_v34 }
 0x8b8   :  { %1616 = vrot.lane.b32.xlu1 %v6585_v13, %s6215_s2 }
 0x8bc   :  { %1929 = vrot.lane.b32.xlu1 %v6580_v10, %s6216_s8 }
 0x8d2   :  { %v1195_v35 = vpop.f32.mrb[8].mxu0 }
 0x8d3   :  { %v5403_v36 = vpop.f32.mrb[9].mxu0  ;;  %5411 = vmatprep.mubr.msk.f32.mxu0 %vm623_vm3, %v1195_v35 }
 0x8d4   :  { %5412 = vmatmul.mubr.msk.f32.vlgmr.msra.gmra.mrb[10].mxu0 %vm623_vm3, %v1272_v18 }
 0x8d5   :  { %5416 = vmatprep.mubr.msk.f32.mxu0 %vm623_vm3, %v6637_v51  ;;  %5415 = vmatpush3.msra.mxu0 %v367_v24 }
 0x8d6   :  { %5429 = vmatprep.subr.mxu0 %v6212_v62 }
 0x8dc   :  { %5417 = vmatmul.mubr.msk.f32.vlgmr.msra.gmra.mrb[10].mxu0 %vm623_vm3, %v6616_v39 }
 0x8dd   :  { %5431 = vmatprep.mubr.msk.f32.mxu0 %vm6213_vm2, %v6212_v62 }
 0x930   :  { %v1608_v37 = vpop.xlane.xlu1 %1607 }
 0x931   :  { %5842 = vrcp.f32 %v1608_v37 }
 0x934   :  { %v1611_v10 = vpop.xlane.xlu1 %1610 }
 0x935   :  { %5844 = vrcp.f32 %v1611_v10 }
 0x938   :  { %v1617_v40 = vpop.permute.xlu1 %1616 }
 0x939   :  { %5430 = vmatpush3.msra.mxu0 %v1617_v40 }
 0x93a   :  { %5439 = vmatprep.subr.mxu0 %v369_v38 }
 0x93b   :  { %v5843_v42 = vpop.eup %5842 }
 0x93c   :  { %v1614_v43 = vmul.f32 %v5843_v42, %v5839_v31  ;;  %v1930_v52 = vpop.permute.xlu1 %1929  ;;  %v2322_v42 = vld [vmem:[#allocation17 + $0x18] sm:$0xff] }
 0x93e   :  { %5432 = vmatmul.mubr.msk.f32.vlgmr.msra.gmra.mrb[12].mxu0 %vm623_vm3, %v1614_v43 }
 0x93f   :  { %v5845_v39 = vpop.eup %5844  ;;  %5440 = vmatpush3.msra.mxu0 %v369_v38  ;;  %v2320_v38 = vld [vmem:[#allocation17 + $0x8] sm:$0xff] }
 0x940   :  { %v1615_v45 = vmul.f32 %v5845_v39, %v5841_v33  ;;  %5449 = vmatprep.subr.mxu0 %v6212_v62 }
 0x942   :  { %5437 = vmatmul.mubr.msk.f32.vlgmr.msra.gmra.mrb[18].mxu1 %vm623_vm3, %v1615_v45 }
 0x943   :  { %5445 = vmatpush3.xpose.msk.msra.mxu1 %vm623_vm3, %v1854_v41  ;;  %5446 = vmatprep.mubr.msk.f32.mxu1 %vm6213_vm2, %v6212_v62  ;;  %v2321_v41 = vld [vmem:[#allocation17 + $0x10] sm:$0xff] }
 0x944   :  { %5454 = vmatprep.subr.mxu1 %v6212_v62  ;;  %v5709_v43 = vpack.c.bf16 %v2322_v42, %v2321_v41 }
 0x946   :  { %5447 = vmatmul.mubr.msk.f32.vlgmr.msra.gmra.mrb[20].mxu1 %vm623_vm3, %v1852_v46 }
 0x947   :  { %5456 = vmatprep.mubr.msk.f32.mxu1 %vm6213_vm2, %v6212_v62 }
 0xa11   :  { %v1688_v47 = vpop.f32.mrb[12].mxu0 }
 0xa12   :  { %v5433_v48 = vpop.f32.mrb[13].mxu0  ;;  %5441 = vmatprep.mubr.msk.f32.mxu0 %vm623_vm3, %v1688_v47 }
 0xa15   :  { %v1764_v49 = vpop.f32.mrb[18].mxu1 }
 0xa16   :  { %v5438_v51 = vpop.f32.mrb[19].mxu1  ;;  %5442 = vmatmul.mubr.msk.f32.vlgmr.msra.gmra.mrb[10].mxu0 %vm623_vm3, %v1764_v49 }
 0xa17   :  { %5450 = vmatpush3.xpose.msk.msra.mxu0 %vm623_vm3, %v1932_v44  ;;  %5451 = vmatprep.mubr.msk.f32.mxu0 %vm6213_vm2, %v6212_v62  ;;  %v5054_v51 = vld [vmem:[%s7138_s14] ss:$0 sm:$0xff] }
 0xa18   :  { %5459 = vmatprep.subr.mxu0 %v6212_v62 }
 0xa19   :  { %v1925_v53 = vpop.f32.mrb[20].mxu1 }
 0xa1a   :  { %v5448_v54 = vpop.f32.mrb[21].mxu1  ;;  %5452 = vmatmul.mubr.msk.f32.vlgmr.msra.gmra.mrb[14].mxu0 %vm623_vm3, %v1930_v52  ;;  %v2007_v56 = vsel %vm623_vm3, %v1925_v53, -inf }
 0xa1b   :  { %2008 = vmax.xlane.f32.xlu0 %v2007_v56  ;;  %5461 = vmatprep.mubr.msk.f32.mxu0 %vm6213_vm2, %v6212_v62  ;;  %v5055_v56 = vld [vmem:[%s7139_s15] ss:$0 sm:$0xff] }
 0xaa8   :  { %v2009_v57 = vpop.xlane.xlu0 %2008 }
 0xaa9   :  { %v2013_v58 = vsub.f32 %v1925_v53, %v2009_v57 }
 0xaab   :  { %v2015_v59 = vmul.f32 1.442695, %v2013_v58 }
 0xaad   :  { %5846 = vpow2.f32 %v2015_v59 }
 0xab7   :  { %v5847_v60 = vpop.eup %5846 }
 0xab8   :  { %v2019_v61 = vsel %vm623_vm3, %v5847_v60, 0.0 }
 0xab9   :  { %2020 = vadd.xlane.f32.xlu0 %v2019_v61  ;;  %v2465_v61 = vld [vmem:[%s7142_s18] sm:$0xff] }
 0xaed   :  { %v2003_v63 = vpop.f32.mrb[14].mxu0 }
 0xaee   :  { %v5453_v0 = vpop.f32.mrb[15].mxu0  ;;  %v2010_v1 = vsel %vm623_vm3, %v2003_v63, -inf }
 0xaef   :  { %2011 = vmax.xlane.f32.xlu1 %v2010_v1  ;;  %v2467_v1 = vld [vmem:[%s7142_s18 + $0x10] sm:$0xff] }
 0xb00   :  { %2105 = vrot.lane.b32.xlu1 %v6583_v12, %s6216_s8 }
 0xb46   :  { %v2021_v14 = vpop.xlane.xlu0 %2020 }
 0xb7c   :  { %v2012_v2 = vpop.xlane.xlu1 %2011 }
 0xb7d   :  { %v2014_v3 = vsub.f32 %v2003_v63, %v2012_v2  ;;  %v2466_v63 = vld [vmem:[%s7142_s18 + $0x8] sm:$0xff]  ;;  %v2468_v2 = vld [vmem:[%s7142_s18 + $0x18] sm:$0xff] }
 0xb7e   :  { %v5713_v0 = vpack.c.bf16 %v2466_v63, %v2465_v61 }
 0xb7f   :  { %v2017_v4 = vmul.f32 1.442695, %v2014_v3  ;;  %v5717_v3 = vpack.c.bf16 %v2468_v2, %v2467_v1 }
 0xb80   :  { %v2106_v8 = vpop.permute.xlu1 %2105 }
 0xb81   :  { %5848 = vpow2.f32 %v2017_v4  ;;  %5460 = vmatpush3.msra.mxu0 %v2106_v8  ;;  %v2469_v4 = vld [vmem:[%s7142_s18 + $0x20] sm:$0xff]  ;;  %v2470_v8 = vld [vmem:[%s7142_s18 + $0x28] sm:$0xff] }
 0xb82   :  { %5850 = vrcp.f32 %v2021_v14  ;;  %5464 = vmatprep.subr.mxu0 %v370_v19  ;;  %v2472_v14 = vld [vmem:[%s7142_s18 + $0x38] sm:$0xff] }
 0xb8b   :  { %v5849_v9 = vpop.eup %5848 }
 0xb8c   :  { %v2022_v11 = vsel %vm623_vm3, %v5849_v9, 0.0  ;;  %v5851_v16 = vpop.eup %5850 }
 0xb8d   :  { %2023 = vadd.xlane.f32.xlu0 %v2022_v11  ;;  %v2027_v17 = vmul.f32 %v5851_v16, %v5847_v60  ;;  %v2471_v11 = vld [vmem:[%s7142_s18 + $0x30] sm:$0xff]  ;;  %v5056_v16 = vld [vmem:[%s7141_s17] ss:$0 sm:$0xff] }
 0xba3   :  { %2029 = vrot.lane.b32.xlu0 %v6585_v13, %s6216_s8 }
 0xc1a   :  { %v2024_v15 = vpop.xlane.xlu0 %2023 }
 0xc1b   :  { %5852 = vrcp.f32 %v2024_v15  ;;  %v5725_v15 = vpack.c.bf16 %v2472_v14, %v2471_v11 }
 0xc1e   :  { %v2030_v12 = vpop.permute.xlu0 %2029 }
 0xc1f   :  { %5455 = vmatpush3.msra.mxu1 %v2030_v12 }
 0xc20   :  { %5457 = vmatmul.mubr.msk.f32.vlgmr.msra.gmra.mrb[22].mxu1 %vm623_vm3, %v2027_v17 }
 0xc25   :  { %v5853_v18 = vpop.eup %5852 }
 0xc26   :  { %v2028_v5 = vmul.f32 %v5853_v18, %v5849_v9  ;;  %v5721_v9 = vpack.c.bf16 %v2470_v8, %v2469_v4  ;;  %v5063_v4 = vld [vmem:[%s7143_s19] ss:$0 sm:$0xff] }
 0xc28   :  { %5462 = vmatmul.mubr.msk.f32.vlgmr.msra.gmra.mrb[16].mxu0 %vm623_vm3, %v2028_v5 }
 0xc29   :  { %5465 = vmatpush3.msra.mxu0 %v370_v19 }
 0xc2a   :  { %5714 = vmatprep.subr.bf16.mxu0 %v5713_v0 }
 0xcf3   :  { %v2101_v13 = vpop.f32.mrb[22].mxu1 }
 0xcf4   :  { %v5458_v20 = vpop.f32.mrb[23].mxu1  ;;  %5466 = vmatprep.mubr.msk.f32.mxu0 %vm623_vm3, %v2101_v13 }
 0xcfb   :  { %v2177_v7 = vpop.f32.mrb[16].mxu0 }
 0xcfc   :  { %v5463_v6 = vpop.f32.mrb[17].mxu0  ;;  %5467 = vmatmul.mubr.msk.f32.vlgmr.msra.gmra.mrb[10].mxu0 %vm623_vm3, %v2177_v7 }
 0xcfd   :  { %5716 = vmatpush3.bf16.msra.mxu0 %v5713_v0 }
 0xcfe   :  { %5718 = vmatprep.subr.bf16.mxu0 %v5717_v3 }
 0xd01   :  { %5720 = vmatpush3.bf16.msra.mxu0 %v5717_v3 }
 0xd02   :  { %5722 = vmatprep.subr.bf16.mxu0 %v5721_v9 }
 0xd05   :  { %5724 = vmatpush3.bf16.msra.mxu0 %v5721_v9 }
 0xd06   :  { %5726 = vmatprep.subr.bf16.mxu0 %v5725_v15 }
 0xd09   :  { %5728 = vmatpush3.bf16.msra.mxu0 %v5725_v15 }
 0xdcf   :  { %v5468_v22 = vpop.f32.mrb[10].mxu0 }
 0xdd0   :  { %v2272_v23 = vadd.f32 %v5468_v22, %v5053_v21  ;;  %v2253_v24 = vpop.f32.mrb[11].mxu0 }
 0xdd1   :  { %v2271_v25 = vadd.f32 %v5053_v21, %v2253_v24 }
 0xdd2   :  { %v2274_v26 = vadd.f32 %v2272_v23, %v6547_v55 }
 0xdd3   :  { %v2273_v27 = vadd.f32 %v2271_v25, %v6535_v50  ;;  %v2319_v50 = vld [vmem:[#allocation17] sm:$0xff] }
 0xdd4   :  { %v2280_v28 = vsel %vm222_vm0, %v2274_v26, 0.0  ;;  %v5705_v40 = vpack.c.bf16 %v2320_v38, %v2319_v50 }
 0xdd5   :  { %2281 = vadd.xlane.f32.xlu0 %v2280_v28  ;;  %v2277_v29 = vsel %vm222_vm0, %v2273_v27, 0.0 }
 0xdd6   :  { %2278 = vadd.xlane.f32.xlu1 %v2277_v29  ;;  %5706 = vmatprep.subr.bf16.mxu1 %v5705_v40 }
 0xdd7   :  { %5708 = vmatpush3.bf16.msra.mxu1 %v5705_v40 }
 0xdd8   :  { %5710 = vmatprep.subr.bf16.mxu1 %v5709_v43 }
 0xddb   :  { %5712 = vmatpush3.bf16.msra.mxu1 %v5709_v43 }
 0xe62   :  { %v2282_v30 = vpop.xlane.xlu0 %2281 }
 0xe63   :  { %v2284_v31 = vmul.f32 0.03125, %v2282_v30  ;;  %v2279_v32 = vpop.xlane.xlu1 %2278 }
 0xe64   :  { %v2283_v33 = vmul.f32 0.03125, %v2279_v32 }
 0xe65   :  { %v2286_v34 = vsub.f32 %v2274_v26, %v2284_v31 }
 0xe66   :  { %v2285_v35 = vsub.f32 %v2273_v27, %v2283_v33 }
 0xe67   :  { %v2288_v36 = vmul.f32 %v2286_v34, %v2286_v34 }
 0xe68   :  { %v2287_v37 = vmul.f32 %v2285_v35, %v2285_v35 }
 0xe69   :  { %v2292_v10 = vsel %vm222_vm0, %v2288_v36, 0.0 }
 0xe6a   :  { %2293 = vadd.xlane.f32.xlu1 %v2292_v10  ;;  %v2289_v55 = vsel %vm222_vm0, %v2287_v37, 0.0 }
 0xe6b   :  { %2290 = vadd.xlane.f32.xlu0 %v2289_v55 }
 0xef7   :  { %v2294_v39 = vpop.xlane.xlu1 %2293 }
 0xef8   :  { %v2296_v44 = vmul.f32 0.03125, %v2294_v39  ;;  %v2291_v45 = vpop.xlane.xlu0 %2290 }
 0xef9   :  { %v2295_v46 = vmul.f32 0.03125, %v2291_v45 }
 0xefa   :  { %v2298_v47 = vadd.f32 1e-12, %v2296_v44 }
 0xefb   :  { %v2297_v48 = vadd.f32 1e-12, %v2295_v46 }
 0xefc   :  { %5854 = vrsqrt.f32 %v2298_v47 }
 0xefd   :  { %5856 = vrsqrt.f32 %v2297_v48 }
 0xf06   :  { %v5855_v49 = vpop.eup %5854 }
 0xf07   :  { %v5857_v52 = vpop.eup %5856  ;;  %v2302_v53 = vmul.f32 %v5855_v49, %v2286_v34 }
 0xf08   :  { %v2301_v54 = vmul.f32 %v5857_v52, %v2285_v35 }
 0xf09   :  { %v2310_v57 = vmul.f32 %v5054_v51, %v2302_v53 }
 0xf0a   :  { %v2309_v58 = vmul.f32 %v5054_v51, %v2301_v54 }
 0xf0b   :  { %v6741_v60 = vadd.f32 %v5055_v56, %v2310_v57 }
 0xf0c   :  { %v6739_v59 = vadd.f32 %v5055_v56, %v2309_v58 }
 0xf0e   :  { %5477 = vmatprep.mubr.msk.f32.mxu1 %vm222_vm0, %v6739_v59 }
 0xf0f   :  { %5478 = vmatmul.mubr.msk.f32.vlgmr.msra.gmra.mrb[24].mxu1 %vm222_vm0, %v6741_v60 }
 0xfe2   :  { %v5479_v17 = vpop.f32.mrb[24].mxu1 }
 0xfe3   :  { %v2408_v12 = vadd.f32 %v5479_v17, %v5056_v16  ;;  %v2402_v18 = vpop.f32.mrb[25].mxu1 }
 0xfe4   :  { %v2403_v5 = vadd.f32 %v5056_v16, %v2402_v18 }
 0xfe5   :  { %v2414_v19 = vmul.f32 0.70710677, %v2408_v12  ;;  %v2412_v1 = vmul.f32 0.5, %v2408_v12 }
 0xfe6   :  { %v2413_v13 = vmul.f32 0.70710677, %v2403_v5  ;;  %v2411_v63 = vmul.f32 0.5, %v2403_v5 }
 0xfe7   :  { %v2416_v20 = vand.u32 2147483647, %v2414_v19  ;;  %vm2456_vm4 = vcmp.ge.f32.partialorder %v2414_v19, 0.0 }
 0xfe8   :  { %v2415_v7 = vand.u32 2147483647, %v2413_v13  ;;  %vm2455_vm5 = vcmp.ge.f32.partialorder %v2413_v13, 0.0 }
 0xfe9   :  { %v2418_v6 = vmul.f32 0.3275911, %v2416_v20  ;;  %v2444_v24 = vsub.f32 0.0, %v2416_v20 }
 0xfea   :  { %v2417_v21 = vmul.f32 0.3275911, %v2415_v7  ;;  %v2443_v25 = vsub.f32 0.0, %v2415_v7 }
 0xfeb   :  { %v2420_v22 = vadd.f32 1.0, %v2418_v6  ;;  %v2446_v27 = vmul.f32 %v2444_v24, %v2416_v20 }
 0xfec   :  { %v2419_v23 = vadd.f32 1.0, %v2417_v21  ;;  %v2445_v30 = vmul.f32 %v2443_v25, %v2415_v7  ;;  %v5076_v25 = vld [vmem:[%s7134_s10 + $0x20] sm:$0xff] }
 0xfed   :  { %5858 = vrcp.f32 %v2420_v22  ;;  %v2449_v33 = vmul.f32 1.442695, %v2446_v27 }
 0xfee   :  { %5860 = vrcp.f32 %v2419_v23  ;;  %v2447_v36 = vmul.f32 1.442695, %v2445_v30  ;;  %v5069_v23 = vld [vmem:[%s7187_s30 + $0x28] sm:$0xff]  ;;  %v5078_v30 = vld [vmem:[%s7134_s10 + $0x30] sm:$0xff] }
 0xfef   :  { %5862 = vpow2.f32 %v2449_v33 }
 0xff0   :  { %5864 = vpow2.f32 %v2447_v36 }
 0xff7   :  { %v5859_v26 = vpop.eup %5858 }
 0xff8   :  { %v5861_v28 = vpop.eup %5860  ;;  %v2426_v29 = vmul.f32 1.0614054, %v5859_v26 }
 0xff9   :  { %v2425_v31 = vmul.f32 1.0614054, %v5861_v28  ;;  %v5863_v46 = vpop.eup %5862 }
 0xffa   :  { %v5060_v32 = vadd.f32 -1.4531521, %v2426_v29  ;;  %v5865_v48 = vpop.eup %5864  ;;  %v5071_v29 = vld [vmem:[%s7187_s30 + $0x38] sm:$0xff] }
 0xffb   :  { %v5059_v34 = vadd.f32 -1.4531521, %v2425_v31 }
 0xffc   :  { %v2430_v35 = vmul.f32 %v5859_v26, %v5060_v32  ;;  %v5079_v32 = vld [vmem:[%s7134_s10 + $0x38] sm:$0xff] }
 0xffd   :  { %v2429_v37 = vmul.f32 %v5861_v28, %v5059_v34  ;;  %v5749_v33 = vpack.c.bf16 %v5079_v32, %v5078_v30  ;;  %v5072_v34 = vld [vmem:[%s7188_s13 + $0x20] sm:$0xff] }
 0xffe   :  { %v2432_v10 = vadd.f32 1.4214138, %v2430_v35  ;;  %v5073_v35 = vld [vmem:[%s7188_s13 + $0x28] sm:$0xff] }
 0xfff   :  { %v2431_v55 = vadd.f32 1.4214138, %v2429_v37  ;;  %v5737_v36 = vpack.c.bf16 %v5073_v35, %v5072_v34 }
0x1000   :  { %v2434_v50 = vmul.f32 %v5859_v26, %v2432_v10 }
0x1001   :  { %v2433_v38 = vmul.f32 %v5861_v28, %v2431_v55 }
0x1002   :  { %v5062_v40 = vadd.f32 -0.28449672, %v2434_v50 }
0x1003   :  { %v5061_v41 = vadd.f32 -0.28449672, %v2433_v38 }
0x1004   :  { %v2438_v42 = vmul.f32 %v5859_v26, %v5062_v40 }
0x1005   :  { %v2437_v43 = vmul.f32 %v5861_v28, %v5061_v41 }
0x1006   :  { %v2440_v39 = vadd.f32 0.2548296, %v2438_v42  ;;  %v5066_v42 = vld [vmem:[%s7144_s20] ss:$0 sm:$0xff] }
0x1007   :  { %v2439_v44 = vadd.f32 0.2548296, %v2437_v43 }
0x1008   :  { %v2442_v45 = vmul.f32 %v5859_v26, %v2440_v39  ;;  %v5077_v26 = vld [vmem:[%s7134_s10 + $0x28] sm:$0xff] }
0x1009   :  { %v2441_v47 = vmul.f32 %v5861_v28, %v2439_v44  ;;  %v5745_v27 = vpack.c.bf16 %v5077_v26, %v5076_v25  ;;  %v5070_v28 = vld [vmem:[%s7187_s30 + $0x30] sm:$0xff] }
0x100a   :  { %v2452_v49 = vmul.f32 %v5863_v46, %v2442_v45  ;;  %v5733_v31 = vpack.c.bf16 %v5071_v29, %v5070_v28  ;;  %v5067_v45 = vld [vmem:[%s7145_s21] ss:$0 sm:$0xff] }
0x100b   :  { %v2451_v51 = vmul.f32 %v5865_v48, %v2441_v47  ;;  %5746 = vmatprep.subr.bf16.mxu0 %v5745_v27  ;;  %v5074_v48 = vld [vmem:[%s7188_s13 + $0x30] sm:$0xff] }
0x100c   :  { %v2454_v52 = vsub.f32 1.0, %v2452_v49  ;;  %v5075_v49 = vld [vmem:[%s7188_s13 + $0x38] sm:$0xff] }
0x100d   :  { %v2453_v53 = vsub.f32 1.0, %v2451_v51 }
0x100e   :  { %v2458_v54 = vsub.f32 0.0, %v2454_v52 }
0x100f   :  { %v2457_v56 = vsub.f32 0.0, %v2453_v53 }
0x1010   :  { %v2460_v57 = vsel %vm2456_vm4, %v2454_v52, %v2458_v54  ;;  %v5090_v54 = vld [vmem:[#allocation14 + $0x1] ss:$0 sm:$0xff] }
0x1011   :  { %v2462_v58 = vadd.f32 1.0, %v2460_v57  ;;  %v2459_v61 = vsel %vm2455_vm5, %v2453_v53, %v2457_v56  ;;  %v5741_v53 = vpack.c.bf16 %v5075_v49, %v5074_v48 }
0x1012   :  { %v2461_v0 = vadd.f32 1.0, %v2459_v61 }
0x1013   :  { %v2464_v3 = vmul.f32 %v2462_v58, %v2412_v1 }
0x1014   :  { %v2463_v2 = vmul.f32 %v2461_v0, %v2411_v63  ;;  %v5087_v0 = vld [vmem:[#allocation13 + $0x1] ss:$0 sm:$0xff] }
0x1016   :  { %5496 = vmatprep.mubr.msk.f32.mxu0 %vm2480_vm6, %v2463_v2 }
0x1017   :  { %5497 = vmatmul.mubr.msk.f32.vlgmr.msra.gmra.mrb[18].mxu0 %vm2480_vm6, %v2464_v3  ;;  %v5084_v3 = vld [vmem:[#allocation11 + $0x1] ss:$0 sm:$0xff] }
0x1018   :  { %5748 = vmatpush3.bf16.msra.mxu0 %v5745_v27 }
0x1019   :  { %5750 = vmatprep.subr.bf16.mxu0 %v5749_v33 }
0x101c   :  { %5752 = vmatpush3.bf16.msra.mxu0 %v5749_v33 }
0x101d   :  { %5542 = vmatprep.subr.mxu0 %v6212_v62 }
0x10ea   :  { %v5498_v8 = vpop.f32.mrb[18].mxu0 }
0x10eb   :  { %v2559_v9 = vadd.f32 %v5498_v8, %v5063_v4  ;;  %v2553_v11 = vpop.f32.mrb[19].mxu0 }
0x10ec   :  { %v2554_v14 = vadd.f32 %v5063_v4, %v2553_v11 }
0x10ed   :  { %v2563_v15 = vadd.f32 %v2559_v9, %v6741_v60 }
0x10ee   :  { %v2562_v16 = vadd.f32 %v2554_v14, %v6739_v59  ;;  %v5068_v59 = vld [vmem:[%s7187_s30 + $0x20] sm:$0xff] }
0x10ef   :  { %v2569_v17 = vsel %vm222_vm0, %v2563_v15, 0.0  ;;  %v5729_v24 = vpack.c.bf16 %v5069_v23, %v5068_v59 }
0x10f0   :  { %2570 = vadd.xlane.f32.xlu1 %v2569_v17  ;;  %v2566_v12 = vsel %vm222_vm0, %v2562_v16, 0.0 }
0x10f1   :  { %2567 = vadd.xlane.f32.xlu0 %v2566_v12  ;;  %5730 = vmatprep.subr.bf16.mxu1 %v5729_v24 }
0x10f2   :  { %5732 = vmatpush3.bf16.msra.mxu1 %v5729_v24 }
0x10f3   :  { %5734 = vmatprep.subr.bf16.mxu1 %v5733_v31 }
0x10f6   :  { %5736 = vmatpush3.bf16.msra.mxu1 %v5733_v31 }
0x10f7   :  { %5738 = vmatprep.subr.bf16.mxu1 %v5737_v36 }
0x117d   :  { %v2571_v18 = vpop.xlane.xlu1 %2570 }
0x117e   :  { %v2573_v5 = vmul.f32 0.03125, %v2571_v18  ;;  %v2568_v19 = vpop.xlane.xlu0 %2567 }
0x117f   :  { %v2572_v13 = vmul.f32 0.03125, %v2568_v19 }
0x1180   :  { %v2575_v20 = vsub.f32 %v2563_v15, %v2573_v5 }
0x1181   :  { %v2574_v7 = vsub.f32 %v2562_v16, %v2572_v13 }
0x1182   :  { %v2577_v6 = vmul.f32 %v2575_v20, %v2575_v20 }
0x1183   :  { %v2576_v21 = vmul.f32 %v2574_v7, %v2574_v7 }
0x1184   :  { %v2581_v22 = vsel %vm222_vm0, %v2577_v6, 0.0 }
0x1185   :  { %2582 = vadd.xlane.f32.xlu1 %v2581_v22  ;;  %v2578_v60 = vsel %vm222_vm0, %v2576_v21, 0.0 }
0x1186   :  { %2579 = vadd.xlane.f32.xlu0 %v2578_v60 }
0x1212   :  { %v2583_v37 = vpop.xlane.xlu1 %2582 }
0x1213   :  { %v2585_v10 = vmul.f32 0.03125, %v2583_v37  ;;  %v2580_v55 = vpop.xlane.xlu0 %2579 }
0x1214   :  { %v2584_v50 = vmul.f32 0.03125, %v2580_v55 }
0x1215   :  { %v2587_v38 = vadd.f32 1e-12, %v2585_v10 }
0x1216   :  { %v2586_v40 = vadd.f32 1e-12, %v2584_v50 }
0x1217   :  { %5866 = vrsqrt.f32 %v2587_v38 }
0x1218   :  { %5868 = vrsqrt.f32 %v2586_v40 }
0x1221   :  { %v5867_v41 = vpop.eup %5866 }
0x1222   :  { %v5869_v43 = vpop.eup %5868  ;;  %v2591_v39 = vmul.f32 %v5867_v41, %v2575_v20 }
0x1223   :  { %v2590_v44 = vmul.f32 %v5869_v43, %v2574_v7 }
0x1224   :  { %v2599_v46 = vmul.f32 %v5066_v42, %v2591_v39 }
0x1225   :  { %v2598_v47 = vmul.f32 %v5066_v42, %v2590_v44 }
0x1226   :  { %v6830_v52 = vadd.f32 %v5067_v45, %v2599_v46 }
0x1227   :  { %v6828_v51 = vadd.f32 %v5067_v45, %v2598_v47 }
0x1229   :  { %5507 = vmatprep.mubr.msk.f32.mxu1 %vm222_vm0, %v6828_v51  ;;  %5529 = vmatprep.mubr.msk.f32.mxu0 %vm222_vm0, %v6828_v51 }
0x122a   :  { %5508 = vmatmul.mubr.msk.f32.vlgmr.msra.gmra.mrb[26].mxu1 %vm222_vm0, %v6830_v52  ;;  %5530 = vmatmul.mubr.msk.f32.vlgmr.msra.gmra.mrb[20].mxu0 %vm222_vm0, %v6830_v52 }
0x122b   :  { %5740 = vmatpush3.bf16.msra.mxu1 %v5737_v36  ;;  %5518 = vmatprep.mubr.msk.f32.mxu1 %vm222_vm0, %v6828_v51 }
0x122c   :  { %5742 = vmatprep.subr.bf16.mxu1 %v5741_v53  ;;  %5544 = vmatprep.mubr.msk.f32.mxu0 %vm6213_vm2, %v6212_v62 }
0x122f   :  { %5744 = vmatpush3.bf16.msra.mxu1 %v5741_v53 }
0x1230   :  { %5532 = vmatprep.subr.mxu1 %v6212_v62 }
0x1232   :  { %5519 = vmatmul.mubr.msk.f32.vlgmr.msra.gmra.mrb[28].mxu1 %vm222_vm0, %v6830_v52 }
0x1233   :  { %5534 = vmatprep.mubr.msk.f32.mxu1 %vm6213_vm2, %v6212_v62 }
0x12fd   :  { %v5509_v56 = vpop.f32.mrb[26].mxu1  ;;  %v5531_v57 = vpop.f32.mrb[20].mxu0 }
0x12fe   :  { %v2708_v58 = vpop.f32.mrb[27].mxu1  ;;  %v2874_v61 = vpop.f32.mrb[21].mxu0  ;;  %v6868_v11 = vadd.f32 %v5509_v56, %v5084_v3  ;;  %v6871_v14 = vadd.f32 %v5531_v57, %v5090_v54 }
0x12ff   :  { %v6849_v63 = vadd.f32 %v5090_v54, %v2874_v61  ;;  %v6857_v8 = vadd.f32 %v5084_v3, %v2708_v58 }
0x1301   :  { %5543 = vmatpush3.msra.mxu0 %v6849_v63 }
0x1302   :  { %5552 = vmatprep.subr.mxu0 %v6212_v62 }
0x1305   :  { %v5520_v1 = vpop.f32.mrb[28].mxu1 }
0x1306   :  { %v2791_v2 = vpop.f32.mrb[29].mxu1  ;;  %v6860_v9 = vadd.f32 %v5520_v1, %v5087_v0 }
0x1307   :  { %v6853_v4 = vadd.f32 %v5087_v0, %v2791_v2 }
0x1309   :  { %5533 = vmatpush3.xpose.msk.msra.mxu1 %vm623_vm3, %v6853_v4 }
0x130a   :  { %5537 = vmatprep.subr.mxu1 %v6212_v62 }
0x130c   :  { %5535 = vmatmul.mubr.msk.f32.vlgmr.msra.gmra.mrb[30].mxu1 %vm623_vm3, %v6857_v8 }
0x130d   :  { %5538 = vmatpush3.xpose.msk.msra.mxu1 %vm623_vm3, %v6860_v9  ;;  %5539 = vmatprep.mubr.msk.f32.mxu1 %vm6213_vm2, %v6212_v62 }
0x130e   :  { %5547 = vmatprep.subr.mxu1 %v6212_v62 }
0x1310   :  { %5540 = vmatmul.mubr.msk.f32.vlgmr.msra.gmra.mrb[32].mxu1 %vm623_vm3, %v6868_v11 }
0x1311   :  { %5548 = vmatpush3.msra.mxu1 %v6871_v14  ;;  %5549 = vmatprep.mubr.msk.f32.mxu1 %vm6213_vm2, %v6212_v62 }
0x1312   :  { %5557 = vmatprep.subr.mxu1 %v6212_v62 }
0x13df   :  { %v2955_v15 = vpop.f32.mrb[30].mxu1 }
0x13e0   :  { %v5536_v16 = vpop.f32.mrb[31].mxu1  ;;  %v3035_v6 = vsel %vm623_vm3, %v2955_v15, -inf }
0x13e3   :  { %v3031_v17 = vpop.f32.mrb[32].mxu1 }
0x13e4   :  { %v5541_v12 = vpop.f32.mrb[33].mxu1  ;;  %v3038_v18 = vsel %vm623_vm3, %v3031_v17, -inf }
0x13e5   :  { %3039 = vmax.xlane.f32.xlu0 %v3038_v18 }
0x13fb   :  { %3283 = vrot.lane.b32.xlu0 %v6860_v9, %s6214_s5 }
0x1472   :  { %v3040_v5 = vpop.xlane.xlu0 %3039 }
0x1473   :  { %v3042_v19 = vsub.f32 %v3031_v17, %v3040_v5 }
0x1475   :  { %v3045_v13 = vmul.f32 1.442695, %v3042_v19 }
0x1476   :  { %v3284_v59 = vpop.permute.xlu0 %3283 }
0x1477   :  { %5870 = vpow2.f32 %v3045_v13 }
0x1481   :  { %v5871_v20 = vpop.eup %5870 }
0x1482   :  { %v3050_v7 = vsel %vm623_vm3, %v5871_v20, 0.0 }
0x1483   :  { %3051 = vadd.xlane.f32.xlu1 %v3050_v7  ;;  %v5081_v7 = vld [vmem:[%s7136_s12 + $0x28] sm:$0xff] }
0x1494   :  { %3281 = vrot.lane.b32.xlu1 %v6868_v11, %s6214_s5 }
0x14b8   :  { %3036 = vmax.xlane.f32.xlu1 %v3035_v6  ;;  %v5080_v6 = vld [vmem:[%s7136_s12 + $0x20] sm:$0xff] }
0x14c9   :  { %3203 = vrot.lane.b32.xlu1 %v6857_v8, %s6214_s5 }
0x1510   :  { %v3052_v21 = vpop.xlane.xlu1 %3051 }
0x1511   :  { %5872 = vrcp.f32 %v3052_v21 }
0x1514   :  { %v3282_v23 = vpop.permute.xlu1 %3281 }
0x151b   :  { %v5873_v22 = vpop.eup %5872 }
0x151c   :  { %v3056_v60 = vmul.f32 %v5873_v22, %v5871_v20 }
0x151e   :  { %5550 = vmatmul.mubr.msk.f32.vlgmr.msra.gmra.mrb[34].mxu1 %vm623_vm3, %v3056_v60 }
0x151f   :  { %5558 = vmatpush3.xpose.msk.msra.mxu1 %vm623_vm3, %v3284_v59  ;;  %5559 = vmatprep.mubr.msk.f32.mxu1 %vm6213_vm2, %v6212_v62 }
0x1520   :  { %5567 = vmatprep.subr.mxu1 %v6212_v62 }
0x1522   :  { %5560 = vmatmul.mubr.msk.f32.vlgmr.msra.gmra.mrb[36].mxu1 %vm623_vm3, %v3282_v23 }
0x1523   :  { %5569 = vmatprep.mubr.msk.f32.mxu1 %vm6213_vm2, %v6212_v62 }
0x1545   :  { %v3037_v24 = vpop.xlane.xlu1 %3036 }
0x1546   :  { %v3041_v25 = vsub.f32 %v2955_v15, %v3037_v24 }
0x1548   :  { %v3043_v26 = vmul.f32 1.442695, %v3041_v25 }
0x1549   :  { %v3204_v35 = vpop.permute.xlu1 %3203 }
0x154a   :  { %5874 = vpow2.f32 %v3043_v26 }
0x1554   :  { %v5875_v27 = vpop.eup %5874 }
0x1555   :  { %v3047_v28 = vsel %vm623_vm3, %v5875_v27, 0.0 }
0x1556   :  { %3048 = vadd.xlane.f32.xlu0 %v3047_v28 }
0x156c   :  { %3205 = vrot.lane.b32.xlu0 %v6853_v4, %s6214_s5 }
0x15e3   :  { %v3049_v29 = vpop.xlane.xlu0 %3048 }
0x15e4   :  { %5876 = vrcp.f32 %v3049_v29 }
0x15e7   :  { %v3206_v32 = vpop.permute.xlu0 %3205 }
0x15ee   :  { %v5877_v30 = vpop.eup %5876 }
0x15ef   :  { %v3055_v31 = vmul.f32 %v5877_v30, %v5875_v27 }
0x15f1   :  { %5545 = vmatmul.mubr.msk.f32.vlgmr.msra.gmra.mrb[22].mxu0 %vm623_vm3, %v3055_v31  ;;  %v6900_v33 = vpop.f32.mrb[34].mxu1 }
0x15f2   :  { %5553 = vmatpush3.xpose.msk.msra.mxu0 %vm623_vm3, %v3206_v32  ;;  %v5551_v34 = vpop.f32.mrb[35].mxu1  ;;  %5554 = vmatprep.mubr.msk.f32.mxu0 %vm6213_vm2, %v6212_v62  ;;  %v5082_v32 = vld [vmem:[%s7136_s12 + $0x30] sm:$0xff] }
0x15f3   :  { %5562 = vmatprep.subr.mxu0 %v6212_v62 }
0x15f5   :  { %5555 = vmatmul.mubr.msk.f32.vlgmr.msra.gmra.mrb[24].mxu0 %vm623_vm3, %v3204_v35  ;;  %v3355_v36 = vpop.f32.mrb[36].mxu1 }
0x15f6   :  { %v5561_v37 = vpop.f32.mrb[37].mxu1  ;;  %v3362_v10 = vsel %vm623_vm3, %v3355_v36, -inf  ;;  %5564 = vmatprep.mubr.msk.f32.mxu0 %vm6213_vm2, %v6212_v62 }
0x15f7   :  { %3363 = vmax.xlane.f32.xlu1 %v3362_v10 }
0x1608   :  { %3699 = vrot.lane.b32.xlu1 %v6853_v4, %s6215_s2 }
0x160c   :  { %3697 = vrot.lane.b32.xlu1 %v6857_v8, %s6215_s2 }
0x1610   :  { %3777 = vrot.lane.b32.xlu1 %v6860_v9, %s6215_s2 }
0x1684   :  { %v3364_v55 = vpop.xlane.xlu1 %3363 }
0x1685   :  { %v3366_v50 = vsub.f32 %v3355_v36, %v3364_v55 }
0x1687   :  { %v3369_v38 = vmul.f32 1.442695, %v3366_v50 }
0x1688   :  { %v3700_v48 = vpop.permute.xlu1 %3699 }
0x1689   :  { %5878 = vpow2.f32 %v3369_v38 }
0x168c   :  { %v3698_v53 = vpop.permute.xlu1 %3697 }
0x1690   :  { %v3778_v56 = vpop.permute.xlu1 %3777 }
0x1693   :  { %v5879_v40 = vpop.eup %5878 }
0x1694   :  { %v3374_v41 = vsel %vm623_vm3, %v5879_v40, 0.0 }
0x1695   :  { %3375 = vadd.xlane.f32.xlu0 %v3374_v41 }
0x16ab   :  { %3459 = vrot.lane.b32.xlu0 %v6871_v14, %s6214_s5 }
0x16af   :  { %3775 = vrot.lane.b32.xlu0 %v6868_v11, %s6215_s2 }
0x16c4   :  { %v6921_v42 = vpop.f32.mrb[22].mxu0 }
0x16c5   :  { %v5546_v43 = vpop.f32.mrb[23].mxu0 }
0x16c8   :  { %v3277_v39 = vpop.f32.mrb[24].mxu0 }
0x16c9   :  { %v5556_v44 = vpop.f32.mrb[25].mxu0  ;;  %v3359_v45 = vsel %vm623_vm3, %v3277_v39, -inf }
0x16ca   :  { %3360 = vmax.xlane.f32.xlu1 %v3359_v45 }
0x1722   :  { %v3376_v46 = vpop.xlane.xlu0 %3375 }
0x1723   :  { %5880 = vrcp.f32 %v3376_v46 }
0x1726   :  { %v3460_v47 = vpop.permute.xlu0 %3459 }
0x1727   :  { %5568 = vmatpush3.msra.mxu1 %v3460_v47 }
0x1728   :  { %5582 = vmatprep.subr.mxu1 %v6212_v62 }
0x172a   :  { %v3776_v57 = vpop.permute.xlu0 %3775 }
0x172d   :  { %v5881_v49 = vpop.eup %5880 }
0x172e   :  { %v3380_v54 = vmul.f32 %v5881_v49, %v5879_v40 }
0x1730   :  { %5570 = vmatmul.mubr.msk.f32.vlgmr.msra.gmra.mrb[38].mxu1 %vm623_vm3, %v3380_v54 }
0x1731   :  { %5583 = vmatpush3.xpose.msk.msra.mxu1 %vm623_vm3, %v3700_v48  ;;  %5584 = vmatprep.mubr.msk.f32.mxu1 %vm6213_vm2, %v6212_v62 }
0x1732   :  { %5587 = vmatprep.subr.mxu1 %v6212_v62 }
0x1734   :  { %5585 = vmatmul.mubr.msk.f32.vlgmr.msra.gmra.mrb[40].mxu1 %vm623_vm3, %v3698_v53 }
0x1735   :  { %5588 = vmatpush3.xpose.msk.msra.mxu1 %vm623_vm3, %v3778_v56  ;;  %5589 = vmatprep.mubr.msk.f32.mxu1 %vm6213_vm2, %v6212_v62 }
0x1736   :  { %5597 = vmatprep.subr.mxu1 %v6212_v62 }
0x1738   :  { %5590 = vmatmul.mubr.msk.f32.vlgmr.msra.gmra.mrb[42].mxu1 %vm623_vm3, %v3776_v57 }
0x1739   :  { %5599 = vmatprep.mubr.msk.f32.mxu1 %vm6213_vm2, %v6212_v62 }
0x1757   :  { %v3361_v58 = vpop.xlane.xlu1 %3360 }
0x1758   :  { %v3365_v61 = vsub.f32 %v3277_v39, %v3361_v58 }
0x175a   :  { %v3367_v0 = vmul.f32 1.442695, %v3365_v61 }
0x175c   :  { %5882 = vpow2.f32 %v3367_v0 }
0x1766   :  { %v5883_v1 = vpop.eup %5882 }
0x1767   :  { %v3371_v2 = vsel %vm623_vm3, %v5883_v1, 0.0 }
0x1768   :  { %3372 = vadd.xlane.f32.xlu0 %v3371_v2 }
0x177e   :  { %3382 = vrot.lane.b32.xlu0 %v6849_v63, %s6214_s5 }
0x1782   :  { %3951 = vrot.lane.b32.xlu0 %v6871_v14, %s6215_s2 }
0x1786   :  { %4112 = vrot.lane.b32.xlu0 %v6853_v4, %s6216_s8 }
0x178a   :  { %4190 = vrot.lane.b32.xlu0 %v6860_v9, %s6216_s8 }
0x178e   :  { %4110 = vrot.lane.b32.xlu0 %v6857_v8, %s6216_s8 }
0x17f5   :  { %v3373_v3 = vpop.xlane.xlu0 %3372 }
0x17f6   :  { %5884 = vrcp.f32 %v3373_v3 }
0x17f9   :  { %v3383_v15 = vpop.permute.xlu0 %3382 }
0x17fa   :  { %5563 = vmatpush3.msra.mxu0 %v3383_v15 }
0x17fb   :  { %5572 = vmatprep.subr.mxu0 %v5081_v7 }
0x17fd   :  { %v3952_v16 = vpop.permute.xlu0 %3951 }
0x17fe   :  { %5598 = vmatpush3.msra.mxu1 %v3952_v16 }
0x17ff   :  { %5607 = vmatprep.subr.mxu1 %v6212_v62 }
0x1800   :  { %v5885_v17 = vpop.eup %5884 }
0x1801   :  { %v3379_v12 = vmul.f32 %v5885_v17, %v5883_v1  ;;  %v4113_v35 = vpop.permute.xlu0 %4112 }
0x1803   :  { %5565 = vmatmul.mubr.msk.f32.vlgmr.msra.gmra.mrb[26].mxu0 %vm623_vm3, %v3379_v12  ;;  %v3531_v18 = vpop.f32.mrb[38].mxu1 }
0x1804   :  { %v5571_v4 = vpop.f32.mrb[39].mxu1  ;;  %5573 = vmatpush3.msra.mxu0 %v5081_v7 }
0x1805   :  { %5577 = vmatprep.subr.mxu0 %v5080_v6  ;;  %v4191_v10 = vpop.permute.xlu0 %4190  ;;  %v5083_v4 = vld [vmem:[%s7136_s12 + $0x38] sm:$0xff] }
0x1807   :  { %v3771_v5 = vpop.f32.mrb[40].mxu1 }
0x1808   :  { %v5586_v19 = vpop.f32.mrb[41].mxu1  ;;  %v3853_v9 = vsel %vm623_vm3, %v3771_v5, -inf }
0x1809   :  { %3854 = vmax.xlane.f32.xlu1 %v3853_v9  ;;  %v4111_v50 = vpop.permute.xlu0 %4110 }
0x180b   :  { %v3849_v8 = vpop.f32.mrb[42].mxu1 }
0x180c   :  { %v5591_v13 = vpop.f32.mrb[43].mxu1  ;;  %v3856_v20 = vsel %vm623_vm3, %v3849_v8, -inf }
0x180d   :  { %3857 = vmax.xlane.f32.xlu1 %v3856_v20 }
0x1896   :  { %v3855_v21 = vpop.xlane.xlu1 %3854 }
0x1897   :  { %v3859_v22 = vsub.f32 %v3771_v5, %v3855_v21 }
0x1899   :  { %v3861_v60 = vmul.f32 1.442695, %v3859_v22 }
0x189a   :  { %v3858_v59 = vpop.xlane.xlu1 %3857 }
0x189b   :  { %5886 = vpow2.f32 %v3861_v60  ;;  %v3860_v23 = vsub.f32 %v3849_v8, %v3858_v59  ;;  %v5125_v8 = vld [vmem:[#allocation16 + $0x1] ss:$0 sm:$0xff] }
0x189d   :  { %v3863_v24 = vmul.f32 1.442695, %v3860_v23 }
0x189f   :  { %5888 = vpow2.f32 %v3863_v24 }
0x18a5   :  { %v5887_v25 = vpop.eup %5886 }
0x18a6   :  { %v3865_v26 = vsel %vm623_vm3, %v5887_v25, 0.0 }
0x18a7   :  { %3866 = vadd.xlane.f32.xlu1 %v3865_v26 }
0x18a9   :  { %v5889_v27 = vpop.eup %5888 }
0x18aa   :  { %v3868_v28 = vsel %vm623_vm3, %v5889_v27, 0.0 }
0x18ab   :  { %3869 = vadd.xlane.f32.xlu1 %v3868_v28 }
0x18bc   :  { %3875 = vrot.lane.b32.xlu1 %v6849_v63, %s6215_s2 }
0x18c0   :  { %4188 = vrot.lane.b32.xlu1 %v6868_v11, %s6216_s8 }
0x18d6   :  { %v3454_v29 = vpop.f32.mrb[26].mxu0 }
0x18d7   :  { %v5566_v30 = vpop.f32.mrb[27].mxu0  ;;  %5574 = vmatprep.mubr.msk.f32.mxu0 %vm623_vm3, %v3454_v29 }
0x18d8   :  { %5575 = vmatmul.mubr.msk.f32.vlgmr.msra.gmra.mrb[28].mxu0 %vm623_vm3, %v3531_v18 }
0x18d9   :  { %5579 = vmatprep.mubr.msk.f32.mxu0 %vm623_vm3, %v6921_v42  ;;  %5578 = vmatpush3.msra.mxu0 %v5080_v6 }
0x18da   :  { %5592 = vmatprep.subr.mxu0 %v6212_v62 }
0x18e0   :  { %5580 = vmatmul.mubr.msk.f32.vlgmr.msra.gmra.mrb[28].mxu0 %vm623_vm3, %v6900_v33 }
0x18e1   :  { %5594 = vmatprep.mubr.msk.f32.mxu0 %vm6213_vm2, %v6212_v62 }
0x1934   :  { %v3867_v31 = vpop.xlane.xlu1 %3866 }
0x1935   :  { %5890 = vrcp.f32 %v3867_v31 }
0x1938   :  { %v3870_v11 = vpop.xlane.xlu1 %3869 }
0x1939   :  { %5892 = vrcp.f32 %v3870_v11  ;;  %v4583_v11 = vld [vmem:[#allocation17 + $0x28] sm:$0xff] }
0x193c   :  { %v3876_v34 = vpop.permute.xlu1 %3875 }
0x193d   :  { %5593 = vmatpush3.msra.mxu0 %v3876_v34  ;;  %v4584_v34 = vld [vmem:[#allocation17 + $0x30] sm:$0xff] }
0x193e   :  { %5602 = vmatprep.subr.mxu0 %v5082_v32 }
0x193f   :  { %v5891_v36 = vpop.eup %5890 }
0x1940   :  { %v3873_v37 = vmul.f32 %v5891_v36, %v5887_v25  ;;  %v4189_v43 = vpop.permute.xlu1 %4188 }
0x1942   :  { %5595 = vmatmul.mubr.msk.f32.vlgmr.msra.gmra.mrb[30].mxu0 %vm623_vm3, %v3873_v37 }
0x1943   :  { %v5893_v33 = vpop.eup %5892  ;;  %5603 = vmatpush3.msra.mxu0 %v5082_v32 }
0x1944   :  { %v3874_v55 = vmul.f32 %v5893_v33, %v5889_v27  ;;  %5612 = vmatprep.subr.mxu0 %v6212_v62 }
0x1946   :  { %5600 = vmatmul.mubr.msk.f32.vlgmr.msra.gmra.mrb[44].mxu1 %vm623_vm3, %v3874_v55 }
0x1947   :  { %5608 = vmatpush3.xpose.msk.msra.mxu1 %vm623_vm3, %v4113_v35  ;;  %5609 = vmatprep.mubr.msk.f32.mxu1 %vm6213_vm2, %v6212_v62  ;;  %v4585_v35 = vld [vmem:[#allocation17 + $0x38] sm:$0xff] }
0x1948   :  { %5617 = vmatprep.subr.mxu1 %v6212_v62  ;;  %v5757_v36 = vpack.c.bf16 %v4585_v35, %v4584_v34 }
0x194a   :  { %5610 = vmatmul.mubr.msk.f32.vlgmr.msra.gmra.mrb[46].mxu1 %vm623_vm3, %v4111_v50 }
0x194b   :  { %5619 = vmatprep.mubr.msk.f32.mxu1 %vm6213_vm2, %v6212_v62 }
0x1a15   :  { %v3947_v38 = vpop.f32.mrb[30].mxu0 }
0x1a16   :  { %v5596_v40 = vpop.f32.mrb[31].mxu0  ;;  %5604 = vmatprep.mubr.msk.f32.mxu0 %vm623_vm3, %v3947_v38 }
0x1a19   :  { %v4023_v41 = vpop.f32.mrb[44].mxu1 }
0x1a1a   :  { %v5601_v42 = vpop.f32.mrb[45].mxu1  ;;  %5605 = vmatmul.mubr.msk.f32.vlgmr.msra.gmra.mrb[28].mxu0 %vm623_vm3, %v4023_v41  ;;  %v5128_v41 = vld [vmem:[%s7138_s14 + $0x1] ss:$0 sm:$0xff] }
0x1a1b   :  { %5613 = vmatpush3.xpose.msk.msra.mxu0 %vm623_vm3, %v4191_v10  ;;  %5614 = vmatprep.mubr.msk.f32.mxu0 %vm6213_vm2, %v6212_v62 }
0x1a1c   :  { %5622 = vmatprep.subr.mxu0 %v6212_v62 }
0x1a1d   :  { %v4184_v39 = vpop.f32.mrb[46].mxu1 }
0x1a1e   :  { %v5611_v44 = vpop.f32.mrb[47].mxu1  ;;  %5615 = vmatmul.mubr.msk.f32.vlgmr.msra.gmra.mrb[32].mxu0 %vm623_vm3, %v4189_v43  ;;  %v4266_v45 = vsel %vm623_vm3, %v4184_v39, -inf }
0x1a1f   :  { %4267 = vmax.xlane.f32.xlu0 %v4266_v45  ;;  %5624 = vmatprep.mubr.msk.f32.mxu0 %vm6213_vm2, %v6212_v62  ;;  %v5129_v44 = vld [vmem:[%s7139_s15 + $0x1] ss:$0 sm:$0xff] }
0x1aac   :  { %v4268_v46 = vpop.xlane.xlu0 %4267 }
0x1aad   :  { %v4272_v47 = vsub.f32 %v4184_v39, %v4268_v46 }
0x1aaf   :  { %v4274_v48 = vmul.f32 1.442695, %v4272_v47 }
0x1ab1   :  { %5894 = vpow2.f32 %v4274_v48 }
0x1abb   :  { %v5895_v49 = vpop.eup %5894 }
0x1abc   :  { %v4278_v53 = vsel %vm623_vm3, %v5895_v49, 0.0 }
0x1abd   :  { %4279 = vadd.xlane.f32.xlu0 %v4278_v53  ;;  %v5139_v53 = vld [vmem:[%s7142_s18 + $0x48] sm:$0xff] }
0x1af1   :  { %v4262_v54 = vpop.f32.mrb[32].mxu0 }
0x1af2   :  { %v5616_v56 = vpop.f32.mrb[33].mxu0  ;;  %v4269_v57 = vsel %vm623_vm3, %v4262_v54, -inf }
0x1af3   :  { %4270 = vmax.xlane.f32.xlu1 %v4269_v57  ;;  %v5140_v56 = vld [vmem:[%s7142_s18 + $0x50] sm:$0xff]  ;;  %v5141_v57 = vld [vmem:[%s7142_s18 + $0x58] sm:$0xff] }
0x1b04   :  { %4364 = vrot.lane.b32.xlu1 %v6871_v14, %s6216_s8 }
0x1b4a   :  { %v4280_v3 = vpop.xlane.xlu0 %4279 }
0x1b80   :  { %v4271_v58 = vpop.xlane.xlu1 %4270 }
0x1b81   :  { %v4273_v61 = vsub.f32 %v4262_v54, %v4271_v58  ;;  %v5765_v58 = vpack.c.bf16 %v5141_v57, %v5140_v56 }
0x1b83   :  { %v4276_v0 = vmul.f32 1.442695, %v4273_v61  ;;  %v5142_v61 = vld [vmem:[%s7142_s18 + $0x60] sm:$0xff] }
0x1b84   :  { %v4365_v62 = vpop.permute.xlu1 %4364 }
0x1b85   :  { %5896 = vpow2.f32 %v4276_v0  ;;  %5623 = vmatpush3.msra.mxu0 %v4365_v62  ;;  %v5143_v0 = vld [vmem:[%s7142_s18 + $0x68] sm:$0xff] }
0x1b86   :  { %5898 = vrcp.f32 %v4280_v3  ;;  %5627 = vmatprep.subr.mxu0 %v5083_v4  ;;  %v5769_v62 = vpack.c.bf16 %v5143_v0, %v5142_v61 }
0x1b8f   :  { %v5897_v1 = vpop.eup %5896 }
0x1b90   :  { %v4281_v2 = vsel %vm623_vm3, %v5897_v1, 0.0  ;;  %v5899_v16 = vpop.eup %5898 }
0x1b91   :  { %4282 = vadd.xlane.f32.xlu0 %v4281_v2  ;;  %v4286_v17 = vmul.f32 %v5899_v16, %v5895_v49  ;;  %v5138_v49 = vld [vmem:[%s7142_s18 + $0x40] sm:$0xff]  ;;  %v5145_v2 = vld [vmem:[%s7142_s18 + $0x78] sm:$0xff] }
0x1b92   :  { %v5761_v54 = vpack.c.bf16 %v5139_v53, %v5138_v49 }
0x1ba7   :  { %4288 = vrot.lane.b32.xlu0 %v6849_v63, %s6216_s8 }
0x1c1e   :  { %v4283_v15 = vpop.xlane.xlu0 %4282 }
0x1c1f   :  { %5900 = vrcp.f32 %v4283_v15  ;;  %v5131_v15 = vld [vmem:[%s7141_s17 + $0x1] ss:$0 sm:$0xff] }
0x1c22   :  { %v4289_v14 = vpop.permute.xlu0 %4288 }
0x1c23   :  { %5618 = vmatpush3.msra.mxu1 %v4289_v14 }
0x1c24   :  { %5620 = vmatmul.mubr.msk.f32.vlgmr.msra.gmra.mrb[48].mxu1 %vm623_vm3, %v4286_v17 }
0x1c29   :  { %v5901_v12 = vpop.eup %5900 }
0x1c2a   :  { %v4287_v18 = vmul.f32 %v5901_v12, %v5897_v1  ;;  %v5144_v1 = vld [vmem:[%s7142_s18 + $0x70] sm:$0xff] }
0x1c2b   :  { %v5773_v3 = vpack.c.bf16 %v5145_v2, %v5144_v1 }
0x1c2c   :  { %5625 = vmatmul.mubr.msk.f32.vlgmr.msra.gmra.mrb[34].mxu0 %vm623_vm3, %v4287_v18 }
0x1c2d   :  { %5628 = vmatpush3.msra.mxu0 %v5083_v4 }
0x1c2e   :  { %5762 = vmatprep.subr.bf16.mxu0 %v5761_v54 }
0x1cf7   :  { %v4360_v63 = vpop.f32.mrb[48].mxu1 }
0x1cf8   :  { %v5621_v5 = vpop.f32.mrb[49].mxu1  ;;  %5629 = vmatprep.mubr.msk.f32.mxu0 %vm623_vm3, %v4360_v63 }
0x1cff   :  { %v4436_v19 = vpop.f32.mrb[34].mxu0 }
0x1d00   :  { %v5626_v9 = vpop.f32.mrb[35].mxu0  ;;  %5630 = vmatmul.mubr.msk.f32.vlgmr.msra.gmra.mrb[28].mxu0 %vm623_vm3, %v4436_v19 }
0x1d01   :  { %5764 = vmatpush3.bf16.msra.mxu0 %v5761_v54 }
0x1d02   :  { %5766 = vmatprep.subr.bf16.mxu0 %v5765_v58 }
0x1d05   :  { %5768 = vmatpush3.bf16.msra.mxu0 %v5765_v58  ;;  %v5147_v58 = vld [vmem:[%s7143_s19 + $0x1] ss:$0 sm:$0xff] }
0x1d06   :  { %5770 = vmatprep.subr.bf16.mxu0 %v5769_v62 }
0x1d09   :  { %5772 = vmatpush3.bf16.msra.mxu0 %v5769_v62 }
0x1d0a   :  { %5774 = vmatprep.subr.bf16.mxu0 %v5773_v3 }
0x1d0d   :  { %5776 = vmatpush3.bf16.msra.mxu0 %v5773_v3 }
0x1dd3   :  { %v5631_v13 = vpop.f32.mrb[28].mxu0 }
0x1dd4   :  { %v4532_v20 = vadd.f32 %v5631_v13, %v5125_v8  ;;  %v4512_v7 = vpop.f32.mrb[29].mxu0 }
0x1dd5   :  { %v4531_v6 = vadd.f32 %v5125_v8, %v4512_v7 }
0x1dd6   :  { %v4534_v21 = vadd.f32 %v4532_v20, %v6830_v52 }
0x1dd7   :  { %v4533_v22 = vadd.f32 %v4531_v6, %v6828_v51  ;;  %v4582_v51 = vld [vmem:[#allocation17 + $0x20] sm:$0xff] }
0x1dd8   :  { %v4542_v60 = vsel %vm222_vm0, %v4534_v21, 0.0  ;;  %v5753_v32 = vpack.c.bf16 %v4583_v11, %v4582_v51 }
0x1dd9   :  { %4543 = vadd.xlane.f32.xlu0 %v4542_v60  ;;  %v4539_v59 = vsel %vm222_vm0, %v4533_v22, 0.0 }
0x1dda   :  { %4540 = vadd.xlane.f32.xlu1 %v4539_v59  ;;  %5754 = vmatprep.subr.bf16.mxu1 %v5753_v32 }
0x1ddb   :  { %5756 = vmatpush3.bf16.msra.mxu1 %v5753_v32 }
0x1ddc   :  { %5758 = vmatprep.subr.bf16.mxu1 %v5757_v36 }
0x1ddf   :  { %5760 = vmatpush3.bf16.msra.mxu1 %v5757_v36 }
0x1e66   :  { %v4544_v23 = vpop.xlane.xlu0 %4543 }
0x1e67   :  { %v4546_v24 = vmul.f32 0.03125, %v4544_v23  ;;  %v4541_v25 = vpop.xlane.xlu1 %4540 }
0x1e68   :  { %v4545_v26 = vmul.f32 0.03125, %v4541_v25 }
0x1e69   :  { %v4548_v27 = vsub.f32 %v4534_v21, %v4546_v24 }
0x1e6a   :  { %v4547_v28 = vsub.f32 %v4533_v22, %v4545_v26 }
0x1e6b   :  { %v4550_v29 = vmul.f32 %v4548_v27, %v4548_v27 }
0x1e6c   :  { %v4549_v30 = vmul.f32 %v4547_v28, %v4547_v28 }
0x1e6d   :  { %v4554_v31 = vsel %vm222_vm0, %v4550_v29, 0.0 }
0x1e6e   :  { %4555 = vadd.xlane.f32.xlu1 %v4554_v31  ;;  %v4551_v52 = vsel %vm222_vm0, %v4549_v30, 0.0 }
0x1e6f   :  { %4552 = vadd.xlane.f32.xlu0 %v4551_v52 }
0x1efb   :  { %v4556_v37 = vpop.xlane.xlu1 %4555 }
0x1efc   :  { %v4558_v33 = vmul.f32 0.03125, %v4556_v37  ;;  %v4553_v10 = vpop.xlane.xlu0 %4552 }
0x1efd   :  { %v4557_v55 = vmul.f32 0.03125, %v4553_v10 }
0x1efe   :  { %v4560_v50 = vadd.f32 1e-12, %v4558_v33 }
0x1eff   :  { %v4559_v38 = vadd.f32 1e-12, %v4557_v55 }
0x1f00   :  { %5902 = vrsqrt.f32 %v4560_v50 }
0x1f01   :  { %5904 = vrsqrt.f32 %v4559_v38 }
0x1f0a   :  { %v5903_v40 = vpop.eup %5902 }
0x1f0b   :  { %v5905_v42 = vpop.eup %5904  ;;  %v4564_v43 = vmul.f32 %v5903_v40, %v4548_v27 }
0x1f0c   :  { %v4563_v39 = vmul.f32 %v5905_v42, %v4547_v28 }
0x1f0d   :  { %v4572_v45 = vmul.f32 %v5128_v41, %v4564_v43 }
0x1f0e   :  { %v4571_v46 = vmul.f32 %v5128_v41, %v4563_v39 }
0x1f0f   :  { %v7025_v48 = vadd.f32 %v5129_v44, %v4572_v45 }
0x1f10   :  { %v7023_v47 = vadd.f32 %v5129_v44, %v4571_v46 }
0x1f12   :  { %5640 = vmatprep.mubr.msk.f32.mxu1 %vm222_vm0, %v7023_v47 }
0x1f13   :  { %5641 = vmatmul.mubr.msk.f32.vlgmr.msra.gmra.mrb[50].mxu1 %vm222_vm0, %v7025_v48 }
0x1fe6   :  { %v5642_v16 = vpop.f32.mrb[50].mxu1 }
0x1fe7   :  { %v4672_v17 = vadd.f32 %v5642_v16, %v5131_v15  ;;  %v4666_v14 = vpop.f32.mrb[51].mxu1 }
0x1fe8   :  { %v4667_v12 = vadd.f32 %v5131_v15, %v4666_v14 }
0x1fe9   :  { %v4678_v18 = vmul.f32 0.70710677, %v4672_v17  ;;  %v4676_v54 = vmul.f32 0.5, %v4672_v17 }
0x1fea   :  { %v4677_v4 = vmul.f32 0.70710677, %v4667_v12  ;;  %v4675_v49 = vmul.f32 0.5, %v4667_v12 }
0x1feb   :  { %v4680_v63 = vand.u32 2147483647, %v4678_v18  ;;  %vm4720_vm7 = vcmp.ge.f32.partialorder %v4678_v18, 0.0 }
0x1fec   :  { %v4679_v5 = vand.u32 2147483647, %v4677_v4  ;;  %vm4719_vm8 = vcmp.ge.f32.partialorder %v4677_v4, 0.0 }
0x1fed   :  { %v4682_v19 = vmul.f32 0.3275911, %v4680_v63  ;;  %v4708_v20 = vsub.f32 0.0, %v4680_v63 }
0x1fee   :  { %v4681_v9 = vmul.f32 0.3275911, %v4679_v5  ;;  %v4707_v7 = vsub.f32 0.0, %v4679_v5 }
0x1fef   :  { %v4684_v8 = vadd.f32 1.0, %v4682_v19  ;;  %v4710_v21 = vmul.f32 %v4708_v20, %v4680_v63  ;;  %v4877_v20 = vld [vmem:[%s7146_s22 + $0x10] sm:$0xff] }
0x1ff0   :  { %v4683_v13 = vadd.f32 1.0, %v4681_v9  ;;  %v4709_v59 = vmul.f32 %v4707_v7, %v4679_v5  ;;  %v4878_v7 = vld [vmem:[%s7146_s22 + $0x18] sm:$0xff] }
0x1ff1   :  { %5906 = vrcp.f32 %v4684_v8  ;;  %v4713_v25 = vmul.f32 1.442695, %v4710_v21  ;;  %v4876_v8 = vld [vmem:[%s7146_s22 + $0x8] sm:$0xff] }
0x1ff2   :  { %5908 = vrcp.f32 %v4683_v13  ;;  %v4711_v28 = vmul.f32 1.442695, %v4709_v59 }
0x1ff3   :  { %5910 = vpow2.f32 %v4713_v25 }
0x1ff4   :  { %5912 = vpow2.f32 %v4711_v28 }
0x1ffb   :  { %v5907_v6 = vpop.eup %5906 }
0x1ffc   :  { %v5909_v22 = vpop.eup %5908  ;;  %v4690_v60 = vmul.f32 1.0614054, %v5907_v6 }
0x1ffd   :  { %v4689_v23 = vmul.f32 1.0614054, %v5909_v22  ;;  %v5911_v10 = vpop.eup %5910 }
0x1ffe   :  { %v5135_v24 = vadd.f32 -1.4531521, %v4690_v60  ;;  %v5913_v50 = vpop.eup %5912 }
0x1fff   :  { %v5134_v26 = vadd.f32 -1.4531521, %v4689_v23 }
0x2000   :  { %v4694_v27 = vmul.f32 %v5907_v6, %v5135_v24 }
0x2001   :  { %v4693_v29 = vmul.f32 %v5909_v22, %v5134_v26  ;;  %v5152_v26 = vld [vmem:[%s7144_s20 + $0x1] ss:$0 sm:$0xff] }
0x2002   :  { %v4696_v30 = vadd.f32 1.4214138, %v4694_v27 }
0x2003   :  { %v4695_v31 = vadd.f32 1.4214138, %v4693_v29 }
0x2004   :  { %v4698_v52 = vmul.f32 %v5907_v6, %v4696_v30  ;;  %v5153_v30 = vld [vmem:[%s7145_s21 + $0x1] ss:$0 sm:$0xff] }
0x2005   :  { %v4697_v51 = vmul.f32 %v5909_v22, %v4695_v31 }
0x2006   :  { %v5137_v11 = vadd.f32 -0.28449672, %v4698_v52 }
0x2007   :  { %v5136_v32 = vadd.f32 -0.28449672, %v4697_v51 }
0x2008   :  { %v4702_v34 = vmul.f32 %v5907_v6, %v5137_v11 }
0x2009   :  { %v4701_v35 = vmul.f32 %v5909_v22, %v5136_v32 }
0x200a   :  { %v4704_v36 = vadd.f32 0.2548296, %v4702_v34 }
0x200b   :  { %v4703_v37 = vadd.f32 0.2548296, %v4701_v35 }
0x200c   :  { %v4706_v33 = vmul.f32 %v5907_v6, %v4704_v36  ;;  %v5781_v6 = vpack.c.bf16 %v4878_v7, %v4877_v20 }
0x200d   :  { %v4705_v55 = vmul.f32 %v5909_v22, %v4703_v37 }
0x200e   :  { %v4716_v38 = vmul.f32 %v5911_v10, %v4706_v33 }
0x200f   :  { %v4715_v40 = vmul.f32 %v5913_v50, %v4705_v55 }
0x2010   :  { %v4718_v41 = vsub.f32 1.0, %v4716_v38 }
0x2011   :  { %v4717_v42 = vsub.f32 1.0, %v4715_v40 }
0x2012   :  { %v4722_v43 = vsub.f32 0.0, %v4718_v41 }
0x2013   :  { %v4721_v39 = vsub.f32 0.0, %v4717_v42 }
0x2014   :  { %v4724_v44 = vsel %vm4720_vm7, %v4718_v41, %v4722_v43 }
0x2015   :  { %v4726_v45 = vadd.f32 1.0, %v4724_v44  ;;  %v4723_v46 = vsel %vm4719_vm8, %v4717_v42, %v4721_v39 }
0x2016   :  { %v4725_v53 = vadd.f32 1.0, %v4723_v46 }
0x2017   :  { %v4728_v57 = vmul.f32 %v4726_v45, %v4676_v54 }
0x2018   :  { %v4727_v56 = vmul.f32 %v4725_v53, %v4675_v49 }
0x201a   :  { %5659 = vmatprep.mubr.msk.f32.mxu0 %vm2480_vm6, %v4727_v56 }
0x201b   :  { %5660 = vmatmul.mubr.msk.f32.vlgmr.msra.gmra.mrb[36].mxu0 %vm2480_vm6, %v4728_v57 }
0x20ee   :  { %v5661_v61 = vpop.f32.mrb[36].mxu0 }
0x20ef   :  { %v4824_v0 = vadd.f32 %v5661_v61, %v5147_v58  ;;  %v4818_v62 = vpop.f32.mrb[37].mxu0 }
0x20f0   :  { %v4819_v1 = vadd.f32 %v5147_v58, %v4818_v62 }
0x20f1   :  { %v4828_v2 = vadd.f32 %v4824_v0, %v7025_v48 }
0x20f2   :  { %v4827_v3 = vadd.f32 %v4819_v1, %v7023_v47  ;;  %v4875_v47 = vld [vmem:[%s7146_s22] sm:$0xff] }
0x20f3   :  { %v4836_v15 = vsel %vm222_vm0, %v4828_v2, 0.0  ;;  %v5777_v13 = vpack.c.bf16 %v4876_v8, %v4875_v47 }
0x20f4   :  { %4837 = vadd.xlane.f32.xlu1 %v4836_v15  ;;  %v4833_v16 = vsel %vm222_vm0, %v4827_v3, 0.0 }
0x20f5   :  { %4834 = vadd.xlane.f32.xlu0 %v4833_v16  ;;  %5778 = vmatprep.subr.bf16.mxu1 %v5777_v13 }
0x20f6   :  { %5780 = vmatpush3.bf16.msra.mxu1 %v5777_v13 }
0x20f7   :  { %5782 = vmatprep.subr.bf16.mxu1 %v5781_v6 }
0x20fa   :  { %5784 = vmatpush3.bf16.msra.mxu1 %v5781_v6 }
0x2181   :  { %v4838_v17 = vpop.xlane.xlu1 %4837 }
0x2182   :  { %v4840_v14 = vmul.f32 0.03125, %v4838_v17  ;;  %v4835_v12 = vpop.xlane.xlu0 %4834 }
0x2183   :  { %v4839_v18 = vmul.f32 0.03125, %v4835_v12 }
0x2184   :  { %v4842_v4 = vsub.f32 %v4828_v2, %v4840_v14 }
0x2185   :  { %v4841_v63 = vsub.f32 %v4827_v3, %v4839_v18 }
0x2186   :  { %v4844_v5 = vmul.f32 %v4842_v4, %v4842_v4 }
0x2187   :  { %v4843_v19 = vmul.f32 %v4841_v63, %v4841_v63 }
0x2188   :  { %v4848_v9 = vsel %vm222_vm0, %v4844_v5, 0.0 }
0x2189   :  { %4849 = vadd.xlane.f32.xlu1 %v4848_v9  ;;  %v4845_v48 = vsel %vm222_vm0, %v4843_v19, 0.0 }
0x218a   :  { %4846 = vadd.xlane.f32.xlu0 %v4845_v48 }
0x2216   :  { %v4850_v21 = vpop.xlane.xlu1 %4849 }
0x2217   :  { %v4852_v22 = vmul.f32 0.03125, %v4850_v21  ;;  %v4847_v60 = vpop.xlane.xlu0 %4846 }
0x2218   :  { %v4851_v59 = vmul.f32 0.03125, %v4847_v60 }
0x2219   :  { %v4854_v23 = vadd.f32 1e-12, %v4852_v22 }
0x221a   :  { %v4853_v24 = vadd.f32 1e-12, %v4851_v59 }
0x221b   :  { %5914 = vrsqrt.f32 %v4854_v23 }
0x221c   :  { %5916 = vrsqrt.f32 %v4853_v24 }
0x2225   :  { %v5915_v25 = vpop.eup %5914 }
0x2226   :  { %v5917_v27 = vpop.eup %5916  ;;  %v4858_v28 = vmul.f32 %v5915_v25, %v4842_v4 }
0x2227   :  { %v4857_v29 = vmul.f32 %v5917_v27, %v4841_v63 }
0x2228   :  { %v4866_v31 = vmul.f32 %v5152_v26, %v4858_v28 }
0x2229   :  { %v4865_v52 = vmul.f32 %v5152_v26, %v4857_v29 }
0x222a   :  { %v4874_v11 = vadd.f32 %v5153_v30, %v4866_v31 }
0x222b   :  { %v4873_v51 = vadd.f32 %v5153_v30, %v4865_v52 }
0x222d   :  { %5670 = vmatprep.mubr.msk.f32.mxu1 %vm222_vm0, %v4873_v51 }
0x222e   :  { %5671 = vmatmul.mubr.msk.f32.vlgmr.msra.gmra.mrb[52].mxu1 %vm222_vm0, %v4874_v11 }
0x222f   :  { %6149 = shalt.err (!%p6146_p0)
}
0x2230   :  { %s6150_s0 = scalar_lea.hbm %s7148_s24, 256 }
0x2231   :  { %p6151_p1 = scmp.ne.s32.totalorder %s7148_s24, %s6150_s0  ;;  %p6154_p2 = scmp.lt.u32.totalorder %s6150_s0, %s7148_s24 }
0x2233   :  { %p6156_p3 = pnand %p6154_p2, %p6151_p1 }
0x2235   :  { %6159 = shalt.err (!%p6156_p3)
}
0x2236   :  { %4980 = dma.vmem_to_hbm [thread:$0]  %s4975_s27, 256, %s7148_s24, [#allocation4], %s6205_s11, %s6205_s11, %s6206_s29  }
0x2237   :  { %s7189_s17 = sld [smem:[#allocation40_spill]]  ;;  %s6218_s18 = smov [#allocation20]  }
0x2238   :  { %s4986_s19 = sshll.u32 %s6218_s18, 4  ;;  %s4987_s19 = int_to_ptr.vmem [resolvable:$true] %s4986_s19 }
0x2239   :  { %s6160_s12 = scalar_lea.vmem %s4987_s19, 256  ;;  %p6165_p5 = scmp.lt.s32.totalorder %s4987_s19, %s4987_s19 }
0x223a   :  { %p6161_p4 = scmp.ne.s32.totalorder %s4987_s19, %s6160_s12  ;;  %p6166_p6 = scmp.lt.s32.totalorder %s6160_s12, %s6160_s12 }
0x223c   :  { %p6167_p7 = por %p6166_p6, %p6165_p5 }
0x223d   :  { %v5154_v32 = vld [vmem:[%s7189_s17] ss:$0 sm:$0xff] }
0x223e   :  { %p6168_p8 = pnand %p6167_p7, %p6161_p4 }
0x2301   :  { %v5672_v34 = vpop.f32.mrb[52].mxu1 }
0x2302   :  { %v4964_v35 = vadd.f32 %v5672_v34, %v5154_v32  ;;  %v4958_v36 = vpop.f32.mrb[53].mxu1 }
0x2303   :  { %v4959_v37 = vadd.f32 %v5154_v32, %v4958_v36 }
0x2304   :  { %4968 = vst.msk [vmem:[#allocation20 + $0x8] sm:$0xff] %vm304_vm1, %v4964_v35 }
0x2305   :  { %4967 = vst.msk [vmem:[#allocation20] sm:$0xff] %vm304_vm1, %v4959_v37 }
0x2306   :  { %6171 = shalt.err (!%p6168_p8)
}
0x2307   :  { %s7190_s30 = sld [smem:[#allocation41_spill]] }
0x230d   :  { %s6172_s3 = scalar_lea.hbm %s7190_s30, 256 }
0x230e   :  { %p6173_p9 = scmp.ne.s32.totalorder %s7190_s30, %s6172_s3  ;;  %p6176_p10 = scmp.lt.u32.totalorder %s6172_s3, %s7190_s30 }
0x2310   :  { %p6178_p11 = pnand %p6176_p10, %p6173_p9 }
0x2312   :  { %6181 = shalt.err (!%p6178_p11)
}
0x2313   :  { %4992 = dma.vmem_to_hbm [thread:$0]  %s4987_s19, 256, %s7190_s30, [#allocation21], %s6205_s11, %s6205_s11, %s6206_s29  }
0x2314   :  { %6194 = dma.done.wait [#allocation4], 256  }
0x2315   :  { %6195 = vsyncadd [#allocation4], 4294967040 }
0x2316   :  { %6196 = dma.done.wait [#allocation21], 256  }
0x2317   :  { %6197 = vsyncadd [#allocation21], 4294967040 }
0x2318   :  { %4999 = vsyncpa [#allocation3], 1 }
0x2319   :  { %5000 = vsyncpa [#allocation6], 1 }
0x231a   :  { %5001 = vsyncpa [#allocation9], 1 }
0x231b   :  { %5002 = vsyncpa [#allocation12], 1 }
0x231c   :  { %5003 = vsyncpa [#allocation15], 1 }
0x231d   :  { %5004 = vsyncpa [#allocation18], 1 }
0x231e   :  { %5005 = vsyncpa [#allocation4], 1 }
0x231f   :  { %5006 = vsyncpa [#allocation21], 1 }

</bundles_post_ra>
